<compile_context>
chip_gen: v7x
topology: tpu7x:2x2x1
jax: 0.10.0
libtpu: 0.0.40
codegen_flags: <defaults>
</compile_context>

<pallas_src>
import functools

import jax
import jax.numpy as jnp
from jax import lax
from jax.experimental import pallas as pl
from jax.experimental.pallas import tpu as pltpu

EPS = 1e-5


# --------------------------------------------------------------------------------------
# Kernel
# --------------------------------------------------------------------------------------
def _double_conv_kernel(x_ref, w1_ref, b1_ref, w2_ref, b2_ref, o_ref,
                        p1_ref, y1_ref, p2_ref, *, tiles_per_image):
    """One (tile_h, W) output tile of DoubleConv.

    x_ref  : (1, tile_h+4, We+2, Cin)  bf16  input window (2-row/2-col halo, zero padded)
    w1_ref : (9*Cin, Cout)             bf16  conv1 weights, BN1 scale folded in
    b1_ref : (1, Cout)                 f32   folded conv1 bias + BN1 shift
    w2_ref : (9*Cout, Cout)            bf16  conv2 weights, BN2 scale folded in
    b2_ref : (1, Cout)                 f32   folded conv2 bias + BN2 shift
    o_ref  : (1, tile_h, W, Cout)      f32   output tile
    p1_ref : (He*We, 9*Cin)            bf16  scratch: im2col patch for conv1
    y1_ref : (He, We, Cout)            bf16  scratch: extended intermediate (conv2 input)
    p2_ref : (tile_h*W, 9*Cout)        bf16  scratch: im2col patch for conv2
    """
    _, th, w, cout = o_ref.shape
    cin = x_ref.shape[-1]
    he, we, _ = y1_ref.shape                       # He = tile_h+2, We = round_up(W+2, 8)

    # ---- conv1 (+ folded BN1, ReLU) as a single im2col MXU matmul --------------------
    # Taps are sliced straight from the ref (bounded vreg pressure) and laid into the
    # (rows, 9*Cin) patch scratch at their lane offset -> one K = 9*Cin contraction.
    for ky in range(3):
        for kx in range(3):
            ti = ky * 3 + kx
            tap = x_ref[:, ky:ky + he, kx:kx + we, :]          # (1, He, We, Cin)
            p1_ref[:, ti * cin:(ti + 1) * cin] = tap.reshape(he * we, cin)
    y1 = jnp.dot(p1_ref[...], w1_ref[...], preferred_element_type=jnp.float32)
    y1 = jnp.maximum(y1 + b1_ref[...], 0.0).reshape(he, we, cout)

    # conv2's SAME zero padding: zero the extended-region positions that fall outside
    # the real (H, W) image (top/bottom only at the first/last row tile).
    t = pl.program_id(0) % tiles_per_image
    rows = lax.broadcasted_iota(jnp.int32, (he, we, 1), 0)
    cols = lax.broadcasted_iota(jnp.int32, (he, we, 1), 1)
    row_ok = jnp.logical_and(jnp.logical_or(rows > 0, t > 0),
                             jnp.logical_or(rows < he - 1, t < tiles_per_image - 1))
    col_ok = jnp.logical_and(cols > 0, cols < w + 1)
    y1_ref[...] = jnp.where(jnp.logical_and(row_ok, col_ok), y1, 0.0).astype(y1_ref.dtype)

    # ---- conv2 (+ folded BN2, ReLU) as a single im2col MXU matmul --------------------
    for ky in range(3):
        for kx in range(3):
            ti = ky * 3 + kx
            tap = y1_ref[ky:ky + th, kx:kx + w, :]             # (tile_h, W, Cout)
            p2_ref[:, ti * cout:(ti + 1) * cout] = tap.reshape(th * w, cout)
    y2 = jnp.dot(p2_ref[...], w2_ref[...], preferred_element_type=jnp.float32)
    y2 = jnp.maximum(y2 + b2_ref[...], 0.0)
    o_ref[...] = y2.reshape(1, th, w, cout).astype(o_ref.dtype)


# --------------------------------------------------------------------------------------
# Host-side helpers / wrapper
# --------------------------------------------------------------------------------------
def _round_up(x, m):
    return (x + m - 1) // m * m


def _pick_tile_h(H, W, Cin, Cout, budget_bytes=8 * 1024 * 1024):
    """Largest divisor of H whose per-tile working set fits a conservative VMEM budget.

    The 8 MiB default keeps well under the 32 MiB scoped default on all generations and
    leaves headroom inside v7x's 64 MiB physical VMEM; raise it for v5e/v6e if desired.
    """
    we = _round_up(W + 2, 8)

    def est(th):
        he = th + 2
        x_win = (th + 4) * (we + 2) * Cin * 2          # bf16 input window
        p1 = he * we * 9 * Cin * 2                     # im2col patch 1
        y1 = he * we * Cout * 2                        # extended intermediate
        p2 = th * W * 9 * Cout * 2                     # im2col patch 2
        out_t = th * W * Cout * 4                      # f32 output tile
        return 2 * x_win + 2 * out_t + p1 + y1 + p2    # x/out are double-buffered

    for th in sorted((d for d in range(1, H + 1) if H % d == 0), reverse=True):
        if est(th) <= budget_bytes:
            return th
    return 1


def fold_params(w1, cb1, g1, be1, rm1, rv1, w2, cb2, g2, be2, rm2, rv2):
    """Fold eval-mode BN (and the conv bias) into MXU-ready weight matrices + biases."""
    def fold(w, cb, g, be, rm, rv):
        s = g / jnp.sqrt(rv + EPS)                           # (Cout,)
        wm = (w * s).reshape(9 * w.shape[2], w.shape[3]).astype(jnp.bfloat16)
        b = ((cb - rm) * s + be).reshape(1, -1).astype(jnp.float32)
        return wm, b
    w1m, b1 = fold(w1, cb1, g1, be1, rm1, rv1)
    w2m, b2 = fold(w2, cb2, g2, be2, rm2, rv2)
    return w1m, b1, w2m, b2


@functools.partial(jax.jit, static_argnames=("tile_h",))
def double_conv_nhwc(x_nhwc, w1m, b1, w2m, b2, tile_h=None):
    """Primary NHWC entry point (keep activations NHWC end-to-end across a network)."""
    N, H, W, Cin = x_nhwc.shape
    assert w1m.shape[0] == 9 * Cin
    Cout = w1m.shape[1]

    if tile_h is None:
        tile_h = _pick_tile_h(H, W, Cin, Cout)
    assert H % tile_h == 0, (H, tile_h)
    T = H // tile_h
    we = _round_up(W + 2, 8)          # lane/sublane-friendly extended width
    he = tile_h + 2

    # Zero pad: 2 rows top/bottom (conv1+conv2 halo), 2 cols left, we-W cols right.
    xp = jnp.pad(x_nhwc, ((0, 0), (2, 2), (2, we - W), (0, 0))).astype(jnp.bfloat16)
    # Overlapping row windows (halo baked in) so the kernel BlockSpecs stay plain
    # Blocked and get auto double-buffering; duplication cost is only 4/tile_h rows.
    win_rows = jnp.arange(T)[:, None] * tile_h + jnp.arange(tile_h + 4)[None, :]
    xw = xp[:, win_rows].reshape(N * T, tile_h + 4, we + 2, Cin)

    flops = 2 * 9 * N * H * W * (Cin * Cout + Cout * Cout)
    bytes_accessed = int(xw.size * 2 + N * H * W * Cout * 4
                         + w1m.size * 2 + w2m.size * 2 + (b1.size + b2.size) * 4)

    out = pl.pallas_call(
        functools.partial(_double_conv_kernel, tiles_per_image=T),
        out_shape=jax.ShapeDtypeStruct((N * T, tile_h, W, Cout), jnp.float32),
        grid_spec=pltpu.PrefetchScalarGridSpec(
            num_scalar_prefetch=0,
            grid=(N * T,),
            in_specs=[
                pl.BlockSpec((1, tile_h + 4, we + 2, Cin), lambda i: (i, 0, 0, 0)),
                pl.BlockSpec((9 * Cin, Cout), lambda i: (0, 0)),   # resident weights
                pl.BlockSpec((1, Cout), lambda i: (0, 0)),
                pl.BlockSpec((9 * Cout, Cout), lambda i: (0, 0)),
                pl.BlockSpec((1, Cout), lambda i: (0, 0)),
            ],
            out_specs=pl.BlockSpec((1, tile_h, W, Cout), lambda i: (i, 0, 0, 0)),
            scratch_shapes=[
                pltpu.VMEM((he * we, 9 * Cin), jnp.bfloat16),      # im2col patch 1
                pltpu.VMEM((he, we, Cout), jnp.bfloat16),          # extended y1
                pltpu.VMEM((tile_h * W, 9 * Cout), jnp.bfloat16),  # im2col patch 2
            ],
        ),
        compiler_params=pltpu.CompilerParams(
            dimension_semantics=("parallel",),        # megacore sharding on v7x
            vmem_limit_bytes=32 * 1024 * 1024,
        ),
        cost_estimate=pl.CostEstimate(flops=flops, transcendentals=0,
                                      bytes_accessed=bytes_accessed),
    )(xw, w1m, b1, w2m, b2)

    return out.reshape(N, H, W, Cout)


def double_conv_nchw(x_nchw, w1m, b1, w2m, b2, tile_h=None):
    """PyTorch-layout (NCHW) convenience wrapper.  In an NHWC network call
    double_conv_nhwc directly and skip these HBM relayout transposes."""
    x = jnp.transpose(x_nchw, (0, 2, 3, 1))
    y = double_conv_nhwc(x, w1m, b1, w2m, b2, tile_h=tile_h)
    return jnp.transpose(y, (0, 3, 1, 2))


# --------------------------------------------------------------------------------------
# Reference & synthetic parameters (for the self-check)
# --------------------------------------------------------------------------------------
def _reference_nchw(x_nchw, w1, cb1, g1, be1, rm1, rv1, w2, cb2, g2, be2, rm2, rv2):
    """Eval-mode DoubleConv in plain JAX, mirroring the kernel's dtype policy
    (bf16 conv inputs/weights, f32 accumulation, f32 bias+ReLU, bf16 intermediate)
    so the correctness check stays tight."""
    f32 = jnp.float32
    bf = lambda a: a.astype(jnp.bfloat16).astype(f32)
    dn = ("NHWC", "HWIO", "NHWC")
    s1 = g1 / jnp.sqrt(rv1 + EPS)
    s2 = g2 / jnp.sqrt(rv2 + EPS)

    x = jnp.transpose(x_nchw, (0, 2, 3, 1))
    y = lax.conv_general_dilated(bf(x), bf(w1 * s1), (1, 1), "SAME",
                                 dimension_numbers=dn,
                                 precision=lax.Precision.HIGHEST)
    y = jnp.maximum(y + (cb1 - rm1) * s1 + be1, 0.0)
    y = lax.conv_general_dilated(bf(y), bf(w2 * s2), (1, 1), "SAME",
                                 dimension_numbers=dn,
                                 precision=lax.Precision.HIGHEST)
    y = jnp.maximum(y + (cb2 - rm2) * s2 + be2, 0.0)
    return jnp.transpose(y, (0, 3, 1, 2))


def init_raw_params(key, in_channels, out_channels):
    """Deterministic synthetic parameters with the same shapes as the PyTorch module."""
    ks = jax.random.split(key, 12)
    f32 = jnp.float32
    w1 = 0.2 * jax.random.normal(ks[0], (3, 3, in_channels, out_channels), f32)
    cb1 = 0.1 * jax.random.normal(ks[1], (out_channels,), f32)
    g1 = 1.0 + 0.1 * jax.random.normal(ks[2], (out_channels,), f32)
    be1 = 0.1 * jax.random.normal(ks[3], (out_channels,), f32)
    rm1 = 0.1 * jax.random.normal(ks[4], (out_channels,), f32)
    rv1 = 0.5 + jnp.abs(jax.random.normal(ks[5], (out_channels,), f32))
    w2 = 0.2 * jax.random.normal(ks[6], (3, 3, out_channels, out_channels), f32)
    cb2 = 0.1 * jax.random.normal(ks[7], (out_channels,), f32)
    g2 = 1.0 + 0.1 * jax.random.normal(ks[8], (out_channels,), f32)
    be2 = 0.1 * jax.random.normal(ks[9], (out_channels,), f32)
    rm2 = 0.1 * jax.random.normal(ks[10], (out_channels,), f32)
    rv2 = 0.5 + jnp.abs(jax.random.normal(ks[11], (out_channels,), f32))
    return (w1, cb1, g1, be1, rm1, rv1, w2, cb2, g2, be2, rm2, rv2)


if __name__ == "__main__":
    key = jax.random.PRNGKey(0)
    k_x, k_p = jax.random.split(key)

    N, Cin, Cout, H, W = 2, 4, 8, 16, 16
    x = jax.random.normal(k_x, (N, Cin, H, W), jnp.float32)      # NCHW, like PyTorch

    raw = init_raw_params(k_p, Cin, Cout)
    w1m, b1, w2m, b2 = fold_params(*raw)

    # tile_h=8 -> two row tiles per image (grid of 4), exercising the halo/mask logic.
    out = double_conv_nchw(x, w1m, b1, w2m, b2, tile_h=8)
    out = jax.block_until_ready(out)
    assert out.shape == (N, Cout, H, W), out.shape

    ref = jax.block_until_ready(_reference_nchw(x, *raw))
    assert jnp.allclose(out, ref, atol=1e-3, rtol=1e-3), float(jnp.max(jnp.abs(out - ref)))

    print("KERNEL_OK")
</pallas_src>

<mosaic_0001>
module attributes {stable_mosaic.version = 11 : i64} {
  func.func @_double_conv_kernel(%arg0: i32, %arg1: memref<1x12x26x4xbf16, #tpu.memory_space<vmem>>, %arg2: memref<36x8xbf16, #tpu.memory_space<vmem>>, %arg3: memref<1x8xf32, #tpu.memory_space<vmem>>, %arg4: memref<72x8xbf16, #tpu.memory_space<vmem>>, %arg5: memref<1x8xf32, #tpu.memory_space<vmem>>, %arg6: memref<1x8x16x8xf32, #tpu.memory_space<vmem>>, %arg7: memref<240x36xbf16, #tpu.memory_space<vmem>>, %arg8: memref<10x24x8xbf16, #tpu.memory_space<vmem>>, %arg9: memref<128x72xbf16, #tpu.memory_space<vmem>>) attributes {dimension_semantics = [#tpu.dimension_semantics<parallel>], iteration_bounds = array<i64: 4>, scalar_prefetch = 0 : i64, scratch_operands = 3 : i64, tpu.core_type = #tpu.core_type<tc>, window_params = [{transform_indices = @transform_0, window_bounds = array<i64: 1, 12, 26, 4>}, {pipeline_mode = #tpu.pipeline_mode<synchronous>, transform_indices = @transform_1, window_bounds = array<i64: 36, 8>}, {pipeline_mode = #tpu.pipeline_mode<synchronous>, transform_indices = @transform_2, window_bounds = array<i64: 1, 8>}, {pipeline_mode = #tpu.pipeline_mode<synchronous>, transform_indices = @transform_3, window_bounds = array<i64: 72, 8>}, {pipeline_mode = #tpu.pipeline_mode<synchronous>, transform_indices = @transform_4, window_bounds = array<i64: 1, 8>}, {transform_indices = @transform_5, window_bounds = array<i64: 1, 8, 16, 8>}]} {
    %c0 = arith.constant 0 : index
    %c0_0 = arith.constant 0 : index
    %c0_1 = arith.constant 0 : index
    %c0_2 = arith.constant 0 : index
    %0 = vector.load %arg1[%c0, %c0_0, %c0_1, %c0_2] : memref<1x12x26x4xbf16, #tpu.memory_space<vmem>>, vector<1x10x24x4xbf16>
    %1 = vector.shape_cast %0 : vector<1x10x24x4xbf16> to vector<240x4xbf16>
    %c0_3 = arith.constant 0 : index
    %c0_4 = arith.constant 0 : index
    %2 = vector.load %arg7[%c0_3, %c0_4] : memref<240x36xbf16, #tpu.memory_space<vmem>>, vector<240x4xbf16>
    tpu.vector_store %arg7[%c0_3, %c0_4], %1 {strides = array<i32>} : memref<240x36xbf16, #tpu.memory_space<vmem>>, vector<240x4xbf16>,
    %c0_5 = arith.constant 0 : index
    %c0_6 = arith.constant 0 : index
    %c1 = arith.constant 1 : index
    %c0_7 = arith.constant 0 : index
    %3 = vector.load %arg1[%c0_5, %c0_6, %c1, %c0_7] : memref<1x12x26x4xbf16, #tpu.memory_space<vmem>>, vector<1x10x24x4xbf16>
    %4 = vector.shape_cast %3 : vector<1x10x24x4xbf16> to vector<240x4xbf16>
    %c0_8 = arith.constant 0 : index
    %c4 = arith.constant 4 : index
    %5 = vector.load %arg7[%c0_8, %c4] : memref<240x36xbf16, #tpu.memory_space<vmem>>, vector<240x4xbf16>
    tpu.vector_store %arg7[%c0_8, %c4], %4 {strides = array<i32>} : memref<240x36xbf16, #tpu.memory_space<vmem>>, vector<240x4xbf16>,
    %c0_9 = arith.constant 0 : index
    %c0_10 = arith.constant 0 : index
    %c2 = arith.constant 2 : index
    %c0_11 = arith.constant 0 : index
    %6 = vector.load %arg1[%c0_9, %c0_10, %c2, %c0_11] : memref<1x12x26x4xbf16, #tpu.memory_space<vmem>>, vector<1x10x24x4xbf16>
    %7 = vector.shape_cast %6 : vector<1x10x24x4xbf16> to vector<240x4xbf16>
    %c0_12 = arith.constant 0 : index
    %c8 = arith.constant 8 : index
    %8 = vector.load %arg7[%c0_12, %c8] : memref<240x36xbf16, #tpu.memory_space<vmem>>, vector<240x4xbf16>
    tpu.vector_store %arg7[%c0_12, %c8], %7 {strides = array<i32>} : memref<240x36xbf16, #tpu.memory_space<vmem>>, vector<240x4xbf16>,
    %c0_13 = arith.constant 0 : index
    %c1_14 = arith.constant 1 : index
    %c0_15 = arith.constant 0 : index
    %c0_16 = arith.constant 0 : index
    %9 = vector.load %arg1[%c0_13, %c1_14, %c0_15, %c0_16] : memref<1x12x26x4xbf16, #tpu.memory_space<vmem>>, vector<1x10x24x4xbf16>
    %10 = vector.shape_cast %9 : vector<1x10x24x4xbf16> to vector<240x4xbf16>
    %c0_17 = arith.constant 0 : index
    %c12 = arith.constant 12 : index
    %11 = vector.load %arg7[%c0_17, %c12] : memref<240x36xbf16, #tpu.memory_space<vmem>>, vector<240x4xbf16>
    tpu.vector_store %arg7[%c0_17, %c12], %10 {strides = array<i32>} : memref<240x36xbf16, #tpu.memory_space<vmem>>, vector<240x4xbf16>,
    %c0_18 = arith.constant 0 : index
    %c1_19 = arith.constant 1 : index
    %c1_20 = arith.constant 1 : index
    %c0_21 = arith.constant 0 : index
    %12 = vector.load %arg1[%c0_18, %c1_19, %c1_20, %c0_21] : memref<1x12x26x4xbf16, #tpu.memory_space<vmem>>, vector<1x10x24x4xbf16>
    %13 = vector.shape_cast %12 : vector<1x10x24x4xbf16> to vector<240x4xbf16>
    %c0_22 = arith.constant 0 : index
    %c16 = arith.constant 16 : index
    %14 = vector.load %arg7[%c0_22, %c16] : memref<240x36xbf16, #tpu.memory_space<vmem>>, vector<240x4xbf16>
    tpu.vector_store %arg7[%c0_22, %c16], %13 {strides = array<i32>} : memref<240x36xbf16, #tpu.memory_space<vmem>>, vector<240x4xbf16>,
    %c0_23 = arith.constant 0 : index
    %c1_24 = arith.constant 1 : index
    %c2_25 = arith.constant 2 : index
    %c0_26 = arith.constant 0 : index
    %15 = vector.load %arg1[%c0_23, %c1_24, %c2_25, %c0_26] : memref<1x12x26x4xbf16, #tpu.memory_space<vmem>>, vector<1x10x24x4xbf16>
    %16 = vector.shape_cast %15 : vector<1x10x24x4xbf16> to vector<240x4xbf16>
    %c0_27 = arith.constant 0 : index
    %c20 = arith.constant 20 : index
    %17 = vector.load %arg7[%c0_27, %c20] : memref<240x36xbf16, #tpu.memory_space<vmem>>, vector<240x4xbf16>
    tpu.vector_store %arg7[%c0_27, %c20], %16 {strides = array<i32>} : memref<240x36xbf16, #tpu.memory_space<vmem>>, vector<240x4xbf16>,
    %c0_28 = arith.constant 0 : index
    %c2_29 = arith.constant 2 : index
    %c0_30 = arith.constant 0 : index
    %c0_31 = arith.constant 0 : index
    %18 = vector.load %arg1[%c0_28, %c2_29, %c0_30, %c0_31] : memref<1x12x26x4xbf16, #tpu.memory_space<vmem>>, vector<1x10x24x4xbf16>
    %19 = vector.shape_cast %18 : vector<1x10x24x4xbf16> to vector<240x4xbf16>
    %c0_32 = arith.constant 0 : index
    %c24 = arith.constant 24 : index
    %20 = vector.load %arg7[%c0_32, %c24] : memref<240x36xbf16, #tpu.memory_space<vmem>>, vector<240x4xbf16>
    tpu.vector_store %arg7[%c0_32, %c24], %19 {strides = array<i32>} : memref<240x36xbf16, #tpu.memory_space<vmem>>, vector<240x4xbf16>,
    %c0_33 = arith.constant 0 : index
    %c2_34 = arith.constant 2 : index
    %c1_35 = arith.constant 1 : index
    %c0_36 = arith.constant 0 : index
    %21 = vector.load %arg1[%c0_33, %c2_34, %c1_35, %c0_36] : memref<1x12x26x4xbf16, #tpu.memory_space<vmem>>, vector<1x10x24x4xbf16>
    %22 = vector.shape_cast %21 : vector<1x10x24x4xbf16> to vector<240x4xbf16>
    %c0_37 = arith.constant 0 : index
    %c28 = arith.constant 28 : index
    %23 = vector.load %arg7[%c0_37, %c28] : memref<240x36xbf16, #tpu.memory_space<vmem>>, vector<240x4xbf16>
    tpu.vector_store %arg7[%c0_37, %c28], %22 {strides = array<i32>} : memref<240x36xbf16, #tpu.memory_space<vmem>>, vector<240x4xbf16>,
    %c0_38 = arith.constant 0 : index
    %c2_39 = arith.constant 2 : index
    %c2_40 = arith.constant 2 : index
    %c0_41 = arith.constant 0 : index
    %24 = vector.load %arg1[%c0_38, %c2_39, %c2_40, %c0_41] : memref<1x12x26x4xbf16, #tpu.memory_space<vmem>>, vector<1x10x24x4xbf16>
    %25 = vector.shape_cast %24 : vector<1x10x24x4xbf16> to vector<240x4xbf16>
    %c0_42 = arith.constant 0 : index
    %c32 = arith.constant 32 : index
    %26 = vector.load %arg7[%c0_42, %c32] : memref<240x36xbf16, #tpu.memory_space<vmem>>, vector<240x4xbf16>
    tpu.vector_store %arg7[%c0_42, %c32], %25 {strides = array<i32>} : memref<240x36xbf16, #tpu.memory_space<vmem>>, vector<240x4xbf16>,
    %c0_43 = arith.constant 0 : index
    %c0_44 = arith.constant 0 : index
    %27 = vector.load %arg7[%c0_43, %c0_44] : memref<240x36xbf16, #tpu.memory_space<vmem>>, vector<240x36xbf16>
    %c0_45 = arith.constant 0 : index
    %c0_46 = arith.constant 0 : index
    %28 = vector.load %arg2[%c0_45, %c0_46] : memref<36x8xbf16, #tpu.memory_space<vmem>>, vector<36x8xbf16>
    %cst = arith.constant dense<0.000000e+00> : vector<240x8xf32>
    %29 = tpu.matmul %27, %28, %cst {dimension_numbers = #tpu.dot_dimension_numbers<[1], [0], [0], [1], [0, 0, 1, 1], [], []>} : vector<240x36xbf16>, vector<36x8xbf16>, vector<240x8xf32> -> vector<240x8xf32>
    %c0_47 = arith.constant 0 : index
    %c0_48 = arith.constant 0 : index
    %30 = vector.load %arg3[%c0_47, %c0_48] : memref<1x8xf32, #tpu.memory_space<vmem>>, vector<1x8xf32>
    %31 = vector.broadcast %30 : vector<1x8xf32> to vector<240x8xf32>
    %32 = arith.addf %29, %31 : vector<240x8xf32>
    %cst_49 = arith.constant 0.000000e+00 : f32
    %33 = vector.broadcast %cst_49 : f32 to vector<240x8xf32>
    %34 = arith.maximumf %32, %33 : vector<240x8xf32>
    %35 = vector.shape_cast %34 : vector<240x8xf32> to vector<10x24x8xf32>
    %c2_i32 = arith.constant 2 : i32
    %c0_i32 = arith.constant 0 : i32
    %36 = arith.cmpi eq, %c2_i32, %c0_i32 : i32
    %c1_i32 = arith.constant 1 : i32
    %37 = arith.select %36, %c1_i32, %c2_i32 : i32
    %38 = arith.remsi %arg0, %37 : i32
    %c0_i32_50 = arith.constant 0 : i32
    %39 = arith.cmpi ne, %38, %c0_i32_50 : i32
    %c0_i32_51 = arith.constant 0 : i32
    %40 = arith.cmpi slt, %38, %c0_i32_51 : i32
    %c0_i32_52 = arith.constant 0 : i32
    %41 = arith.cmpi slt, %37, %c0_i32_52 : i32
    %42 = arith.xori %40, %41 : i1
    %43 = arith.andi %42, %39 : i1
    %44 = arith.addi %38, %37 : i32
    %45 = arith.select %43, %44, %38 : i32
    %46 = tpu.iota {dimensions = array<i32: 0>} : vector<10x24x1xi32>
    %47 = tpu.iota {dimensions = array<i32: 1>} : vector<10x24x1xi32>
    %c0_i32_53 = arith.constant 0 : i32
    %48 = vector.broadcast %c0_i32_53 : i32 to vector<10x24x1xi32>
    %49 = arith.cmpi sgt, %46, %48 : vector<10x24x1xi32>
    %c0_i32_54 = arith.constant 0 : i32
    %50 = arith.cmpi sgt, %45, %c0_i32_54 : i32
    %51 = vector.broadcast %50 : i1 to vector<10x24x1xi1>
    %52 = arith.ori %49, %51 : vector<10x24x1xi1>
    %c9_i32 = arith.constant 9 : i32
    %53 = vector.broadcast %c9_i32 : i32 to vector<10x24x1xi32>
    %54 = arith.cmpi slt, %46, %53 : vector<10x24x1xi32>
    %c1_i32_55 = arith.constant 1 : i32
    %55 = arith.cmpi slt, %45, %c1_i32_55 : i32
    %56 = vector.broadcast %55 : i1 to vector<10x24x1xi1>
    %57 = arith.ori %54, %56 : vector<10x24x1xi1>
    %58 = arith.andi %52, %57 : vector<10x24x1xi1>
    %c0_i32_56 = arith.constant 0 : i32
    %59 = vector.broadcast %c0_i32_56 : i32 to vector<10x24x1xi32>
    %60 = arith.cmpi sgt, %47, %59 : vector<10x24x1xi32>
    %c17_i32 = arith.constant 17 : i32
    %61 = vector.broadcast %c17_i32 : i32 to vector<10x24x1xi32>
    %62 = arith.cmpi slt, %47, %61 : vector<10x24x1xi32>
    %63 = arith.andi %60, %62 : vector<10x24x1xi1>
    %64 = arith.andi %58, %63 : vector<10x24x1xi1>
    %cst_57 = arith.constant 0.000000e+00 : f32
    %65 = vector.shape_cast %64 : vector<10x24x1xi1> to vector<10x24x1xi1>
    %66 = vector.broadcast %65 : vector<10x24x1xi1> to vector<10x24x8xi1>
    %67 = vector.broadcast %cst_57 : f32 to vector<10x24x8xf32>
    %68 = arith.select %66, %35, %67 : vector<10x24x8xi1>, vector<10x24x8xf32>
    %69 = arith.truncf %68 : vector<10x24x8xf32> to vector<10x24x8xbf16>
    %c0_58 = arith.constant 0 : index
    %c0_59 = arith.constant 0 : index
    %c0_60 = arith.constant 0 : index
    %70 = vector.load %arg8[%c0_58, %c0_59, %c0_60] : memref<10x24x8xbf16, #tpu.memory_space<vmem>>, vector<10x24x8xbf16>
    tpu.vector_store %arg8[%c0_58, %c0_59, %c0_60], %69 {strides = array<i32>} : memref<10x24x8xbf16, #tpu.memory_space<vmem>>, vector<10x24x8xbf16>,
    %c0_61 = arith.constant 0 : index
    %c0_62 = arith.constant 0 : index
    %c0_63 = arith.constant 0 : index
    %71 = vector.load %arg8[%c0_61, %c0_62, %c0_63] : memref<10x24x8xbf16, #tpu.memory_space<vmem>>, vector<8x16x8xbf16>
    %72 = vector.shape_cast %71 : vector<8x16x8xbf16> to vector<128x8xbf16>
    %c0_64 = arith.constant 0 : index
    %c0_65 = arith.constant 0 : index
    %73 = vector.load %arg9[%c0_64, %c0_65] : memref<128x72xbf16, #tpu.memory_space<vmem>>, vector<128x8xbf16>
    tpu.vector_store %arg9[%c0_64, %c0_65], %72 {strides = array<i32>} : memref<128x72xbf16, #tpu.memory_space<vmem>>, vector<128x8xbf16>,
    %c0_66 = arith.constant 0 : index
    %c1_67 = arith.constant 1 : index
    %c0_68 = arith.constant 0 : index
    %74 = vector.load %arg8[%c0_66, %c1_67, %c0_68] : memref<10x24x8xbf16, #tpu.memory_space<vmem>>, vector<8x16x8xbf16>
    %75 = vector.shape_cast %74 : vector<8x16x8xbf16> to vector<128x8xbf16>
    %c0_69 = arith.constant 0 : index
    %c8_70 = arith.constant 8 : index
    %76 = vector.load %arg9[%c0_69, %c8_70] : memref<128x72xbf16, #tpu.memory_space<vmem>>, vector<128x8xbf16>
    tpu.vector_store %arg9[%c0_69, %c8_70], %75 {strides = array<i32>} : memref<128x72xbf16, #tpu.memory_space<vmem>>, vector<128x8xbf16>,
    %c0_71 = arith.constant 0 : index
    %c2_72 = arith.constant 2 : index
    %c0_73 = arith.constant 0 : index
    %77 = vector.load %arg8[%c0_71, %c2_72, %c0_73] : memref<10x24x8xbf16, #tpu.memory_space<vmem>>, vector<8x16x8xbf16>
    %78 = vector.shape_cast %77 : vector<8x16x8xbf16> to vector<128x8xbf16>
    %c0_74 = arith.constant 0 : index
    %c16_75 = arith.constant 16 : index
    %79 = vector.load %arg9[%c0_74, %c16_75] : memref<128x72xbf16, #tpu.memory_space<vmem>>, vector<128x8xbf16>
    tpu.vector_store %arg9[%c0_74, %c16_75], %78 {strides = array<i32>} : memref<128x72xbf16, #tpu.memory_space<vmem>>, vector<128x8xbf16>,
    %c1_76 = arith.constant 1 : index
    %c0_77 = arith.constant 0 : index
    %c0_78 = arith.constant 0 : index
    %80 = vector.load %arg8[%c1_76, %c0_77, %c0_78] : memref<10x24x8xbf16, #tpu.memory_space<vmem>>, vector<8x16x8xbf16>
    %81 = vector.shape_cast %80 : vector<8x16x8xbf16> to vector<128x8xbf16>
    %c0_79 = arith.constant 0 : index
    %c24_80 = arith.constant 24 : index
    %82 = vector.load %arg9[%c0_79, %c24_80] : memref<128x72xbf16, #tpu.memory_space<vmem>>, vector<128x8xbf16>
    tpu.vector_store %arg9[%c0_79, %c24_80], %81 {strides = array<i32>} : memref<128x72xbf16, #tpu.memory_space<vmem>>, vector<128x8xbf16>,
    %c1_81 = arith.constant 1 : index
    %c1_82 = arith.constant 1 : index
    %c0_83 = arith.constant 0 : index
    %83 = vector.load %arg8[%c1_81, %c1_82, %c0_83] : memref<10x24x8xbf16, #tpu.memory_space<vmem>>, vector<8x16x8xbf16>
    %84 = vector.shape_cast %83 : vector<8x16x8xbf16> to vector<128x8xbf16>
    %c0_84 = arith.constant 0 : index
    %c32_85 = arith.constant 32 : index
    %85 = vector.load %arg9[%c0_84, %c32_85] : memref<128x72xbf16, #tpu.memory_space<vmem>>, vector<128x8xbf16>
    tpu.vector_store %arg9[%c0_84, %c32_85], %84 {strides = array<i32>} : memref<128x72xbf16, #tpu.memory_space<vmem>>, vector<128x8xbf16>,
    %c1_86 = arith.constant 1 : index
    %c2_87 = arith.constant 2 : index
    %c0_88 = arith.constant 0 : index
    %86 = vector.load %arg8[%c1_86, %c2_87, %c0_88] : memref<10x24x8xbf16, #tpu.memory_space<vmem>>, vector<8x16x8xbf16>
    %87 = vector.shape_cast %86 : vector<8x16x8xbf16> to vector<128x8xbf16>
    %c0_89 = arith.constant 0 : index
    %c40 = arith.constant 40 : index
    %88 = vector.load %arg9[%c0_89, %c40] : memref<128x72xbf16, #tpu.memory_space<vmem>>, vector<128x8xbf16>
    tpu.vector_store %arg9[%c0_89, %c40], %87 {strides = array<i32>} : memref<128x72xbf16, #tpu.memory_space<vmem>>, vector<128x8xbf16>,
    %c2_90 = arith.constant 2 : index
    %c0_91 = arith.constant 0 : index
    %c0_92 = arith.constant 0 : index
    %89 = vector.load %arg8[%c2_90, %c0_91, %c0_92] : memref<10x24x8xbf16, #tpu.memory_space<vmem>>, vector<8x16x8xbf16>
    %90 = vector.shape_cast %89 : vector<8x16x8xbf16> to vector<128x8xbf16>
    %c0_93 = arith.constant 0 : index
    %c48 = arith.constant 48 : index
    %91 = vector.load %arg9[%c0_93, %c48] : memref<128x72xbf16, #tpu.memory_space<vmem>>, vector<128x8xbf16>
    tpu.vector_store %arg9[%c0_93, %c48], %90 {strides = array<i32>} : memref<128x72xbf16, #tpu.memory_space<vmem>>, vector<128x8xbf16>,
    %c2_94 = arith.constant 2 : index
    %c1_95 = arith.constant 1 : index
    %c0_96 = arith.constant 0 : index
    %92 = vector.load %arg8[%c2_94, %c1_95, %c0_96] : memref<10x24x8xbf16, #tpu.memory_space<vmem>>, vector<8x16x8xbf16>
    %93 = vector.shape_cast %92 : vector<8x16x8xbf16> to vector<128x8xbf16>
    %c0_97 = arith.constant 0 : index
    %c56 = arith.constant 56 : index
    %94 = vector.load %arg9[%c0_97, %c56] : memref<128x72xbf16, #tpu.memory_space<vmem>>, vector<128x8xbf16>
    tpu.vector_store %arg9[%c0_97, %c56], %93 {strides = array<i32>} : memref<128x72xbf16, #tpu.memory_space<vmem>>, vector<128x8xbf16>,
    %c2_98 = arith.constant 2 : index
    %c2_99 = arith.constant 2 : index
    %c0_100 = arith.constant 0 : index
    %95 = vector.load %arg8[%c2_98, %c2_99, %c0_100] : memref<10x24x8xbf16, #tpu.memory_space<vmem>>, vector<8x16x8xbf16>
    %96 = vector.shape_cast %95 : vector<8x16x8xbf16> to vector<128x8xbf16>
    %c0_101 = arith.constant 0 : index
    %c64 = arith.constant 64 : index
    %97 = vector.load %arg9[%c0_101, %c64] : memref<128x72xbf16, #tpu.memory_space<vmem>>, vector<128x8xbf16>
    tpu.vector_store %arg9[%c0_101, %c64], %96 {strides = array<i32>} : memref<128x72xbf16, #tpu.memory_space<vmem>>, vector<128x8xbf16>,
    %c0_102 = arith.constant 0 : index
    %c0_103 = arith.constant 0 : index
    %98 = vector.load %arg9[%c0_102, %c0_103] : memref<128x72xbf16, #tpu.memory_space<vmem>>, vector<128x72xbf16>
    %c0_104 = arith.constant 0 : index
    %c0_105 = arith.constant 0 : index
    %99 = vector.load %arg4[%c0_104, %c0_105] : memref<72x8xbf16, #tpu.memory_space<vmem>>, vector<72x8xbf16>
    %cst_106 = arith.constant dense<0.000000e+00> : vector<128x8xf32>
    %100 = tpu.matmul %98, %99, %cst_106 {dimension_numbers = #tpu.dot_dimension_numbers<[1], [0], [0], [1], [0, 0, 1, 1], [], []>} : vector<128x72xbf16>, vector<72x8xbf16>, vector<128x8xf32> -> vector<128x8xf32>
    %c0_107 = arith.constant 0 : index
    %c0_108 = arith.constant 0 : index
    %101 = vector.load %arg5[%c0_107, %c0_108] : memref<1x8xf32, #tpu.memory_space<vmem>>, vector<1x8xf32>
    %102 = vector.broadcast %101 : vector<1x8xf32> to vector<128x8xf32>
    %103 = arith.addf %100, %102 : vector<128x8xf32>
    %cst_109 = arith.constant 0.000000e+00 : f32
    %104 = vector.broadcast %cst_109 : f32 to vector<128x8xf32>
    %105 = arith.maximumf %103, %104 : vector<128x8xf32>
    %106 = vector.shape_cast %105 : vector<128x8xf32> to vector<1x8x16x8xf32>
    %c0_110 = arith.constant 0 : index
    %c0_111 = arith.constant 0 : index
    %c0_112 = arith.constant 0 : index
    %c0_113 = arith.constant 0 : index
    %107 = vector.load %arg6[%c0_110, %c0_111, %c0_112, %c0_113] : memref<1x8x16x8xf32, #tpu.memory_space<vmem>>, vector<1x8x16x8xf32>
    tpu.vector_store %arg6[%c0_110, %c0_111, %c0_112, %c0_113], %106 {strides = array<i32>} : memref<1x8x16x8xf32, #tpu.memory_space<vmem>>, vector<1x8x16x8xf32>,
    return
  }
  func.func @transform_0(%arg0: i32) -> (i32, i32, i32, i32) {
    %c0_i32 = arith.constant 0 : i32
    %c0_i32_0 = arith.constant 0 : i32
    %c0_i32_1 = arith.constant 0 : i32
    %c0_i32_2 = arith.constant 0 : i32
    return %arg0, %c0_i32, %c0_i32_0, %c0_i32_1 : i32, i32, i32, i32
  }
  func.func @transform_1(%arg0: i32) -> (i32, i32) {
    %c0_i32 = arith.constant 0 : i32
    %c0_i32_0 = arith.constant 0 : i32
    %c0_i32_1 = arith.constant 0 : i32
    return %c0_i32, %c0_i32_0 : i32, i32
  }
  func.func @transform_2(%arg0: i32) -> (i32, i32) {
    %c0_i32 = arith.constant 0 : i32
    %c0_i32_0 = arith.constant 0 : i32
    %c0_i32_1 = arith.constant 0 : i32
    return %c0_i32, %c0_i32_0 : i32, i32
  }
  func.func @transform_3(%arg0: i32) -> (i32, i32) {
    %c0_i32 = arith.constant 0 : i32
    %c0_i32_0 = arith.constant 0 : i32
    %c0_i32_1 = arith.constant 0 : i32
    return %c0_i32, %c0_i32_0 : i32, i32
  }
  func.func @transform_4(%arg0: i32) -> (i32, i32) {
    %c0_i32 = arith.constant 0 : i32
    %c0_i32_0 = arith.constant 0 : i32
    %c0_i32_1 = arith.constant 0 : i32
    return %c0_i32, %c0_i32_0 : i32, i32
  }
  func.func @transform_5(%arg0: i32) -> (i32, i32, i32, i32) {
    %c0_i32 = arith.constant 0 : i32
    %c0_i32_0 = arith.constant 0 : i32
    %c0_i32_1 = arith.constant 0 : i32
    %c0_i32_2 = arith.constant 0 : i32
    return %arg0, %c0_i32, %c0_i32_0, %c0_i32_1 : i32, i32, i32, i32
  }
}

</mosaic_0001>

<bundles_post_ra>
// kernel: double_conv_nhwc.1
= control target key start
LH: loop header
LB: loop body
LE: loop exit
PB: predicated region body
PF: predicated region fallthrough
CT: control target
= control target key end

     0   :  { %s6234_s18 = smov 0   ;;  %s8740_s0 = inlined_call_operand.vmem [shape: bf16[4,12,26,4], index: 0, kind: input, shape index: {}]   ;;  %s8741_s1 = inlined_call_operand.vmem [shape: bf16[36,8], index: 1, kind: input, shape index: {}]   ;;  %s8742_s2 = inlined_call_operand.vmem [shape: f32[1,8], index: 2, kind: input, shape index: {}]   ;;  %s8743_s3 = inlined_call_operand.vmem [shape: bf16[72,8], index: 3, kind: input, shape index: {}]   ;;  %s8744_s4 = inlined_call_operand.vmem [shape: f32[1,8], index: 4, kind: input, shape index: {}]   ;;  %s8745_s5 = inlined_call_operand.vmem [shape: f32[4,8,16,8], index: 5, kind: output, shape index: {}]  }
   0x1 LB: > { %s6240_s19 = sadd.s32 4294967295, %s6188_s18   ;;  %p5367_p0 = scmp.ge.s32.totalorder %s6188_s18, 1  ;;  %s6188_s18 = sphi %s6234_s18, %s15_s18  }
   0x2   : > { %p187_p1 = scmp.lt.s32.totalorder %s6188_s18, 5 }
   0x4   : > { %p188_p2 = pnand %p5367_p0, %p187_p1 }
   0x5   : > { %p215_p3 = scmp.lt.s32.totalorder (!%p188_p2), %s6240_s19, 3  ;;  %vm931_vm0 = vcmask (!%p188_p2), 1042432   ;;  %vm932_vm1 = vcmask (!%p188_p2), 1046532   ;;  %s6190_s25 = smov (!%p188_p2), 12   ;;  %vm402_vm3 = vsmask.f32 (!%p188_p2), 3328 }
   0x6   : > { %191 = sbr.rel (%p188_p2) target bundleno = 1073 (0x431), region = 40  ;;  %vm6249_vm2 = vmor (!%p188_p2), %vm931_vm0, %vm932_vm1  ;;  %vm403_vm4 = vsmask.f32 (!%p188_p2), 7440  ;;  %s6191_s26 = smov (!%p188_p2), 24   ;;  %vm346_vm6 = vcmask (!%p188_p2), 31744   ;;  %vm835_vm7 = vcmask (!%p188_p2), 64544  }
   0x7   : > { %s6192_s27 = smov (!%p188_p2), 8   ;;  %s6193_s28 = smov (!%p188_p2), 32   ;;  %vm6320_vm5 = vmor (!%p188_p2), %vm402_vm3, %vm403_vm4  ;;  %vm1124_vm8 = vcmask (!%p188_p2), 97344   ;;  %vm1291_vm9 = vcmask (!%p188_p2), 130144   ;;  %vm1777_vm10 = vcmask (!%p188_p2), 162944   ;;  %vm2063_vm11 = vcmask (!%p188_p2), 195744  }
   0x8   : > { %s6194_s29 = smov (!%p188_p2), 20   ;;  %s6195_s30 = smov (!%p188_p2), 4   ;;  %vm2230_vm12 = vcmask (!%p188_p2), 228544   ;;  %vm2716_vm13 = vcmask (!%p188_p2), 261344   ;;  %vm8749_vm14 = vcmask (!%p188_p2), 294144   ;;  %vm3106_vm15 = vcmask (!%p188_p2), 1041408  }
   0x9   : > { %s6196_s6 = smov (!%p188_p2), 16   ;;  %s6197_s7 = smov (!%p188_p2), 28   ;;  %vm3060_vm0 = vcmask (!%p188_p2), 293888   ;;  %vm6199_vm1 = vmmov (!%p188_p2), 0  }
   0xa   : > { %s3294_s14 = ssub.s32 (!%p188_p2), 0, %s6240_s19  ;;  %p3293_p4 = scmp.lt.s32.totalorder (!%p188_p2), %s6240_s19, 0 }
   0xb   : > { %s5775_s15 = smin.u32 (!%p188_p2), %s6240_s19, %s3294_s14 }
   0xc   : > { %s3296_s16 = sand.u32 (!%p188_p2), 1, %s5775_s15  }
   0xd   : > { %s6246_s20 = scalar_select %p215_p3, %s6240_s19, 3 }
   0xe   : > { %s3297_s17 = ssub.s32 0, %s3296_s16 }
   0xf   : > { %s6081_s21 = smul.u32 192, %s6246_s20  ;;  %s8772_s17 = smov (!%p3293_p4, %s3297_s17), %s3296_s16 }
  0x10   : > { %p5777_p5 = scmp.lt.s32.totalorder %s8772_s17, 0 }
  0x11   : > { %s6256_s24 = scalar_lea.vmem %s8740_s0, %s6081_s21  ;;  %s3303_s21 = sadd.s32 2, %s8772_s17 }
  0x12   : > { %v6104_v1 = vld [vmem:[%s6256_s24 + $0x10] sm:$0xff]   ;;  %v6105_v2 = vld [vmem:[%s6256_s24 + $0x20] sm:$0xff]   ;;  %v853_v5 = vld [vmem:[%s6256_s24 + $0x8] sm:$0xf]  ;;  %s8774_s21 = smov (!%p5777_p5, %s3303_s21), %s8772_s17 }
  0x13   : > { %1246 = vrot.lane.b32.xlu1 %v6104_v1, %s6190_s25  ;;  %v851_v3 = vld [vmem:[%s6256_s24] sm:$0xe]  ;;  %v852_v4 = vld [vmem:[%s6256_s24 + $0x4] sm:$0xf]  ;;  %v939_v8 = vrot.slane %v853_v5, 5  ;;  %p3309_p6 = scmp.gt.s32.totalorder %s8774_s21, 0 }
  0x14   : > { %v5401_v6 = vrot.slane %v851_v3, 9  ;;  %v936_v7 = vrot.slane %v852_v4, 5  ;;  %v5691_v9 = vld [vmem:[%s6256_s24 + $0x20] sm:$0xe]  ;;  %v5692_v10 = vld [vmem:[%s6256_s24 + $0x24] sm:$0xf] }
  0x15   : > { %v6267_v11 = vld [vmem:[%s6256_s24 + $0x28] sm:$0xf]  ;;  %v5731_v12 = vrot.slane %v5691_v9, 9  ;;  %v941_v15 = vrot.slane %v939_v8, 4  ;;  %v2814_v16 = vrot.slane %v5692_v10, 5  ;;  %p3313_p7 = scmp.lt.s32.totalorder %s8774_s21, 1 }
  0x16   : > { %v937_v13 = vsel %vm6249_vm2, %v5401_v6, %v936_v7  ;;  %v938_v14 = vrot.slane %v936_v7, 4  ;;  %v5526_v17 = vld [vmem:[%s6256_s24 + $0x10] sm:$0xe]  ;;  %v2817_v18 = vrot.slane %v6267_v11, 5  ;;  %v5527_v19 = vld [vmem:[%s6256_s24 + $0x14] sm:$0xf] }
  0x17   : > { %2185 = vrot.lane.b32.xlu1 %v6105_v2, %s6191_s26  ;;  %v6276_v20 = vld [vmem:[%s6256_s24 + $0x18] sm:$0xf]  ;;  %v5566_v21 = vrot.slane %v5526_v17, 9  ;;  %v2815_v23 = vsel %vm6249_vm2, %v5731_v12, %v2814_v16  ;;  %v2816_v24 = vrot.slane %v2814_v16, 4  ;;  %v1875_v25 = vrot.slane %v5527_v19, 5 }
  0x18   : > { %v940_v22 = vsel %vm6249_vm2, %v938_v14, %v939_v8  ;;  %v854_v26 = vld [vmem:[%s6256_s24 + $0xc] sm:$0x1]  ;;  %v855_v27 = vld [vmem:[%s6256_s24 + $0x10] sm:$0xe]  ;;  %v1878_v29 = vrot.slane %v6276_v20, 5 }
  0x19   : > { %v5411_v28 = vcombine.low %v937_v13, %v940_v22  ;;  %v6286_v30 = vld [vmem:[%s6256_s24 + $0x14] sm:$0xf]  ;;  %v942_v31 = vrot.slane %v854_v26, 5  ;;  %v5402_v32 = vrot.slane %v855_v27, 9  ;;  %v2818_v33 = vsel %vm6249_vm2, %v2816_v24, %v2817_v18  ;;  %v362_v37 = vld [vmem:[%s6256_s24] sm:$0xf] }
  0x1a   : > { %v1876_v34 = vsel %vm6249_vm2, %v5566_v21, %v1875_v25  ;;  %v1877_v35 = vrot.slane %v1875_v25, 4  ;;  %v946_v36 = vrot.slane %v6286_v30, 5  ;;  %v363_v38 = vld [vmem:[%s6256_s24 + $0x4] sm:$0xf]  ;;  %v5741_v39 = vcombine.low %v2815_v23, %v2818_v33  ;;  %v6301_v41 = vld [vmem:[%s6256_s24 + $0x8] sm:$0xf] }
  0x1b   : > { %1079 = vrot.lane.b32.xlu0 %v5411_v28, %s6192_s27  ;;  %v943_v40 = vsel %vm6249_vm2, %v941_v15, %v942_v31  ;;  %v406_v42 = vshrl.u32 %v362_v37, 16  ;;  %v409_v43 = vshll.u32 %v362_v37, 16  ;;  %v415_v46 = vshll.u32 %v363_v38, 16  ;;  %v5471_v48 = vld [vmem:[%s6256_s24 + $0x10] sm:$0xf] }
  0x1c   : > { %v1879_v44 = vsel %vm6249_vm2, %v1877_v35, %v1878_v29  ;;  %v947_v45 = vsel %vm6249_vm2, %v5402_v32, %v946_v36  ;;  %v419_v47 = vshrl.u32 %v363_v38, 16  ;;  %v5472_v49 = vld [vmem:[%s6256_s24 + $0x14] sm:$0xf]  ;;  %2957 = vrot.lane.b32.xlu1 %v5741_v39, %s6193_s28  ;;  %v5473_v54 = vld [vmem:[%s6256_s24 + $0x18] sm:$0xf]  ;;  %v425_v57 = vshll.u32 %v6301_v41, 16 }
  0x1d   : > { %v5576_v50 = vcombine.low %v1876_v34, %v1879_v44  ;;  %v5412_v51 = vcombine.low %v943_v40, %v947_v45  ;;  %v408_v52 = vrot.slane %v406_v42, 4  ;;  %v411_v53 = vrot.slane %v409_v43, 5  ;;  %v5636_v5 = vld [vmem:[%s6256_s24 + $0x20] sm:$0xf]  ;;  %v5637_v10 = vld [vmem:[%s6256_s24 + $0x24] sm:$0xf] }
  0x1e   : > { %v417_v55 = vrot.slane %v415_v46, 5  ;;  %v421_v56 = vrot.slane %v419_v47, 4  ;;  %v429_v58 = vshrl.u32 %v6301_v41, 16  ;;  %v1348_v60 = vshrl.u32 %v5471_v48, 16  ;;  %v6332_v19 = vld [vmem:[%s6256_s24 + $0x28] sm:$0xf] }
  0x1f   : > { %2018 = vrot.lane.b32.xlu0 %v5576_v50, %s6194_s29  ;;  %v412_v59 = vor.u32 %v411_v53, %v408_v52  ;;  %v1351_v61 = vshll.u32 %v5471_v48, 16  ;;  %v1357_v62 = vshll.u32 %v5472_v49, 16  ;;  %v6324_v2 = vrot.slane %v425_v57, 5  ;;  %v5474_v23 = vld [vmem:[%s6256_s24 + $0x1c] sm:$0x1] }
  0x20   : > { %v422_v1 = vor.u32 %v421_v56, %v417_v55  ;;  %v1361_v3 = vshrl.u32 %v5472_v49, 16  ;;  %v1367_v4 = vshll.u32 %v5473_v54, 16  ;;  %1081 = vrot.lane.b32.xlu1 %v5412_v51, %s6192_s27  ;;  %v1350_v7 = vrot.slane %v1348_v60, 4  ;;  %v5475_v34 = vld [vmem:[%s6256_s24 + $0x20] sm:$0xf] }
  0x21   : > { %v413_v6 = vrot.slane %v412_v59, 4  ;;  %v1353_v8 = vrot.slane %v1351_v61, 5  ;;  %v1359_v9 = vrot.slane %v1357_v62, 5  ;;  %v1371_v15 = vshrl.u32 %v5473_v54, 16  ;;  %v6345_v44 = vld [vmem:[%s6256_s24 + $0x24] sm:$0xf] }
  0x22   : > { %v423_v12 = vrot.slane %v422_v1, 4  ;;  %v1363_v13 = vrot.slane %v1361_v3, 4  ;;  %v1369_v14 = vrot.slane %v1367_v4, 5  ;;  %v2287_v21 = vshrl.u32 %v5636_v5, 16  ;;  %v365_v54 = vld [vmem:[%s6256_s24 + $0xc] sm:$0x1] }
  0x23   : > { %v418_v16 = vsel %vm6320_vm5, %v413_v6, %v417_v55  ;;  %v1354_v17 = vor.u32 %v1353_v8, %v1350_v7  ;;  %v2290_v22 = vshll.u32 %v5636_v5, 16  ;;  %v2296_v26 = vshll.u32 %v5637_v10, 16  ;;  %v366_v60 = vld [vmem:[%s6256_s24 + $0x10] sm:$0xf]  ;;  %v6359_v4 = vld [vmem:[%s6256_s24 + $0x14] sm:$0xf] }
  0x24   : > { %v428_v24 = vsel %vm6320_vm5, %v423_v12, %v6324_v2  ;;  %v1364_v25 = vor.u32 %v1363_v13, %v1359_v9  ;;  %v2300_v27 = vshrl.u32 %v5637_v10, 16  ;;  %v2289_v32 = vrot.slane %v2287_v21, 4  ;;  %v5639_v11 = vld [vmem:[%s6256_s24 + $0x2c] sm:$0x1]  ;;  %s3310_s19 = scalar_select %p3309_p6, 1, 0 }
  0x25   : > { %v5386_v28 = vcombine.low %v418_v16, %v428_v24  ;;  %v1355_v31 = vrot.slane %v1354_v17, 4  ;;  %v2292_v33 = vrot.slane %v2290_v22, 5  ;;  %v2298_v37 = vrot.slane %v2296_v26, 5  ;;  %v6373_v16 = vld [vmem:[%s6256_s24 + $0x34] sm:$0xf] }
  0x26   : > { %v1365_v35 = vrot.slane %v1364_v25, 4  ;;  %v2302_v38 = vrot.slane %v2300_v27, 4  ;;  %v2306_v39 = vshll.u32 %v6332_v19, 16  ;;  %v2310_v43 = vshrl.u32 %v6332_v19, 16  ;;  %s8159_s9 = scalar_select %p3313_p7, 1, 0 }
  0x27   : > { %790 = vrot.lane.b32.xlu0 %v5386_v28, %s6195_s30  ;;  %v1360_v40 = vsel %vm6320_vm5, %v1355_v31, %v1359_v9  ;;  %v2293_v42 = vor.u32 %v2292_v33, %v2289_v32  ;;  %v1373_v45 = vrot.slane %v1371_v15, 4  ;;  %v1377_v49 = vshll.u32 %v5474_v23, 16  ;;  %v5694_v9 = vld [vmem:[%s6256_s24 + $0x2c] sm:$0x1]  ;;  %v5695_v15 = vld [vmem:[%s6256_s24 + $0x30] sm:$0xe] }
  0x28   : > { %v1370_v46 = vsel %vm6320_vm5, %v1365_v35, %v1369_v14  ;;  %v2303_v47 = vor.u32 %v2302_v38, %v2298_v37  ;;  %v6349_v48 = vrot.slane %v2306_v39, 5  ;;  %v1382_v53 = vshrl.u32 %v5475_v34, 16  ;;  %v5530_v23 = vld [vmem:[%s6256_s24 + $0x20] sm:$0xe]  ;;  %v6384_v28 = vld [vmem:[%s6256_s24 + $0x24] sm:$0xf] }
  0x29   : > { %v5511_v50 = vcombine.low %v1360_v40, %v1370_v46  ;;  %v2294_v51 = vrot.slane %v2293_v42, 4  ;;  %v1374_v52 = vor.u32 %v1373_v45, %v1369_v14  ;;  %v1379_v56 = vrot.slane %v1377_v49, 5  ;;  %v858_v35 = vld [vmem:[%s6256_s24 + $0x1c] sm:$0x1] }
  0x2a   : > { %v2304_v55 = vrot.slane %v2303_v47, 4  ;;  %v1385_v57 = vshll.u32 %v5475_v34, 16  ;;  %v1391_v59 = vshll.u32 %v6345_v44, 16  ;;  %v1384_v1 = vrot.slane %v1382_v53, 4  ;;  %v857_v34 = vld [vmem:[%s6256_s24 + $0x18] sm:$0xf] }
  0x2b   : > { %1732 = vrot.lane.b32.xlu1 %v5511_v50, %s6196_s6  ;;  %v2299_v61 = vsel %vm6320_vm5, %v2294_v51, %v2298_v37  ;;  %v1375_v62 = vrot.slane %v1374_v52, 4  ;;  %v1395_v3 = vshrl.u32 %v6345_v44, 16  ;;  %v431_v8 = vrot.slane %v429_v58, 4  ;;  %v5529_v58 = vld [vmem:[%s6256_s24 + $0x1c] sm:$0x1] }
  0x2c   : > { %v2309_v5 = vsel %vm6320_vm5, %v2304_v55, %v6349_v48  ;;  %v1387_v6 = vrot.slane %v1385_v57, 5  ;;  %v6364_v7 = vrot.slane %v1391_v59, 5  ;;  %v435_v13 = vshll.u32 %v365_v54, 16  ;;  %v5640_v47 = vld [vmem:[%s6256_s24 + $0x30] sm:$0xf] }
  0x2d   : > { %v5676_v10 = vcombine.low %v2299_v61, %v2309_v5  ;;  %v1380_v12 = vsel %vm6320_vm5, %v1375_v62, %v1379_v56  ;;  %v440_v14 = vshrl.u32 %v366_v60, 16  ;;  %v432_v21 = vor.u32 %v431_v8, %v6324_v2  ;;  %v6106_v55 = vld [vmem:[%s6256_s24 + $0x28] ss:$8 sps:$4 sm:$0xff]  }
  0x2e   : > { %v1388_v17 = vor.u32 %v1387_v6, %v1384_v1  ;;  %v443_v22 = vshll.u32 %v366_v60, 16  ;;  %v449_v41 = vshll.u32 %v6359_v4, 16  ;;  %v437_v24 = vrot.slane %v435_v13, 5  ;;  %v6425_v1 = vld [vmem:[%s6256_s24 + $0x34] sm:$0xf] }
  0x2f   : > { %2671 = vrot.lane.b32.xlu0 %v5676_v10, %s6197_s7  ;;  %v442_v25 = vrot.slane %v440_v14, 4  ;;  %v453_v26 = vshrl.u32 %v6359_v4, 16  ;;  %v2819_v27 = vrot.slane %v2817_v18, 4  ;;  %v433_v31 = vrot.slane %v432_v21, 4  ;;  %v5477_v8 = vld [vmem:[%s6256_s24 + $0x28] sm:$0xf] }
  0x30   : > { %v1389_v2 = vrot.slane %v1388_v17, 4  ;;  %v445_v32 = vrot.slane %v443_v22, 5  ;;  %v6386_v33 = vrot.slane %v449_v41, 5  ;;  %v2820_v37 = vrot.slane %v5694_v9, 5  ;;  %v5478_v14 = vld [vmem:[%s6256_s24 + $0x2c] sm:$0x1] }
  0x31   : > { %v5732_v38 = vrot.slane %v5695_v15, 9  ;;  %v2824_v39 = vrot.slane %v6373_v16, 5  ;;  %v1880_v40 = vrot.slane %v1878_v29, 4  ;;  %v438_v42 = vsel %vm6320_vm5, %v433_v31, %v437_v24  ;;  %v6107_v15 = vld [vmem:[%s6256_s24 + $0x18] ss:$8 sps:$4 sm:$0xff]  }
  0x32   : > { %v1394_v18 = vsel %vm6320_vm5, %v1389_v2, %v6364_v7  ;;  %v446_v45 = vor.u32 %v445_v32, %v442_v25  ;;  %v1881_v46 = vrot.slane %v5529_v58, 5  ;;  %v2821_v50 = vsel %vm6249_vm2, %v2819_v27, %v2820_v37  ;;  %v368_v25 = vld [vmem:[%s6256_s24 + $0x18] sm:$0xf]  ;;  %v5532_v4 = vld [vmem:[%s6256_s24 + $0x28] sm:$0xf] }
  0x33   : > { %v5512_v49 = vcombine.low %v1380_v12, %v1394_v18  ;;  %v2825_v20 = vsel %vm6249_vm2, %v5732_v38, %v2824_v39  ;;  %v5567_v29 = vrot.slane %v5530_v23, 9  ;;  %v1885_v54 = vrot.slane %v6384_v28, 5  ;;  %v5697_v38 = vld [vmem:[%s6256_s24 + $0x38] sm:$0xf] }
  0x34   : > { %v447_v51 = vrot.slane %v446_v45, 4  ;;  %v5742_v52 = vcombine.low %v2821_v50, %v2825_v20  ;;  %v6408_v53 = vsel %vm6249_vm2, %v1880_v40, %v1881_v46  ;;  %v948_v56 = vrot.slane %v946_v36, 4 }
  0x35   : > { %1734 = vrot.lane.b32.xlu1 %v5512_v49, %s6196_s6  ;;  %v949_v57 = vrot.slane %v857_v34, 5  ;;  %v952_v59 = vrot.slane %v858_v35, 5  ;;  %v2312_v60 = vrot.slane %v2310_v43, 4  ;;  %v1886_v62 = vsel %vm6249_vm2, %v5567_v29, %v1885_v54  ;;  %v369_v34 = vld [vmem:[%s6256_s24 + $0x1c] sm:$0x1] }
  0x36   : > { %v452_v61 = vsel %vm6320_vm5, %v447_v51, %v6386_v33  ;;  %v2316_v30 = vshll.u32 %v5639_v11, 16  ;;  %v2321_v36 = vshrl.u32 %v5640_v47, 16  ;;  %v5577_v6 = vcombine.low %v6408_v53, %v1886_v62  ;;  %v5533_v51 = vld [vmem:[%s6256_s24 + $0x2c] sm:$0x1] }
  0x37   : > { %v5387_v5 = vcombine.low %v438_v42, %v452_v61  ;;  %v950_v19 = vsel %vm6249_vm2, %v948_v56, %v949_v57  ;;  %v951_v43 = vrot.slane %v949_v57, 4  ;;  %v2313_v9 = vor.u32 %v2312_v60, %v6349_v48  ;;  %v5698_v42 = vld [vmem:[%s6256_s24 + $0x3c] sm:$0x1]  ;;  %v859_v56 = vld [vmem:[%s6256_s24 + $0x20] sm:$0xe] }
  0x38   : > { %v2318_v10 = vrot.slane %v2316_v30, 5  ;;  %v2323_v12 = vrot.slane %v2321_v36, 4  ;;  %v2324_v13 = vshll.u32 %v5640_v47, 16  ;;  %v2330_v21 = vshll.u32 %v6425_v1, 16  ;;  %v860_v57 = vld [vmem:[%s6256_s24 + $0x24] sm:$0xf] }
  0x39   : > { %792 = vrot.lane.b32.xlu0 %v5387_v5, %s6195_s30  ;;  %2187 = vrot.lane.b32.xlu1 %v6106_v55, %s6191_s26  ;;  %v953_v17 = vsel %vm6249_vm2, %v951_v43, %v952_v59  ;;  %v2334_v22 = vshrl.u32 %v6425_v1, 16  ;;  %v1397_v48 = vrot.slane %v1395_v3, 4  ;;  %v2314_v58 = vrot.slane %v2313_v9, 4  ;;  %v6474_v5 = vld [vmem:[%s6256_s24 + $0x28] sm:$0xf] }
  0x3a   : > { %v5413_v41 = vcombine.low %v950_v19, %v953_v17  ;;  %v2326_v23 = vrot.slane %v2324_v13, 5  ;;  %v1401_v24 = vshll.u32 %v5477_v8, 16  ;;  %v6443_v27 = vrot.slane %v2330_v21, 5  ;;  %v5643_v21 = vld [vmem:[%s6256_s24 + $0x3c] sm:$0x1] }
  0x3b   : > { %v1398_v2 = vor.u32 %v1397_v48, %v6364_v7  ;;  %v1405_v31 = vshrl.u32 %v5477_v8, 16  ;;  %v1411_v32 = vshll.u32 %v5478_v14, 16  ;;  %v2319_v35 = vsel %vm6320_vm5, %v2314_v58, %v2318_v10 }
  0x3c   : > { %v2327_v44 = vor.u32 %v2326_v23, %v2323_v12  ;;  %v1403_v37 = vrot.slane %v1401_v24, 5  ;;  %v455_v3 = vrot.slane %v453_v26, 4  ;;  %v459_v18 = vshll.u32 %v368_v25, 16  ;;  %v5642_v12 = vld [vmem:[%s6256_s24 + $0x38] sm:$0xf] }
  0x3d   : > { %1248 = vrot.lane.b32.xlu0 %v6107_v15, %s6190_s25  ;;  %2959 = vrot.lane.b32.xlu1 %v5742_v52, %s6193_s28  ;;  %v1399_v40 = vrot.slane %v1398_v2, 4  ;;  %v1407_v7 = vrot.slane %v1405_v31, 4  ;;  %v1413_v11 = vrot.slane %v1411_v32, 5  ;;  %v463_v47 = vshrl.u32 %v368_v25, 16  ;;  %v5479_v25 = vld [vmem:[%s6256_s24 + $0x30] sm:$0xf] }
  0x3e   : > { %v2328_v45 = vrot.slane %v2327_v44, 4  ;;  %v456_v46 = vor.u32 %v455_v3, %v6386_v33  ;;  %v469_v49 = vshll.u32 %v369_v34, 16  ;;  %v461_v20 = vrot.slane %v459_v18, 5  ;;  %v5480_v2 = vld [vmem:[%s6256_s24 + $0x34] sm:$0xf] }
  0x3f   : > { %v1404_v26 = vsel %vm6320_vm5, %v1399_v40, %v1403_v37  ;;  %v1408_v50 = vor.u32 %v1407_v7, %v1403_v37  ;;  %v2826_v29 = vrot.slane %v2824_v39, 4  ;;  %v465_v55 = vrot.slane %v463_v47, 4  ;;  %v6109_v40 = vld [vmem:[%s6256_s24 + $0x24] sm:$0xff]   ;;  %v370_v47 = vld [vmem:[%s6256_s24 + $0x20] sm:$0xf] }
  0x40   : > { %v2333_v52 = vsel %vm6320_vm5, %v2328_v45, %v6443_v27  ;;  %v457_v53 = vrot.slane %v456_v46, 4  ;;  %v471_v33 = vrot.slane %v469_v49, 5  ;;  %v2827_v16 = vrot.slane %v5697_v38, 5 }
  0x41   : > { %2020 = vrot.lane.b32.xlu0 %v5577_v6, %s6194_s29  ;;  %1083 = vrot.lane.b32.xlu1 %v5413_v41, %s6192_s27  ;;  %v5677_v59 = vcombine.low %v2319_v35, %v2333_v52  ;;  %v1409_v60 = vrot.slane %v1408_v50, 4  ;;  %v2830_v39 = vrot.slane %v5698_v42, 5  ;;  %v466_v62 = vor.u32 %v465_v55, %v461_v20  ;;  %v6108_v41 = vld [vmem:[%s6256_s24 + $0x34] sm:$0xff]   ;;  %v6520_v55 = vld [vmem:[%s6256_s24 + $0x28] sm:$0xf] }
  0x42   : > { %v462_v61 = vsel %vm6320_vm5, %v457_v53, %v461_v20  ;;  %v1887_v30 = vrot.slane %v1885_v54, 4  ;;  %v1888_v36 = vrot.slane %v5532_v4, 5  ;;  %v2828_v19 = vsel %vm6249_vm2, %v2826_v29, %v2827_v16  ;;  %v371_v20 = vld [vmem:[%s6256_s24 + $0x24] sm:$0xf] }
  0x43   : > { %v1414_v6 = vsel %vm6320_vm5, %v1409_v60, %v1413_v11  ;;  %v2829_v43 = vrot.slane %v2827_v16, 4  ;;  %v1891_v8 = vrot.slane %v5533_v51, 5  ;;  %v467_v10 = vrot.slane %v466_v62, 4  ;;  %v5699_v60 = vld [vmem:[%s6256_s24 + $0x40] sm:$0xe] }
  0x44   : > { %v5513_v9 = vcombine.low %v1404_v26, %v1414_v6  ;;  %v6482_v28 = vsel %vm6249_vm2, %v1887_v30, %v1888_v36  ;;  %v1890_v54 = vrot.slane %v1888_v36, 4  ;;  %v5403_v14 = vrot.slane %v859_v56, 9  ;;  %v5700_v30 = vld [vmem:[%s6256_s24 + $0x44] sm:$0xf]  ;;  %v6530_v36 = vld [vmem:[%s6256_s24 + $0x48] sm:$0xf] }
  0x45   : > { %2673 = vrot.lane.b32.xlu0 %v5677_v59, %s6197_s7  ;;  %v2831_v13 = vsel %vm6249_vm2, %v2829_v43, %v2830_v39  ;;  %v956_v15 = vrot.slane %v860_v57, 5  ;;  %v959_v17 = vrot.slane %v6474_v5, 5  ;;  %v472_v48 = vsel %vm6320_vm5, %v467_v10, %v471_v33  ;;  %v5535_v10 = vld [vmem:[%s6256_s24 + $0x34] sm:$0xf] }
  0x46   : > { %1736 = vrot.lane.b32.xlu1 %v5513_v9, %s6196_s6  ;;  %v5743_v58 = vcombine.low %v2828_v19, %v2831_v13  ;;  %v1892_v23 = vsel %vm6249_vm2, %v1890_v54, %v1891_v8  ;;  %v2336_v24 = vrot.slane %v2334_v22, 4  ;;  %v5388_v31 = vcombine.low %v462_v61, %v472_v48  ;;  %v6511_v22 = vld [vmem:[%s6256_s24 + $0x38] sm:$0xf]  ;;  %v5534_v9 = vld [vmem:[%s6256_s24 + $0x30] sm:$0xe] }
  0x47   : > { %v5578_v32 = vcombine.low %v6482_v28, %v1892_v23  ;;  %v957_v34 = vsel %vm6249_vm2, %v5403_v14, %v956_v15  ;;  %v958_v35 = vrot.slane %v956_v15, 4  ;;  %v2340_v37 = vshll.u32 %v5642_v12, 16  ;;  %v6538_v14 = vld [vmem:[%s6256_s24 + $0x38] sm:$0xf] }
  0x48   : > { %v2337_v44 = vor.u32 %v2336_v24, %v6443_v27  ;;  %v2344_v3 = vshrl.u32 %v5642_v12, 16  ;;  %v2350_v38 = vshll.u32 %v5643_v21, 16  ;;  %v1416_v7 = vshrl.u32 %v5479_v25, 16 }
  0x49   : > { %794 = vrot.lane.b32.xlu0 %v5388_v31, %s6195_s30  ;;  %v960_v1 = vsel %vm6249_vm2, %v958_v35, %v959_v17  ;;  %v1419_v11 = vshll.u32 %v5479_v25, 16  ;;  %v1425_v18 = vshll.u32 %v5480_v2, 16  ;;  %v2342_v45 = vrot.slane %v2340_v37, 5 }
  0x4a   : > { %2189 = vrot.lane.b32.xlu1 %v6108_v41, %s6191_s26  ;;  %v5414_v27 = vcombine.low %v957_v34, %v960_v1  ;;  %v2338_v42 = vrot.slane %v2337_v44, 4  ;;  %v2346_v46 = vrot.slane %v2344_v3, 4  ;;  %v2352_v49 = vrot.slane %v2350_v38, 5  ;;  %v863_v44 = vld [vmem:[%s6256_s24 + $0x30] sm:$0xe] }
  0x4b   : > { %v1418_v4 = vrot.slane %v1416_v7, 4  ;;  %v1421_v26 = vrot.slane %v1419_v11, 5  ;;  %v1427_v50 = vrot.slane %v1425_v18, 5  ;;  %v1429_v52 = vshrl.u32 %v5480_v2, 16  ;;  %v862_v2 = vld [vmem:[%s6256_s24 + $0x2c] sm:$0x1] }
  0x4c   : > { %v2343_v29 = vsel %vm6320_vm5, %v2338_v42, %v2342_v45  ;;  %v2347_v51 = vor.u32 %v2346_v46, %v2342_v45  ;;  %v1435_v53 = vshll.u32 %v6511_v22, 16  ;;  %v1439_v56 = vshrl.u32 %v6511_v22, 16  ;;  %v6555_v1 = vld [vmem:[%s6256_s24 + $0x34] sm:$0xf]  ;;  %v5644_v42 = vld [vmem:[%s6256_s24 + $0x40] sm:$0xf] }
  0x4d   : > { %1250 = vrot.lane.b32.xlu0 %v6109_v40, %s6190_s25  ;;  %v1422_v33 = vor.u32 %v1421_v26, %v1418_v4  ;;  %v474_v57 = vshrl.u32 %v370_v47, 16  ;;  %v477_v59 = vshll.u32 %v370_v47, 16  ;;  %v1431_v39 = vrot.slane %v1429_v52, 4  ;;  %v6110_v26 = vld [vmem:[%s6256_s24 + $0x40] sm:$0xff]  }
  0x4e   : > { %2961 = vrot.lane.b32.xlu1 %v5743_v58, %s6193_s28  ;;  %v2348_v16 = vrot.slane %v2347_v51, 4  ;;  %v6526_v61 = vrot.slane %v1435_v53, 5  ;;  %v483_v62 = vshll.u32 %v371_v20, 16  ;;  %v487_v8 = vshrl.u32 %v371_v20, 16  ;;  %v5645_v51 = vld [vmem:[%s6256_s24 + $0x44] sm:$0xf] }
  0x4f   : > { %v1423_v6 = vrot.slane %v1422_v33, 4  ;;  %v476_v19 = vrot.slane %v474_v57, 4  ;;  %v479_v43 = vrot.slane %v477_v59, 5  ;;  %v1432_v54 = vor.u32 %v1431_v39, %v1427_v50  ;;  %v6585_v53 = vld [vmem:[%s6256_s24 + $0x48] sm:$0xf] }
  0x50   : > { %v2353_v28 = vsel %vm6320_vm5, %v2348_v16, %v2352_v49  ;;  %v485_v12 = vrot.slane %v483_v62, 5  ;;  %v493_v13 = vshll.u32 %v6520_v55, 16  ;;  %v489_v41 = vrot.slane %v487_v8, 4  ;;  %v5482_v39 = vld [vmem:[%s6256_s24 + $0x3c] sm:$0x1] }
  0x51   : > { %2022 = vrot.lane.b32.xlu0 %v5578_v32, %s6194_s29  ;;  %v5678_v15 = vcombine.low %v2343_v29, %v2353_v28  ;;  %v1428_v21 = vsel %vm6320_vm5, %v1423_v6, %v1427_v50  ;;  %v480_v48 = vor.u32 %v479_v43, %v476_v19  ;;  %v1433_v58 = vrot.slane %v1432_v54, 4  ;;  %v5483_v62 = vld [vmem:[%s6256_s24 + $0x40] sm:$0xf]  ;;  %v6602_v54 = vld [vmem:[%s6256_s24 + $0x44] sm:$0xf] }
  0x52   : > { %1085 = vrot.lane.b32.xlu1 %v5414_v27, %s6192_s27  ;;  %v6544_v23 = vrot.slane %v493_v13, 5  ;;  %v497_v24 = vshrl.u32 %v6520_v55, 16  ;;  %v5733_v25 = vrot.slane %v5699_v60, 9  ;;  %v490_v34 = vor.u32 %v489_v41, %v485_v12  ;;  %v373_v41 = vld [vmem:[%s6256_s24 + $0x2c] sm:$0x1] }
  0x53   : > { %v481_v31 = vrot.slane %v480_v48, 4  ;;  %v2834_v32 = vrot.slane %v5700_v30, 5  ;;  %v2837_v35 = vrot.slane %v6530_v36, 5  ;;  %v1438_v37 = vsel %vm6320_vm5, %v1433_v58, %v6526_v61  ;;  %v6111_v30 = vld [vmem:[%s6256_s24 + $0x30] sm:$0xff]  }
  0x54   : > { %v5568_v3 = vrot.slane %v5534_v9, 9  ;;  %v1895_v38 = vrot.slane %v5535_v10, 5  ;;  %v1898_v40 = vrot.slane %v6538_v14, 5  ;;  %v5514_v7 = vcombine.low %v1428_v21, %v1438_v37 }
  0x55   : > { %2675 = vrot.lane.b32.xlu0 %v5678_v15, %s6197_s7  ;;  %v486_v11 = vsel %vm6320_vm5, %v481_v31, %v485_v12  ;;  %v491_v18 = vrot.slane %v490_v34, 4  ;;  %v2835_v27 = vsel %vm6249_vm2, %v5733_v25, %v2834_v32  ;;  %v2836_v45 = vrot.slane %v2834_v32, 4  ;;  %v374_v34 = vld [vmem:[%s6256_s24 + $0x30] sm:$0xf] }
  0x56   : > { %v6565_v46 = vsel %vm6249_vm2, %v5568_v3, %v1895_v38  ;;  %v1897_v47 = vrot.slane %v1895_v38, 4  ;;  %v961_v49 = vrot.slane %v959_v17, 4  ;;  %1738 = vrot.lane.b32.xlu1 %v5514_v7, %s6196_s6  ;;  %v962_v50 = vrot.slane %v862_v2, 5 }
  0x57   : > { %v496_v4 = vsel %vm6320_vm5, %v491_v18, %v6544_v23  ;;  %v5404_v20 = vrot.slane %v863_v44, 9  ;;  %v966_v29 = vrot.slane %v6555_v1, 5  ;;  %v2838_v5 = vsel %vm6249_vm2, %v2836_v45, %v2837_v35 }
  0x58   : > { %v5389_v52 = vcombine.low %v486_v11, %v496_v4  ;;  %v1899_v17 = vsel %vm6249_vm2, %v1897_v47, %v1898_v40  ;;  %v2355_v33 = vshrl.u32 %v5644_v42, 16  ;;  %v5744_v57 = vcombine.low %v2835_v27, %v2838_v5  ;;  %v5702_v4 = vld [vmem:[%s6256_s24 + $0x4c] sm:$0x1] }
  0x59   : > { %v5579_v59 = vcombine.low %v6565_v46, %v1899_v17  ;;  %v963_v60 = vsel %vm6249_vm2, %v961_v49, %v962_v50  ;;  %v967_v16 = vsel %vm6249_vm2, %v5404_v20, %v966_v29  ;;  %v2358_v43 = vshll.u32 %v5644_v42, 16 }
  0x5a   : > { %796 = vrot.lane.b32.xlu0 %v5389_v52, %s6195_s30  ;;  %v5415_v6 = vcombine.low %v963_v60, %v967_v16  ;;  %v2357_v19 = vrot.slane %v2355_v33, 4  ;;  %v2364_v8 = vshll.u32 %v5645_v51, 16  ;;  %2191 = vrot.lane.b32.xlu1 %v6110_v26, %s6191_s26  ;;  %v2368_v9 = vshrl.u32 %v5645_v51, 16  ;;  %v6631_v51 = vld [vmem:[%s6256_s24 + $0x54] sm:$0xf] }
  0x5b   : > { %v2374_v10 = vshll.u32 %v6585_v53, 16  ;;  %v2378_v28 = vshrl.u32 %v6585_v53, 16  ;;  %v1441_v12 = vrot.slane %v1439_v56, 4  ;;  %v2360_v13 = vrot.slane %v2358_v43, 5  ;;  %v6614_v56 = vld [vmem:[%s6256_s24 + $0x34] sm:$0xf] }
  0x5c   : > { %v2366_v15 = vrot.slane %v2364_v8, 5  ;;  %v1445_v21 = vshll.u32 %v5482_v39, 16  ;;  %v1450_v48 = vshrl.u32 %v5483_v62, 16  ;;  %v2370_v58 = vrot.slane %v2368_v9, 4  ;;  %v5538_v39 = vld [vmem:[%s6256_s24 + $0x40] sm:$0xe] }
  0x5d   : > { %v6607_v25 = vrot.slane %v2374_v10, 5  ;;  %v1442_v2 = vor.u32 %v1441_v12, %v6526_v61  ;;  %v1453_v31 = vshll.u32 %v5483_v62, 16  ;;  %v2361_v32 = vor.u32 %v2360_v13, %v2357_v19  ;;  %v6649_v43 = vld [vmem:[%s6256_s24 + $0x44] sm:$0xf]  ;;  %v865_v13 = vld [vmem:[%s6256_s24 + $0x38] sm:$0xf] }
  0x5e   : > { %1252 = vrot.lane.b32.xlu0 %v6111_v30, %s6190_s25  ;;  %v1447_v44 = vrot.slane %v1445_v21, 5  ;;  %v1452_v37 = vrot.slane %v1450_v48, 4  ;;  %v1459_v22 = vshll.u32 %v6602_v54, 16  ;;  %2963 = vrot.lane.b32.xlu1 %v5744_v57, %s6193_s28  ;;  %v2371_v3 = vor.u32 %v2370_v58, %v2366_v15  ;;  %v5537_v57 = vld [vmem:[%s6256_s24 + $0x3c] sm:$0x1] }
  0x5f   : > { %v1443_v38 = vrot.slane %v1442_v2, 4  ;;  %v1455_v7 = vrot.slane %v1453_v31, 5  ;;  %v1463_v61 = vshrl.u32 %v6602_v54, 16  ;;  %v2362_v11 = vrot.slane %v2361_v32, 4  ;;  %v6112_v58 = vld [vmem:[%s6256_s24 + $0x48] ss:$8 sps:$4 sm:$0xff]  }
  0x60   : > { %v6618_v18 = vrot.slane %v1459_v22, 5  ;;  %v499_v27 = vrot.slane %v497_v24, 4  ;;  %v503_v42 = vshll.u32 %v373_v41, 16  ;;  %v2372_v45 = vrot.slane %v2371_v3, 4  ;;  %v5703_v24 = vld [vmem:[%s6256_s24 + $0x50] sm:$0xe] }
  0x61   : > { %v1448_v46 = vsel %vm6320_vm5, %v1443_v38, %v1447_v44  ;;  %v1456_v47 = vor.u32 %v1455_v7, %v1452_v37  ;;  %v508_v49 = vshrl.u32 %v374_v34, 16  ;;  %v2367_v26 = vsel %vm6320_vm5, %v2362_v11, %v2366_v15  ;;  %v866_v15 = vld [vmem:[%s6256_s24 + $0x3c] sm:$0x1]  ;;  %v5647_v37 = vld [vmem:[%s6256_s24 + $0x4c] sm:$0x1] }
  0x62   : > { %2024 = vrot.lane.b32.xlu0 %v5579_v59, %s6194_s29  ;;  %v500_v50 = vor.u32 %v499_v27, %v6544_v23  ;;  %v505_v20 = vrot.slane %v503_v42, 5  ;;  %v511_v55 = vshll.u32 %v374_v34, 16  ;;  %1087 = vrot.lane.b32.xlu1 %v5415_v6, %s6192_s27  ;;  %v2377_v52 = vsel %vm6320_vm5, %v2372_v45, %v6607_v25  ;;  %v5648_v22 = vld [vmem:[%s6256_s24 + $0x50] sm:$0xf]  ;;  %v6684_v38 = vld [vmem:[%s6256_s24 + $0x54] sm:$0xf] }
  0x63   : > { %v1457_v5 = vrot.slane %v1456_v47, 4  ;;  %v510_v17 = vrot.slane %v508_v49, 4  ;;  %v517_v33 = vshll.u32 %v6614_v56, 16  ;;  %v5679_v59 = vcombine.low %v2367_v26, %v2377_v52  ;;  %v6113_v27 = vld [vmem:[%s6256_s24 + $0x38] ss:$8 sps:$4 sm:$0xff]  }
  0x64   : > { %v501_v23 = vrot.slane %v500_v50, 4  ;;  %v513_v60 = vrot.slane %v511_v55, 5  ;;  %v521_v16 = vshrl.u32 %v6614_v56, 16  ;;  %v2839_v6 = vrot.slane %v2837_v35, 4  ;;  %v5485_v47 = vld [vmem:[%s6256_s24 + $0x48] sm:$0xf] }
  0x65   : > { %v1462_v62 = vsel %vm6320_vm5, %v1457_v5, %v6618_v18  ;;  %v6644_v30 = vrot.slane %v517_v33, 5  ;;  %v2840_v19 = vrot.slane %v5702_v4, 5  ;;  %v5734_v12 = vrot.slane %v5703_v24, 9  ;;  %v5486_v53 = vld [vmem:[%s6256_s24 + $0x4c] sm:$0x1] }
  0x66   : > { %2677 = vrot.lane.b32.xlu0 %v5679_v59, %s6197_s7  ;;  %v5515_v8 = vcombine.low %v1448_v46, %v1462_v62  ;;  %v506_v9 = vsel %vm6320_vm5, %v501_v23, %v505_v20  ;;  %v514_v10 = vor.u32 %v513_v60, %v510_v17  ;;  %v2844_v35 = vrot.slane %v6631_v51, 5  ;;  %v376_v52 = vld [vmem:[%s6256_s24 + $0x38] sm:$0xf] }
  0x67   : > { %v2841_v36 = vsel %vm6249_vm2, %v2839_v6, %v2840_v19  ;;  %v1900_v21 = vrot.slane %v1898_v40, 4  ;;  %v1901_v48 = vrot.slane %v5537_v57, 5  ;;  %v5569_v2 = vrot.slane %v5538_v39, 9  ;;  %v377_v57 = vld [vmem:[%s6256_s24 + $0x3c] sm:$0x1] }
  0x68   : > { %1740 = vrot.lane.b32.xlu1 %v5515_v8, %s6196_s6  ;;  %v515_v41 = vrot.slane %v514_v10, 4  ;;  %v1905_v31 = vrot.slane %v6649_v43, 5  ;;  %v968_v34 = vrot.slane %v966_v29, 4  ;;  %v2845_v32 = vsel %vm6249_vm2, %v5734_v12, %v2844_v35  ;;  %v5705_v19 = vld [vmem:[%s6256_s24 + $0x58] sm:$0xf] }
  0x69   : > { %v6672_v14 = vsel %vm6249_vm2, %v1900_v21, %v1901_v48  ;;  %v969_v40 = vrot.slane %v865_v13, 5  ;;  %v972_v44 = vrot.slane %v866_v15, 5  ;;  %v5745_v1 = vcombine.low %v2841_v36, %v2845_v32  ;;  %v5706_v21 = vld [vmem:[%s6256_s24 + $0x5c] sm:$0x1] }
  0x6a   : > { %v520_v3 = vsel %vm6320_vm5, %v515_v41, %v6644_v30  ;;  %v1906_v29 = vsel %vm6249_vm2, %v5569_v2, %v1905_v31  ;;  %v2380_v7 = vrot.slane %v2378_v28, 4  ;;  %v2384_v4 = vshll.u32 %v5647_v37, 16 }
  0x6b   : > { %v5390_v11 = vcombine.low %v506_v9, %v520_v3  ;;  %v5580_v42 = vcombine.low %v6672_v14, %v1906_v29  ;;  %v970_v45 = vsel %vm6249_vm2, %v968_v34, %v969_v40  ;;  %v971_v46 = vrot.slane %v969_v40, 4  ;;  %v867_v3 = vld [vmem:[%s6256_s24 + $0x40] sm:$0xe] }
  0x6c   : > { %2193 = vrot.lane.b32.xlu1 %v6112_v58, %s6191_s26  ;;  %v2381_v49 = vor.u32 %v2380_v7, %v6607_v25  ;;  %v2389_v26 = vshrl.u32 %v5648_v22, 16  ;;  %v2392_v50 = vshll.u32 %v5648_v22, 16  ;;  %v2398_v20 = vshll.u32 %v6684_v38, 16  ;;  %v5540_v58 = vld [vmem:[%s6256_s24 + $0x48] sm:$0xf] }
  0x6d   : > { %798 = vrot.lane.b32.xlu0 %v5390_v11, %s6195_s30  ;;  %v973_v28 = vsel %vm6249_vm2, %v971_v46, %v972_v44  ;;  %v2402_v55 = vshrl.u32 %v6684_v38, 16  ;;  %v1465_v24 = vrot.slane %v1463_v61, 4  ;;  %v2386_v17 = vrot.slane %v2384_v4, 5  ;;  %v6739_v46 = vld [vmem:[%s6256_s24 + $0x48] sm:$0xf] }
  0x6e   : > { %v5416_v5 = vcombine.low %v970_v45, %v973_v28  ;;  %v2382_v25 = vrot.slane %v2381_v49, 4  ;;  %v2391_v33 = vrot.slane %v2389_v26, 4  ;;  %v2394_v59 = vrot.slane %v2392_v50, 5  ;;  %v5650_v50 = vld [vmem:[%s6256_s24 + $0x58] sm:$0xf] }
  0x6f   : > { %v6705_v23 = vrot.slane %v2398_v20, 5  ;;  %v1466_v60 = vor.u32 %v1465_v24, %v6618_v18  ;;  %v1469_v39 = vshll.u32 %v5485_v47, 16  ;;  %v1473_v61 = vshrl.u32 %v5485_v47, 16 }
  0x70   : > { %2965 = vrot.lane.b32.xlu1 %v5745_v1, %s6193_s28  ;;  %v2387_v54 = vsel %vm6320_vm5, %v2382_v25, %v2386_v17  ;;  %v1479_v62 = vshll.u32 %v5486_v53, 16  ;;  %v523_v6 = vrot.slane %v521_v16, 4  ;;  %v2395_v8 = vor.u32 %v2394_v59, %v2391_v33  ;;  %v5651_v25 = vld [vmem:[%s6256_s24 + $0x5c] sm:$0x1]  ;;  %v5487_v17 = vld [vmem:[%s6256_s24 + $0x50] sm:$0xf] }
  0x71   : > { %1254 = vrot.lane.b32.xlu0 %v6113_v27, %s6190_s25  ;;  %v1467_v9 = vrot.slane %v1466_v60, 4  ;;  %v1471_v10 = vrot.slane %v1469_v39, 5  ;;  %v527_v18 = vshll.u32 %v376_v52, 16  ;;  %v1475_v12 = vrot.slane %v1473_v61, 4 }
  0x72   : > { %v1481_v13 = vrot.slane %v1479_v62, 5  ;;  %v524_v15 = vor.u32 %v523_v6, %v6644_v30  ;;  %v531_v36 = vshrl.u32 %v376_v52, 16  ;;  %v2396_v48 = vrot.slane %v2395_v8, 4  ;;  %v5541_v30 = vld [vmem:[%s6256_s24 + $0x4c] sm:$0x1]  ;;  %v6115_v8 = vld [vmem:[%s6256_s24 + $0x44] sm:$0xff]  }
  0x73   : > { %v1472_v56 = vsel %vm6320_vm5, %v1467_v9, %v1471_v10  ;;  %v529_v16 = vrot.slane %v527_v18, 5  ;;  %v537_v41 = vshll.u32 %v377_v57, 16  ;;  %v1476_v2 = vor.u32 %v1475_v12, %v1471_v10  ;;  %v6114_v57 = vld [vmem:[%s6256_s24 + $0x54] sm:$0xff]  }
  0x74   : > { %1089 = vrot.lane.b32.xlu1 %v5416_v5, %s6192_s27  ;;  %v525_v34 = vrot.slane %v524_v15, 4  ;;  %v533_v32 = vrot.slane %v531_v36, 4  ;;  %v2846_v14 = vrot.slane %v2844_v35, 4  ;;  %v2401_v40 = vsel %vm6320_vm5, %v2396_v48, %v6705_v23  ;;  %v868_v35 = vld [vmem:[%s6256_s24 + $0x44] sm:$0xf] }
  0x75   : > { %2026 = vrot.lane.b32.xlu0 %v5580_v42, %s6194_s29  ;;  %v539_v44 = vrot.slane %v537_v41, 5  ;;  %v2847_v37 = vrot.slane %v5705_v19, 5  ;;  %v2850_v22 = vrot.slane %v5706_v21, 5  ;;  %v5680_v1 = vcombine.low %v2387_v54, %v2401_v40  ;;  %v5488_v54 = vld [vmem:[%s6256_s24 + $0x54] sm:$0xf] }
  0x76   : > { %v1477_v29 = vrot.slane %v1476_v2, 4  ;;  %v530_v7 = vsel %vm6320_vm5, %v525_v34, %v529_v16  ;;  %v534_v51 = vor.u32 %v533_v32, %v529_v16  ;;  %v1907_v42 = vrot.slane %v1905_v31, 4  ;;  %v6771_v12 = vld [vmem:[%s6256_s24 + $0x58] sm:$0xf]  ;;  %v378_v21 = vld [vmem:[%s6256_s24 + $0x40] sm:$0xf] }
  0x77   : > { %v6734_v11 = vsel %vm6249_vm2, %v2846_v14, %v2847_v37  ;;  %v2849_v27 = vrot.slane %v2847_v37, 4  ;;  %v1908_v45 = vrot.slane %v5540_v58, 5  ;;  %v1911_v4 = vrot.slane %v5541_v30, 5  ;;  %v379_v32 = vld [vmem:[%s6256_s24 + $0x44] sm:$0xf] }
  0x78   : > { %v1482_v47 = vsel %vm6320_vm5, %v1477_v29, %v1481_v13  ;;  %v535_v49 = vrot.slane %v534_v51, 4  ;;  %v5405_v26 = vrot.slane %v867_v3, 9  ;;  %v976_v52 = vrot.slane %v868_v35, 5 }
  0x79   : > { %2679 = vrot.lane.b32.xlu0 %v5680_v1, %s6197_s7  ;;  %v5516_v53 = vcombine.low %v1472_v56, %v1482_v47  ;;  %v2851_v43 = vsel %vm6249_vm2, %v2849_v27, %v2850_v22  ;;  %v6749_v31 = vsel %vm6249_vm2, %v1907_v42, %v1908_v45  ;;  %v1910_v28 = vrot.slane %v1908_v45, 4  ;;  %v5543_v42 = vld [vmem:[%s6256_s24 + $0x54] sm:$0xf] }
  0x7a   : > { %v540_v20 = vsel %vm6320_vm5, %v535_v49, %v539_v44  ;;  %v5746_v24 = vcombine.low %v6734_v11, %v2851_v43  ;;  %v979_v5 = vrot.slane %v6739_v46, 5  ;;  %v2404_v60 = vrot.slane %v2402_v55, 4  ;;  %v6786_v44 = vld [vmem:[%s6256_s24 + $0x48] sm:$0xf]  ;;  %v6121_v46 = vld [vmem:[%s8741_s1] sm:$0xff]  }
  0x7b   : > { %1742 = vrot.lane.b32.xlu1 %v5516_v53, %s6196_s6  ;;  %v5391_v33 = vcombine.low %v530_v7, %v540_v20  ;;  %v1912_v59 = vsel %vm6249_vm2, %v1910_v28, %v1911_v4  ;;  %v2408_v39 = vshll.u32 %v5650_v50, 16  ;;  %v977_v62 = vsel %vm6249_vm2, %v5405_v26, %v976_v52  ;;  %v5542_v7 = vld [vmem:[%s6256_s24 + $0x50] sm:$0xe]  ;;  %v6796_v26 = vld [vmem:[%s6256_s24 + $0x58] sm:$0xf] }
  0x7c   : > { %v5581_v61 = vcombine.low %v6749_v31, %v1912_v59  ;;  %v978_v6 = vrot.slane %v976_v52, 4  ;;  %v2412_v19 = vshrl.u32 %v5650_v50, 16  ;;  %v2405_v9 = vor.u32 %v2404_v60, %v6705_v23  ;;  %v388_v50 = vld [vmem:[%s6256_s24 + $0x68] sm:$0xf]  ;;  %v389_v60 = vld [vmem:[%s6256_s24 + $0x6c] sm:$0x1] }
  0x7d   : > { %800 = vrot.lane.b32.xlu0 %v5391_v33, %s6195_s30  ;;  %v2410_v10 = vrot.slane %v2408_v39, 5  ;;  %v2418_v18 = vshll.u32 %v5651_v25, 16  ;;  %v1484_v38 = vshrl.u32 %v5487_v17, 16  ;;  %v1487_v15 = vshll.u32 %v5487_v17, 16 }
  0x7e   : > { %v980_v55 = vsel %vm6249_vm2, %v978_v6, %v979_v5  ;;  %v2414_v13 = vrot.slane %v2412_v19, 4  ;;  %v1493_v36 = vshll.u32 %v5488_v54, 16  ;;  %v2406_v23 = vrot.slane %v2405_v9, 4 }
  0x7f   : > { %2195 = vrot.lane.b32.xlu1 %v6114_v57, %s6191_s26  ;;  %v5417_v48 = vcombine.low %v977_v62, %v980_v55  ;;  %v2420_v56 = vrot.slane %v2418_v18, 5  ;;  %v1486_v16 = vrot.slane %v1484_v38, 4  ;;  %v1489_v58 = vrot.slane %v1487_v15, 5  ;;  %v390_v62 = vld [vmem:[%s6256_s24 + $0x70] sm:$0xf] }
  0x80   : > { %v2415_v41 = vor.u32 %v2414_v13, %v2410_v10  ;;  %v1495_v2 = vrot.slane %v1493_v36, 5  ;;  %v1497_v34 = vshrl.u32 %v5488_v54, 16  ;;  %v2411_v14 = vsel %vm6320_vm5, %v2406_v23, %v2410_v10  ;;  %v6817_v18 = vld [vmem:[%s6256_s24 + $0x74] sm:$0xf] }
  0x81   : > { %1256 = vrot.lane.b32.xlu0 %v6115_v8, %s6190_s25  ;;  %v1503_v30 = vshll.u32 %v6771_v12, 16  ;;  %v1507_v40 = vshrl.u32 %v6771_v12, 16  ;;  %v542_v37 = vshrl.u32 %v378_v21, 16  ;;  %v1490_v3 = vor.u32 %v1489_v58, %v1486_v16  ;;  %v5652_v16 = vld [vmem:[%s6256_s24 + $0x60] sm:$0xf] }
  0x82   : > { %v2416_v22 = vrot.slane %v2415_v41, 4  ;;  %v1499_v1 = vrot.slane %v1497_v34, 4  ;;  %v545_v29 = vshll.u32 %v378_v21, 16  ;;  %v551_v11 = vshll.u32 %v379_v32, 16  ;;  %v5653_v41 = vld [vmem:[%s6256_s24 + $0x64] sm:$0xf] }
  0x83   : > { %2967 = vrot.lane.b32.xlu1 %v5746_v24, %s6193_s28  ;;  %v6790_v51 = vrot.slane %v1503_v30, 5  ;;  %v544_v35 = vrot.slane %v542_v37, 4  ;;  %v555_v27 = vshrl.u32 %v379_v32, 16  ;;  %v1491_v47 = vrot.slane %v1490_v3, 4 }
  0x84   : > { %v2421_v45 = vsel %vm6320_vm5, %v2416_v22, %v2420_v56  ;;  %v1500_v49 = vor.u32 %v1499_v1, %v1495_v2  ;;  %v547_v4 = vrot.slane %v545_v29, 5  ;;  %v553_v43 = vrot.slane %v551_v11, 5  ;;  %v6841_v1 = vld [vmem:[%s6256_s24 + $0x68] sm:$0xf]  ;;  %v878_v29 = vld [vmem:[%s6256_s24 + $0x6c] sm:$0x1] }
  0x85   : > { %2028 = vrot.lane.b32.xlu0 %v5581_v61, %s6194_s29  ;;  %v5681_v53 = vcombine.low %v2411_v14, %v2421_v45  ;;  %v557_v31 = vrot.slane %v555_v27, 4  ;;  %v561_v28 = vshll.u32 %v6786_v44, 16  ;;  %v1496_v20 = vsel %vm6320_vm5, %v1491_v47, %v1495_v2  ;;  %v6819_v38 = vpop.permute.xlu1 %1246  ;;  %v6836_v14 = vld [vmem:[%s6256_s24 + $0x68] sm:$0xf]  ;;  %v879_v45 = vld [vmem:[%s6256_s24 + $0x70] sm:$0xe] }
  0x86   : > { %v1501_v24 = vrot.slane %v1500_v49, 4  ;;  %v548_v52 = vor.u32 %v547_v4, %v544_v35  ;;  %v565_v25 = vshrl.u32 %v6786_v44, 16  ;;  %v5570_v57 = vrot.slane %v5542_v7, 9  ;;  %v6116_v7 = vld [vmem:[%s6256_s24 + $0x50] sm:$0xff]   ;;  %v6117_v49 = vld [vmem:[%s6256_s24 + $0x60] sm:$0xff]  }
  0x87   : > { %1091 = vrot.lane.b32.xlu1 %v5417_v48, %s6192_s27  ;;  %v558_v17 = vor.u32 %v557_v31, %v553_v43  ;;  %v6805_v33 = vrot.slane %v561_v28, 5  ;;  %v1915_v59 = vrot.slane %v5543_v42, 5  ;;  %v1918_v61 = vrot.slane %v6796_v26, 5  ;;  %v6849_v47 = vld [vmem:[%s6256_s24 + $0x74] sm:$0xf] }
  0x88   : > { %v1506_v39 = vsel %vm6320_vm5, %v1501_v24, %v6790_v51  ;;  %v549_v54 = vrot.slane %v548_v52, 4  ;;  %v629_v6 = vshll.u32 %v388_v50, 16  ;;  %v633_v15 = vshrl.u32 %v388_v50, 16  ;;  %v5707_v31 = vld [vmem:[%s6256_s24 + $0x60] sm:$0xe] }
  0x89   : > { %2681 = vrot.lane.b32.xlu0 %v5681_v53, %s6197_s7  ;;  %v5517_v19 = vcombine.low %v1496_v20, %v1506_v39  ;;  %v559_v8 = vrot.slane %v558_v17, 4  ;;  %v1916_v9 = vsel %vm6249_vm2, %v5570_v57, %v1915_v59  ;;  %v1917_v10 = vrot.slane %v1915_v59, 4  ;;  %v6857_v28 = vpop.permute.xlu1 %2185  ;;  %v5708_v57 = vld [vmem:[%s6256_s24 + $0x64] sm:$0xf] }
  0x8a   : > { %v554_v55 = vsel %vm6320_vm5, %v549_v54, %v553_v43  ;;  %v6823_v13 = vrot.slane %v629_v6, 5  ;;  %v639_v36 = vshll.u32 %v389_v60, 16  ;;  %v644_v23 = vshrl.u32 %v390_v62, 16 }
  0x8b   : > { %1744 = vrot.lane.b32.xlu1 %v5517_v19, %s6196_s6  ;;  %v564_v21 = vsel %vm6320_vm5, %v559_v8, %v6805_v33  ;;  %v1919_v48 = vsel %vm6249_vm2, %v1917_v10, %v1918_v61  ;;  %v647_v56 = vshll.u32 %v390_v62, 16  ;;  %v635_v34 = vrot.slane %v633_v15, 4  ;;  %v6864_v62 = vld [vmem:[%s6256_s24 + $0x68] sm:$0xf]  ;;  %v6871_v10 = vld [vmem:[%s6256_s24 + $0x78] sm:$0xf] }
  0x8c   : > { %v5392_v58 = vcombine.low %v554_v55, %v564_v21  ;;  %v5582_v2 = vcombine.low %v1916_v9, %v1919_v48  ;;  %v641_v32 = vrot.slane %v639_v36, 5  ;;  %v646_v30 = vrot.slane %v644_v23, 4  ;;  %v5553_v55 = vld [vmem:[%s6256_s24 + $0x7c] sm:$0x1] }
  0x8d   : > { %v649_v37 = vrot.slane %v647_v56, 5  ;;  %v653_v22 = vshll.u32 %v6817_v18, 16  ;;  %v657_v3 = vshrl.u32 %v6817_v18, 16  ;;  %v636_v35 = vor.u32 %v635_v34, %v6823_v13  ;;  %v6879_v23 = vpop.permute.xlu0 %1079  ;;  %v5554_v56 = vld [vmem:[%s6256_s24 + $0x80] sm:$0xe] }
  0x8e   : > { %802 = vrot.lane.b32.xlu0 %v5392_v58, %s6195_s30  ;;  %v2423_v11 = vshrl.u32 %v5652_v16, 16  ;;  %v2426_v27 = vshll.u32 %v5652_v16, 16  ;;  %v2432_v42 = vshll.u32 %v5653_v41, 16  ;;  %v2436_v53 = vshrl.u32 %v5653_v41, 16  ;;  %v6883_v16 = vld [vmem:[%s6256_s24 + $0x84] sm:$0xf] }
  0x8f   : > { %2030 = vrot.lane.b32.xlu1 %v5582_v2, %s6194_s29  ;;  %v650_v4 = vor.u32 %v649_v37, %v646_v30  ;;  %v6853_v50 = vrot.slane %v653_v22, 5  ;;  %v2442_v43 = vshll.u32 %v6836_v14, 16  ;;  %v637_v20 = vrot.slane %v636_v35, 4 }
  0x90   : > { %v2425_v24 = vrot.slane %v2423_v11, 4  ;;  %v2428_v52 = vrot.slane %v2426_v27, 5  ;;  %v2434_v17 = vrot.slane %v2432_v42, 5  ;;  %v2438_v60 = vrot.slane %v2436_v53, 4 }
  0x91   : > { %v651_v59 = vrot.slane %v650_v4, 4  ;;  %v6860_v39 = vrot.slane %v2442_v43, 5  ;;  %v2446_v54 = vshrl.u32 %v6836_v14, 16  ;;  %v642_v6 = vsel %vm6320_vm5, %v637_v20, %v641_v32  ;;  %v5497_v32 = vld [vmem:[%s6256_s24 + $0x78] sm:$0xf] }
  0x92   : > { %1258 = vrot.lane.b32.xlu0 %v6116_v7, %s6190_s25  ;;  %v2429_v19 = vor.u32 %v2428_v52, %v2425_v24  ;;  %v8747_v8 = vrot.slane %v6841_v1, 5  ;;  %v1002_v9 = vrot.slane %v878_v29, 5  ;;  %v2439_v36 = vor.u32 %v2438_v60, %v2434_v17  ;;  %v6893_v7 = vpop.permute.xlu1 %2957  ;;  %v6118_v24 = vld [vmem:[%s6256_s24 + $0x78] ss:$8 sps:$4 sm:$0xff]   ;;  %v6917_v60 = vld [vmem:[%s6256_s24 + $0x84] sm:$0xf] }
  0x93   : > { %2197 = vrot.lane.b32.xlu1 %v6117_v49, %s6191_s26  ;;  %v656_v15 = vsel %vm6320_vm5, %v651_v59, %v6853_v50  ;;  %v5408_v21 = vrot.slane %v879_v45, 9  ;;  %v1006_v48 = vrot.slane %v6849_v47, 5  ;;  %v5735_v34 = vrot.slane %v5707_v31, 9  ;;  %v5498_v45 = vld [vmem:[%s6256_s24 + $0x7c] sm:$0x1] }
  0x94   : > { %v5396_v41 = vcombine.low %v642_v6, %v656_v15  ;;  %v2430_v58 = vrot.slane %v2429_v19, 4  ;;  %v1001_v2 = vrot.slane %v8747_v8, 4  ;;  %v2440_v30 = vrot.slane %v2439_v36, 4  ;;  %v5499_v31 = vld [vmem:[%s6256_s24 + $0x80] sm:$0xf] }
  0x95   : > { %v1007_v37 = vsel %vm6249_vm2, %v5408_v21, %v1006_v48  ;;  %v2854_v22 = vrot.slane %v5708_v57, 5  ;;  %v2857_v29 = vrot.slane %v6864_v62, 5  ;;  %v8746_v27 = vrot.slane %v6871_v10, 5  ;;  %v5663_v8 = vld [vmem:[%s6256_s24 + $0x8c] sm:$0x1] }
  0x96   : > { %810 = vrot.lane.b32.xlu0 %v5396_v41, %s6195_s30  ;;  %v2435_v35 = vsel %vm6320_vm5, %v2430_v58, %v2434_v17  ;;  %v1003_v11 = vsel %vm6249_vm2, %v1001_v2, %v1002_v9  ;;  %v1941_v42 = vrot.slane %v5553_v55, 5  ;;  %v2445_v49 = vsel %vm6320_vm5, %v2440_v30, %v6860_v39  ;;  %v6919_v55 = vpop.permute.xlu0 %2018  ;;  %v381_v41 = vld [vmem:[%s6256_s24 + $0x4c] sm:$0x1]  ;;  %v382_v58 = vld [vmem:[%s6256_s24 + $0x50] sm:$0xf] }
  0x97   : > { %v5421_v4 = vcombine.low %v1003_v11, %v1007_v37  ;;  %v2855_v53 = vsel %vm6249_vm2, %v5735_v34, %v2854_v22  ;;  %v2856_v43 = vrot.slane %v2854_v22, 4  ;;  %v5682_v20 = vcombine.low %v2435_v35, %v2445_v49  ;;  %v6936_v37 = vld [vmem:[%s6256_s24 + $0x54] sm:$0xf]  ;;  %v6938_v22 = vpop.permute.xlu1 %1081  ;;  %v6120_v49 = vld [vmem:[%s6256_s24] sm:$0xff]  }
  0x98   : > { %v1940_v52 = vrot.slane %v8746_v27, 4  ;;  %v5573_v17 = vrot.slane %v5554_v56, 9  ;;  %v8748_v57 = vrot.slane %v6883_v16, 5  ;;  %v1571_v6 = vshll.u32 %v5497_v32, 16  ;;  %347 = vst.msk [vmem:[#allocation2] sm:$0xff] %vm346_vm6, %v6120_v49 }
  0x99   : > { %v2858_v59 = vsel %vm6249_vm2, %v2856_v43, %v2857_v29  ;;  %v1575_v19 = vshrl.u32 %v5497_v32, 16  ;;  %v1581_v9 = vshll.u32 %v5498_v45, 16  ;;  %2683 = vrot.lane.b32.xlu1 %v5682_v20, %s6197_s7  ;;  %v1586_v56 = vshrl.u32 %v5499_v31, 16  ;;  %v6137_v43 = vld [vmem:[%s6256_s24 + $0x34] sm:$0xff]  }
  0x9a   : > { %1099 = vrot.lane.b32.xlu0 %v5421_v4, %s6192_s27  ;;  %v5747_v15 = vcombine.low %v2855_v53, %v2858_v59  ;;  %v1942_v36 = vsel %vm6249_vm2, %v1940_v52, %v1941_v42  ;;  %v1946_v21 = vsel %vm6249_vm2, %v5573_v17, %v8748_v57  ;;  %v6931_v34 = vrot.slane %v1571_v6, 5  ;;  %v6128_v4 = vld [vmem:[%s6256_s24 + $0x14] sm:$0xff]   ;;  %v6131_v53 = vld [vmem:[%s6256_s24 + $0x20] sm:$0xff]   ;;  %v5662_v6 = vld [vmem:[%s6256_s24 + $0x88] sm:$0xf]  ;;  %v791_v27 = vpop.permute.xlu0 %790  ;;  %352 = vst.msk [vmem:[#allocation2 + $0x28] sm:$0xff] %vm346_vm6, %v6137_v43 }
  0x9b   : > { %v5586_v2 = vcombine.low %v1942_v36, %v1946_v21  ;;  %v1577_v32 = vrot.slane %v1575_v19, 4  ;;  %v6933_v30 = vrot.slane %v1581_v9, 5  ;;  %v1588_v35 = vrot.slane %v1586_v56, 4  ;;  %v6140_v19 = vld [vmem:[%s6256_s24 + $0x40] sm:$0xff]   ;;  %v6123_v56 = vld [vmem:[%s6256_s24 + $0x8] ss:$8 sps:$4 sm:$0xff]  }
  0x9c   : > { %v1589_v11 = vshll.u32 %v5499_v31, 16  ;;  %v1595_v42 = vshll.u32 %v6917_v60, 16  ;;  %v567_v52 = vrot.slane %v565_v25, 4  ;;  %v571_v17 = vshll.u32 %v381_v41, 16  ;;  %v6119_v57 = vld [vmem:[%s6256_s24 + $0x88] ss:$8 sps:$4 sm:$0xff]  }
  0x9d   : > { %v1578_v20 = vor.u32 %v1577_v32, %v6931_v34  ;;  %v576_v59 = vshrl.u32 %v382_v58, 16  ;;  %2969 = vrot.lane.b32.xlu1 %v5747_v15, %s6193_s28  ;;  %v579_v36 = vshll.u32 %v382_v58, 16  ;;  %v585_v21 = vshll.u32 %v6936_v37, 16  ;;  %348 = vst.msk [vmem:[#allocation2 + $0x8] sm:$0xff] %vm346_vm6, %v6123_v56  ;;  %349 = vst.msk [vmem:[#allocation2 + $0x10] sm:$0xff] %vm346_vm6, %v6128_v4 }
  0x9e   : > { %1266 = vrot.lane.b32.xlu0 %v6118_v24, %s6190_s25  ;;  %v1591_v31 = vrot.slane %v1589_v11, 5  ;;  %v6953_v9 = vrot.slane %v1595_v42, 5  ;;  %v568_v25 = vor.u32 %v567_v52, %v6805_v33  ;;  %v573_v41 = vrot.slane %v571_v17, 5  ;;  %v5664_v42 = vld [vmem:[%s6256_s24 + $0x90] sm:$0xf]  ;;  %v6967_v33 = vpop.permute.xlu1 %1732  ;;  %350 = vst.msk [vmem:[#allocation2 + $0x18] sm:$0xff] %vm346_vm6, %v6131_v53 }
  0x9f   : > { %v1579_v44 = vrot.slane %v1578_v20, 4  ;;  %v578_v32 = vrot.slane %v576_v59, 4  ;;  %v581_v15 = vrot.slane %v579_v36, 5  ;;  %v6959_v24 = vrot.slane %v585_v21, 5  ;;  %v6972_v17 = vld [vmem:[%s6256_s24 + $0x94] sm:$0xf] }
  0xa0   : > { %v1592_v45 = vor.u32 %v1591_v31, %v1588_v35  ;;  %v589_v11 = vshrl.u32 %v6936_v37, 16  ;;  %v569_v20 = vrot.slane %v568_v25, 4  ;;  %v2510_v59 = vshll.u32 %v5662_v6, 16  ;;  %353 = vst.msk [vmem:[#allocation2 + $0x30] sm:$0xff] %vm346_vm6, %v6140_v19  ;;  %v870_v31 = vld [vmem:[%s6256_s24 + $0x4c] sm:$0x1] }
  0xa1   : > { %v1584_v58 = vsel %vm6320_vm5, %v1579_v44, %v6933_v30  ;;  %2038 = vrot.lane.b32.xlu1 %v5586_v2, %s6194_s29  ;;  %v582_v52 = vor.u32 %v581_v15, %v578_v32  ;;  %836 = vst.msk [vmem:[#allocation2] sm:$0xff] %vm835_vm7, %v791_v27  ;;  %v2514_v30 = vshrl.u32 %v5662_v6, 16  ;;  %v2525_v49 = vshrl.u32 %v5664_v42, 16  ;;  %v871_v19 = vld [vmem:[%s6256_s24 + $0x50] sm:$0xe]  ;;  %v2672_v44 = vpop.permute.xlu0 %2671 }
  0xa2   : > { %v1593_v35 = vrot.slane %v1592_v45, 4  ;;  %v574_v2 = vsel %vm6320_vm5, %v569_v20, %v573_v41  ;;  %v2520_v45 = vshll.u32 %v5663_v8, 16  ;;  %1125 = vst.msk [vmem:[#allocation2] sm:$0xff] %vm1124_vm8, %v6879_v23  ;;  %v6988_v53 = vrot.slane %v2510_v59, 5  ;;  %v6992_v6 = vld [vmem:[%s6256_s24 + $0x54] sm:$0xf] }
  0xa3   : > { %v583_v36 = vrot.slane %v582_v52, 4  ;;  %v2528_v43 = vshll.u32 %v5664_v42, 16  ;;  %v2516_v56 = vrot.slane %v2514_v30, 4  ;;  %v2527_v8 = vrot.slane %v2525_v49, 4  ;;  %v7005_v20 = vld [vmem:[%s6256_s24 + $0x88] sm:$0xf] }
  0xa4   : > { %v1598_v4 = vsel %vm6320_vm5, %v1593_v35, %v6953_v9  ;;  %v2522_v27 = vrot.slane %v2520_v45, 5  ;;  %v2534_v41 = vshll.u32 %v6972_v17, 16  ;;  %v2538_v32 = vshrl.u32 %v6972_v17, 16  ;;  %v7008_v35 = vld [vmem:[%s6256_s24 + $0x8c] sm:$0x1]  ;;  %1292 = vst.msk [vmem:[#allocation2] sm:$0xff] %vm1291_vm9, %v6819_v38 }
  0xa5   : > { %v5521_v21 = vcombine.low %v1584_v58, %v1598_v4  ;;  %2205 = vrot.lane.b32.xlu1 %v6119_v57, %s6191_s26  ;;  %v588_v25 = vsel %vm6320_vm5, %v583_v36, %v6959_v24  ;;  %v2530_v23 = vrot.slane %v2528_v43, 5  ;;  %v2517_v42 = vor.u32 %v2516_v56, %v6988_v53  ;;  %v7020_v49 = vld [vmem:[%s6256_s24 + $0x94] sm:$0xf]  ;;  %v5545_v36 = vld [vmem:[%s6256_s24 + $0x5c] sm:$0x1]  ;;  %1778 = vst.msk [vmem:[#allocation2] sm:$0xff] %vm1777_vm10, %v6967_v33 }
  0xa6   : > { %v5393_v15 = vcombine.low %v574_v2, %v588_v25  ;;  %v981_v58 = vrot.slane %v979_v5, 4  ;;  %v982_v57 = vrot.slane %v870_v31, 5  ;;  %v7012_v30 = vrot.slane %v2534_v41, 5  ;;  %v5719_v5 = vld [vmem:[%s6256_s24 + $0x90] sm:$0xe]  ;;  %2064 = vst.msk [vmem:[#allocation2] sm:$0xff] %vm2063_vm11, %v6919_v55 }
  0xa7   : > { %1752 = vrot.lane.b32.xlu0 %v5521_v21, %s6196_s6  ;;  %v7010_v52 = vpop.permute.xlu1 %1734  ;;  %v2531_v59 = vor.u32 %v2530_v23, %v2527_v8  ;;  %v5406_v45 = vrot.slane %v871_v19, 9  ;;  %v986_v2 = vrot.slane %v6992_v6, 5  ;;  %v2518_v31 = vrot.slane %v2517_v42, 4  ;;  %v5546_v43 = vld [vmem:[%s6256_s24 + $0x60] sm:$0xe]  ;;  %2231 = vst.msk [vmem:[#allocation2] sm:$0xff] %vm2230_vm12, %v6857_v28 }
  0xa8   : > { %v983_v4 = vsel %vm6249_vm2, %v981_v58, %v982_v57  ;;  %v7027_v21 = vld [vmem:[%s6256_s24 + $0x64] sm:$0xf]  ;;  %v6198_v23 = vmov 0.0   ;;  %v5490_v42 = vld [vmem:[%s6256_s24 + $0x5c] sm:$0x1]  ;;  %v2877_v33 = vrot.slane %v7005_v20, 5 }
  0xa9   : > { %v2532_v19 = vrot.slane %v2531_v59, 4  ;;  %v987_v56 = vsel %vm6249_vm2, %v5406_v45, %v986_v2  ;;  %v2523_v8 = vsel %vm6320_vm5, %v2518_v31, %v2522_v27  ;;  %5982 = vmatprep.subr.bf16.mxu0 %v6198_v23  ;;  %v2880_v27 = vrot.slane %v7008_v35, 5  ;;  %v5491_v57 = vld [vmem:[%s6256_s24 + $0x60] sm:$0xf]  ;;  %6074 = vmatprep.subr.bf16.mxu1 %v6198_v23  ;;  %2717 = vst.msk [vmem:[#allocation2] sm:$0xff] %vm2716_vm13, %v2672_v44 }
  0xaa   : > { %v5418_v25 = vcombine.low %v983_v4, %v987_v56  ;;  %5983 = vmatpush3.bf16.msra.mxu0 %v6121_v46  ;;  %v5738_v55 = vrot.slane %v5719_v5, 9  ;;  %v2884_v45 = vrot.slane %v7020_v49, 5  ;;  %v6122_v31 = vld [vmem:[%s6256_s24 + $0x58] ss:$8 sps:$4 sm:$0xff]   ;;  %v1920_v35 = vrot.slane %v1918_v61, 4  ;;  %6077 = vmatpush3.bf16.msra.mxu1 %v6121_v46  ;;  %3003 = vst.msk [vmem:[#allocation2] sm:$0xff] %vm8749_vm14, %v6893_v7 }
  0xab   : > { %804 = vrot.lane.b32.xlu0 %v5393_v15, %s6195_s30  ;;  %v793_v41 = vpop.permute.xlu0 %792  ;;  %v7042_v58 = vpop.permute.xlu1 %2187  ;;  %v2537_v38 = vsel %vm6320_vm5, %v2532_v19, %v7012_v30  ;;  %v6124_v15 = vld [vmem:[%s8741_s1 + $0x8] sm:$0xff]   ;;  %5984 = vmatprep.subr.bf16.mxu0 %v6198_v23  ;;  %v2879_v4 = vrot.slane %v2877_v33, 4  ;;  %v1921_v19 = vrot.slane %v5545_v36, 5  ;;  %v5571_v28 = vrot.slane %v5546_v43, 9  ;;  %v7071_v56 = vld [vmem:[%s6256_s24 + $0x64] sm:$0xf] }
  0xac   : > { %837 = vst.msk [vmem:[#allocation2 + $0x8] sm:$0xff] %vm835_vm7, %v793_v41  ;;  %v5686_v59 = vcombine.low %v2523_v8, %v2537_v38  ;;  %v1925_v5 = vrot.slane %v7027_v21, 5  ;;  %v6125_v8 = vld [vmem:[%s8741_s1 + $0x10] ss:$0 sps:$4 sm:$0x33]   ;;  %6075 = vmatprep.subr.bf16.mxu1 %v6198_v23  ;;  %v2885_v26 = vsel %vm6249_vm2, %v5738_v55, %v2884_v45  ;;  %v1509_v61 = vrot.slane %v1507_v40, 4  ;;  %5988 = vmatprep.mubr.msk.bf16.mxu0 %vm6199_vm1, %v6198_v23 }
  0xad   : > { %1126 = vst.msk [vmem:[#allocation2 + $0x8] sm:$0xff] %vm1124_vm8, %v6938_v22  ;;  %v1513_v22 = vshll.u32 %v5490_v42, 16  ;;  %v1518_v44 = vshrl.u32 %v5491_v57, 16  ;;  %v2881_v43 = vsel %vm6249_vm2, %v2879_v4, %v2880_v27  ;;  %v1922_v7 = vsel %vm6249_vm2, %v1920_v35, %v1921_v19  ;;  %v392_v40 = vld [vmem:[%s6256_s24 + $0x78] sm:$0xf]  ;;  %6028 = vmatprep.mubr.msk.bf16.mxu1 %vm6199_vm1, %v6198_v23 }
  0xae   : > { %2691 = vrot.lane.b32.xlu1 %v5686_v59, %s6197_s7  ;;  %5985 = vmatpush3.bf16.msra.mxu0 %v6124_v15  ;;  %v1521_v12 = vshll.u32 %v5491_v57, 16  ;;  %v5751_v41 = vcombine.low %v2881_v43, %v2885_v26  ;;  %v1510_v38 = vor.u32 %v1509_v61, %v6790_v51  ;;  %v6146_v27 = vld [vmem:[%s6256_s24 + $0x74] sm:$0xff]   ;;  %v1527_v4 = vshll.u32 %v7071_v56, 16  ;;  %v393_v19 = vld [vmem:[%s6256_s24 + $0x7c] sm:$0x1] }
  0xaf   : > { %1093 = vrot.lane.b32.xlu0 %v5418_v25, %s6192_s27  ;;  %v1249_v46 = vpop.permute.xlu0 %1248  ;;  %v7087_v36 = vpop.permute.xlu1 %2959  ;;  %v1926_v25 = vsel %vm6249_vm2, %v5571_v28, %v1925_v5  ;;  %v1515_v59 = vrot.slane %v1513_v22, 5  ;;  %5986 = vmatprep.subr.bf16.mxu0 %v6198_v23  ;;  %v1520_v55 = vrot.slane %v1518_v44, 4  ;;  %v1531_v57 = vshrl.u32 %v7071_v56, 16  ;;  %358 = vst.msk [vmem:[#allocation2 + $0x58] sm:$0xff] %vm346_vm6, %v6146_v27  ;;  %v881_v27 = vld [vmem:[%s6256_s24 + $0x78] sm:$0xf] }
  0xb0   : > { %1293 = vst.msk [vmem:[#allocation2 + $0x8] sm:$0xff] %vm1291_vm9, %v1249_v46  ;;  %v5583_v42 = vcombine.low %v1922_v7, %v1926_v25  ;;  %6078 = vmatpush3.bf16.msra.mxu1 %v6124_v15  ;;  %v1523_v35 = vrot.slane %v1521_v12, 5  ;;  %v1511_v51 = vrot.slane %v1510_v38, 4  ;;  %v663_v15 = vshll.u32 %v392_v40, 16  ;;  %v5656_v12 = vld [vmem:[%s6256_s24 + $0x70] sm:$0xf] }
  0xb1   : > { %1779 = vst.msk [vmem:[#allocation2 + $0x8] sm:$0xff] %vm1777_vm10, %v7010_v52  ;;  %6076 = vmatprep.subr.bf16.mxu1 %v6198_v23  ;;  %v659_v52 = vrot.slane %v657_v3, 4  ;;  %v7115_v22 = vrot.slane %v1527_v4, 5  ;;  %v3108_v44 = vsel %vm3106_vm15, %v6125_v8, 0  ;;  %v667_v46 = vshrl.u32 %v392_v40, 16  ;;  %v3018_v38 = vld [vmem:[#allocation2] sm:$0xff] }
  0xb2   : > { %2977 = vrot.lane.b32.xlu1 %v5751_v41, %s6193_s28  ;;  %v1524_v61 = vor.u32 %v1523_v35, %v1520_v55  ;;  %v1516_v18 = vsel %vm6320_vm5, %v1511_v51, %v1515_v59  ;;  %5987 = vmatpush3.bf16.msra.mxu0 %v3108_v44  ;;  %v6126_v3 = vld [vmem:[%s6256_s24 + $0x68] ss:$8 sps:$4 sm:$0xff]   ;;  %v665_v7 = vrot.slane %v663_v15, 5  ;;  %v673_v25 = vshll.u32 %v393_v19, 16  ;;  %v7127_v8 = vld [vmem:[%s6256_s24 + $0x74] sm:$0xf] }
  0xb3   : > { %1260 = vrot.lane.b32.xlu0 %v6122_v31, %s6190_s25  ;;  %v2021_v28 = vpop.permute.xlu0 %2020  ;;  %v7112_v26 = vpop.permute.xlu1 %1083  ;;  %v5655_v31 = vld [vmem:[%s6256_s24 + $0x6c] sm:$0x1]  ;;  %v660_v43 = vor.u32 %v659_v52, %v6853_v50  ;;  %v669_v41 = vrot.slane %v667_v46, 4  ;;  %v2448_v50 = vrot.slane %v2446_v54, 4  ;;  %v882_v35 = vld [vmem:[%s6256_s24 + $0x7c] sm:$0x1] }
  0xb4   : > { %2065 = vst.msk [vmem:[#allocation2 + $0x8] sm:$0xff] %vm2063_vm11, %v2021_v28  ;;  %6079 = vmatpush3.bf16.msra.mxu1 %v3108_v44  ;;  %v1525_v40 = vrot.slane %v1524_v61, 4  ;;  %v675_v55 = vrot.slane %v673_v25, 5  ;;  %v2460_v52 = vshll.u32 %v5656_v12, 16  ;;  %v5710_v44 = vld [vmem:[%s6256_s24 + $0x6c] sm:$0x1] }
  0xb5   : > { %2232 = vst.msk [vmem:[#allocation2 + $0x8] sm:$0xff] %vm2230_vm12, %v7042_v58  ;;  %v661_v59 = vrot.slane %v660_v43, 4  ;;  %v2452_v58 = vshll.u32 %v5655_v31, 16  ;;  %v670_v51 = vor.u32 %v669_v41, %v665_v7  ;;  %5989 = vmatmul.mubr.msk.bf16.vlgmr.msra.gmra.mrb[0].mxu0 %vm3060_vm0, %v3018_v38  ;;  %v2449_v28 = vor.u32 %v2448_v50, %v6860_v39  ;;  %v5711_v25 = vld [vmem:[%s6256_s24 + $0x70] sm:$0xe] }
  0xb6   : > { %2032 = vrot.lane.b32.xlu1 %v5583_v42, %s6194_s29  ;;  %v1530_v19 = vsel %vm6320_vm5, %v1525_v40, %v7115_v22  ;;  %v2457_v42 = vshrl.u32 %v5656_v12, 16  ;;  %5992 = vmatprep.mubr.msk.bf16.mxu0 %vm6199_vm1, %v6198_v23  ;;  %v2462_v43 = vrot.slane %v2460_v52, 5  ;;  %v1009_v12 = vrot.slane %v881_v27, 5  ;;  %v7159_v40 = vld [vmem:[%s6256_s24 + $0x74] sm:$0xf] }
  0xb7   : > { %v2674_v4 = vpop.permute.xlu0 %2673  ;;  %v5518_v14 = vcombine.low %v1516_v18, %v1530_v19  ;;  %v666_v54 = vsel %vm6320_vm5, %v661_v59, %v665_v7  ;;  %v2454_v61 = vrot.slane %v2452_v58, 5  ;;  %v671_v46 = vrot.slane %v670_v51, 4 }
  0xb8   : > { %2718 = vst.msk [vmem:[#allocation2 + $0x8] sm:$0xff] %vm2716_vm13, %v2674_v4  ;;  %v1737_v15 = vpop.permute.xlu1 %1736  ;;  %v2459_v31 = vrot.slane %v2457_v42, 4  ;;  %v2466_v18 = vshll.u32 %v7127_v8, 16  ;;  %v2450_v39 = vrot.slane %v2449_v28, 4  ;;  %v2470_v7 = vshrl.u32 %v7127_v8, 16 }
  0xb9   : > { %3004 = vst.msk [vmem:[#allocation2 + $0x8] sm:$0xff] %vm8749_vm14, %v7087_v36  ;;  %1746 = vrot.lane.b32.xlu0 %v5518_v14, %s6196_s6  ;;  %v1008_v36 = vrot.slane %v1006_v48, 4  ;;  %v676_v38 = vsel %vm6320_vm5, %v671_v46, %v675_v55  ;;  %v1012_v58 = vrot.slane %v882_v35, 5  ;;  %v1011_v27 = vrot.slane %v1009_v12, 4  ;;  %v5557_v55 = vld [vmem:[%s6256_s24 + $0x8c] sm:$0x1] }
  0xba   : > { %2199 = vrot.lane.b32.xlu1 %v6126_v3, %s6191_s26  ;;  %v2463_v59 = vor.u32 %v2462_v43, %v2459_v31  ;;  %v7163_v50 = vrot.slane %v2466_v18, 5  ;;  %v5556_v3 = vld [vmem:[%s6256_s24 + $0x88] sm:$0xf]  ;;  %v5397_v19 = vcombine.low %v666_v54, %v676_v38  ;;  %v2455_v47 = vsel %vm6320_vm5, %v2450_v39, %v2454_v61  ;;  %v5502_v18 = vld [vmem:[%s6256_s24 + $0x8c] sm:$0x1] }
  0xbb   : > { %v795_v41 = vpop.permute.xlu0 %794  ;;  %v1010_v48 = vsel %vm6249_vm2, %v1008_v36, %v1009_v12  ;;  %v2859_v35 = vrot.slane %v2857_v29, 4  ;;  %v2860_v42 = vrot.slane %v5710_v44, 5  ;;  %v5736_v52 = vrot.slane %v5711_v25, 9  ;;  %v5501_v46 = vld [vmem:[%s6256_s24 + $0x88] sm:$0xf] }
  0xbc   : > { %838 = vst.msk [vmem:[#allocation2 + $0x10] sm:$0xff] %vm835_vm7, %v795_v41  ;;  %v2190_v4 = vpop.permute.xlu1 %2189  ;;  %v2464_v51 = vrot.slane %v2463_v59, 4  ;;  %v1013_v14 = vsel %vm6249_vm2, %v1011_v27, %v1012_v58  ;;  %v2864_v54 = vrot.slane %v7159_v40, 5  ;;  %v8755_v28 = vrot.slane %v6883_v16, 5  ;;  %v384_v25 = vld [vmem:[%s6256_s24 + $0x58] sm:$0xf] }
  0xbd   : > { %1127 = vst.msk [vmem:[#allocation2 + $0x10] sm:$0xff] %vm1124_vm8, %v7112_v26  ;;  %812 = vrot.lane.b32.xlu0 %v5397_v19, %s6195_s30  ;;  %v1948_v26 = vrot.slane %v5556_v3, 5  ;;  %v5422_v29 = vcombine.low %v1010_v48, %v1013_v14  ;;  %v2861_v44 = vsel %vm6249_vm2, %v2859_v35, %v2860_v42  ;;  %v1951_v43 = vrot.slane %v5557_v55, 5  ;;  %v6127_v58 = vld [vmem:[%s6256_s24 + $0x84] sm:$0xff]   ;;  %v385_v55 = vld [vmem:[%s6256_s24 + $0x5c] sm:$0x1] }
  0xbe   : > { %v1947_v61 = vrot.slane %v8755_v28, 4  ;;  %v2469_v62 = vsel %vm6320_vm5, %v2464_v51, %v7163_v50  ;;  %v2865_v12 = vsel %vm6249_vm2, %v5736_v52, %v2864_v54  ;;  %v8756_v3 = vshrl.u32 %v6917_v60, 16  ;;  %v6147_v42 = vld [vmem:[%s6256_s24 + $0x54] sm:$0xff]  }
  0xbf   : > { %v1251_v31 = vpop.permute.xlu0 %1250  ;;  %v5683_v36 = vcombine.low %v2455_v47, %v2469_v62  ;;  %v1950_v38 = vrot.slane %v1948_v26, 4  ;;  %v5748_v59 = vcombine.low %v2861_v44, %v2865_v12  ;;  %v1605_v47 = vshll.u32 %v5501_v46, 16  ;;  %355 = vst.msk [vmem:[#allocation2 + $0x40] sm:$0xff] %vm346_vm6, %v6147_v42  ;;  %v5722_v42 = vld [vmem:[%s6256_s24 + $0x9c] sm:$0x1] }
  0xc0   : > { %1294 = vst.msk [vmem:[#allocation2 + $0x10] sm:$0xff] %vm1291_vm9, %v1251_v31  ;;  %v3019_v39 = vld [vmem:[#allocation2 + $0x8] sm:$0xff]  ;;  %v2962_v16 = vpop.permute.xlu1 %2961  ;;  %v7197_v41 = vsel %vm6249_vm2, %v1947_v61, %v1948_v26  ;;  %v1601_v19 = vrot.slane %v8756_v3, 4  ;;  %v1609_v48 = vshrl.u32 %v5501_v46, 16  ;;  %v1615_v27 = vshll.u32 %v5502_v18, 16 }
  0xc1   : > { %1780 = vst.msk [vmem:[#allocation2 + $0x10] sm:$0xff] %vm1777_vm10, %v1737_v15  ;;  %5993 = vmatmul.mubr.msk.bf16.gmra.mrb[4].mxu0 %vm3060_vm0, %v3019_v39  ;;  %2685 = vrot.lane.b32.xlu1 %v5683_v36, %s6197_s7  ;;  %v1952_v15 = vsel %vm6249_vm2, %v1950_v38, %v1951_v43  ;;  %v591_v51 = vrot.slane %v589_v11, 4  ;;  %v595_v60 = vshll.u32 %v384_v25, 16  ;;  %v1607_v28 = vrot.slane %v1605_v47, 5  ;;  %v5666_v26 = vld [vmem:[%s6256_s24 + $0x98] sm:$0xf] }
  0xc2   : > { %5996 = vmatprep.mubr.msk.bf16.mxu0 %vm6199_vm1, %v6198_v23  ;;  %1101 = vrot.lane.b32.xlu0 %v5422_v29, %s6192_s27  ;;  %v5587_v52 = vcombine.low %v7197_v41, %v1952_v15  ;;  %v1602_v14 = vor.u32 %v1601_v19, %v6953_v9  ;;  %v1611_v61 = vrot.slane %v1609_v48, 4  ;;  %v1617_v31 = vrot.slane %v1615_v27, 5  ;;  %v5667_v29 = vld [vmem:[%s6256_s24 + $0x9c] sm:$0x1]  ;;  %v5721_v15 = vld [vmem:[%s6256_s24 + $0x98] sm:$0xf] }
  0xc3   : > { %v2023_v35 = vpop.permute.xlu0 %2022  ;;  %v592_v62 = vor.u32 %v591_v51, %v6959_v24  ;;  %v597_v37 = vrot.slane %v595_v60, 5  ;;  %v599_v11 = vshrl.u32 %v384_v25, 16  ;;  %v605_v43 = vshll.u32 %v385_v55, 16  ;;  %v874_v48 = vld [vmem:[%s6256_s24 + $0x5c] sm:$0x1]  ;;  %v6129_v55 = vld [vmem:[%s6256_s24 + $0x94] sm:$0xff]  }
  0xc4   : > { %2066 = vst.msk [vmem:[#allocation2 + $0x10] sm:$0xff] %vm2063_vm11, %v2023_v35  ;;  %v7218_v46 = vpop.permute.xlu1 %1085  ;;  %v1603_v44 = vrot.slane %v1602_v14, 4  ;;  %v1612_v9 = vor.u32 %v1611_v61, %v1607_v28  ;;  %v2540_v18 = vrot.slane %v2538_v32, 4  ;;  %v2544_v39 = vshll.u32 %v5666_v26, 16  ;;  %v873_v32 = vld [vmem:[%s6256_s24 + $0x58] sm:$0xf] }
  0xc5   : > { %2233 = vst.msk [vmem:[#allocation2 + $0x10] sm:$0xff] %vm2230_vm12, %v2190_v4  ;;  %2971 = vrot.lane.b32.xlu1 %v5748_v59, %s6193_s28  ;;  %v593_v24 = vrot.slane %v592_v62, 4  ;;  %v601_v25 = vrot.slane %v599_v11, 4  ;;  %v2548_v4 = vshrl.u32 %v5666_v26, 16  ;;  %v607_v38 = vrot.slane %v605_v43, 5 }
  0xc6   : > { %1268 = vrot.lane.b32.xlu0 %v6127_v58, %s6190_s25  ;;  %v1608_v12 = vsel %vm6320_vm5, %v1603_v44, %v1607_v28  ;;  %v1613_v41 = vrot.slane %v1612_v9, 4  ;;  %v2541_v17 = vor.u32 %v2540_v18, %v7012_v30  ;;  %v6134_v59 = vld [vmem:[%s6256_s24 + $0x28] ss:$8 sps:$4 sm:$0xff]   ;;  %v2546_v19 = vrot.slane %v2544_v39, 5  ;;  %v5549_v62 = vld [vmem:[%s6256_s24 + $0x6c] sm:$0x1] }
  0xc7   : > { %v2676_v36 = vpop.permute.xlu0 %2675  ;;  %v598_v58 = vsel %vm6320_vm5, %v593_v24, %v597_v37  ;;  %v602_v3 = vor.u32 %v601_v25, %v597_v37  ;;  %v2550_v47 = vrot.slane %v2548_v4, 4  ;;  %v2554_v60 = vshll.u32 %v5667_v29, 16  ;;  %351 = vst.msk [vmem:[#allocation2 + $0x20] sm:$0xff] %vm346_vm6, %v6134_v59  ;;  %v5548_v26 = vld [vmem:[%s6256_s24 + $0x68] sm:$0xf] }
  0xc8   : > { %2719 = vst.msk [vmem:[#allocation2 + $0x10] sm:$0xff] %vm2716_vm13, %v2676_v36  ;;  %v1739_v27 = vpop.permute.xlu1 %1738  ;;  %v1618_v30 = vsel %vm6320_vm5, %v1613_v41, %v1617_v31  ;;  %v2542_v51 = vrot.slane %v2541_v17, 4  ;;  %v988_v35 = vrot.slane %v986_v2, 4  ;;  %v989_v61 = vrot.slane %v873_v32, 5  ;;  %v5493_v25 = vld [vmem:[%s6256_s24 + $0x68] sm:$0xf] }
  0xc9   : > { %3005 = vst.msk [vmem:[#allocation2 + $0x10] sm:$0xff] %vm8749_vm14, %v2962_v16  ;;  %2040 = vrot.lane.b32.xlu1 %v5587_v52, %s6194_s29  ;;  %v5522_v14 = vcombine.low %v1608_v12, %v1618_v30  ;;  %v603_v28 = vrot.slane %v602_v3, 4  ;;  %v2551_v16 = vor.u32 %v2550_v47, %v2546_v19  ;;  %v2556_v37 = vrot.slane %v2554_v60, 5  ;;  %v5494_v41 = vld [vmem:[%s6256_s24 + $0x6c] sm:$0x1] }
  0xca   : > { %v2547_v31 = vsel %vm6320_vm5, %v2542_v51, %v2546_v19  ;;  %v992_v11 = vrot.slane %v874_v48, 5  ;;  %v2886_v6 = vrot.slane %v2884_v45, 4  ;;  %v990_v44 = vsel %vm6249_vm2, %v988_v35, %v989_v61  ;;  %v395_v51 = vld [vmem:[%s6256_s24 + $0x84] sm:$0xf] }
  0xcb   : > { %1754 = vrot.lane.b32.xlu0 %v5522_v14, %s6196_s6  ;;  %v608_v52 = vsel %vm6320_vm5, %v603_v28, %v607_v38  ;;  %v2552_v29 = vrot.slane %v2551_v16, 4  ;;  %v991_v9 = vrot.slane %v989_v61, 4  ;;  %v2887_v24 = vrot.slane %v5721_v15, 5  ;;  %v394_v38 = vld [vmem:[%s6256_s24 + $0x80] sm:$0xf]  ;;  %v6130_v16 = vld [vmem:[%s6256_s24 + $0x64] sm:$0xff]  }
  0xcc   : > { %v797_v2 = vpop.permute.xlu0 %796  ;;  %v2192_v43 = vpop.permute.xlu1 %2191  ;;  %v5394_v18 = vcombine.low %v598_v58, %v608_v52  ;;  %v2890_v49 = vrot.slane %v5722_v42, 5  ;;  %v1927_v45 = vrot.slane %v1925_v5, 4  ;;  %v1928_v36 = vrot.slane %v5548_v26, 5  ;;  %v396_v14 = vld [vmem:[%s6256_s24 + $0x88] sm:$0xf]  ;;  %v6148_v28 = vld [vmem:[%s6256_s24 + $0x80] sm:$0xff]  }
  0xcd   : > { %839 = vst.msk [vmem:[#allocation2 + $0x18] sm:$0xff] %vm835_vm7, %v797_v2  ;;  %2207 = vrot.lane.b32.xlu1 %v6129_v55, %s6191_s26  ;;  %v2557_v39 = vsel %vm6320_vm5, %v2552_v29, %v2556_v37  ;;  %v993_v4 = vsel %vm6249_vm2, %v991_v9, %v992_v11  ;;  %v1931_v12 = vrot.slane %v5549_v62, 5  ;;  %v2889_v21 = vrot.slane %v2887_v24, 4  ;;  %v5658_v37 = vld [vmem:[%s6256_s24 + $0x78] sm:$0xf] }
  0xce   : > { %1128 = vst.msk [vmem:[#allocation2 + $0x18] sm:$0xff] %vm1124_vm8, %v7218_v46  ;;  %v5687_v17 = vcombine.low %v2547_v31, %v2557_v39  ;;  %v5419_v32 = vcombine.low %v990_v44, %v993_v4  ;;  %v2888_v46 = vsel %vm6249_vm2, %v2886_v6, %v2887_v24  ;;  %v7276_v58 = vsel %vm6249_vm2, %v1927_v45, %v1928_v36 }
  0xcf   : > { %806 = vrot.lane.b32.xlu0 %v5394_v18, %s6195_s30  ;;  %v1930_v3 = vrot.slane %v1928_v36, 4  ;;  %v1533_v19 = vrot.slane %v1531_v57, 4  ;;  %v1537_v47 = vshll.u32 %v5493_v25, 16  ;;  %v2891_v15 = vsel %vm6249_vm2, %v2889_v21, %v2890_v49  ;;  %359 = vst.msk [vmem:[#allocation2 + $0x60] sm:$0xff] %vm346_vm6, %v6148_v28  ;;  %v885_v21 = vld [vmem:[%s6256_s24 + $0x88] sm:$0xf] }
  0xd0   : > { %v1253_v5 = vpop.permute.xlu0 %1252  ;;  %v3020_v59 = vld [vmem:[#allocation2 + $0x10] sm:$0xff]  ;;  %v2964_v48 = vpop.permute.xlu1 %2963  ;;  %v1541_v30 = vshrl.u32 %v5493_v25, 16  ;;  %v1547_v55 = vshll.u32 %v5494_v41, 16  ;;  %v678_v56 = vshrl.u32 %v394_v38, 16  ;;  %v5752_v57 = vcombine.low %v2888_v46, %v2891_v15  ;;  %v884_v46 = vld [vmem:[%s6256_s24 + $0x84] sm:$0xf] }
  0xd1   : > { %1295 = vst.msk [vmem:[#allocation2 + $0x18] sm:$0xff] %vm1291_vm9, %v1253_v5  ;;  %5997 = vmatmul.mubr.msk.bf16.gmra.mrb[8].mxu0 %vm3060_vm0, %v3020_v59  ;;  %2693 = vrot.lane.b32.xlu1 %v5687_v17, %s6197_s7  ;;  %v1932_v60 = vsel %vm6249_vm2, %v1930_v3, %v1931_v12  ;;  %v1534_v35 = vor.u32 %v1533_v19, %v7115_v22  ;;  %v1539_v42 = vrot.slane %v1537_v47, 5  ;;  %v681_v6 = vshll.u32 %v394_v38, 16  ;;  %v5659_v22 = vld [vmem:[%s6256_s24 + $0x7c] sm:$0x1]  ;;  %v6132_v15 = vld [vmem:[%s6256_s24 + $0x74] sm:$0xff]  }
  0xd2   : > { %1781 = vst.msk [vmem:[#allocation2 + $0x18] sm:$0xff] %vm1777_vm10, %v1739_v27  ;;  %6000 = vmatprep.mubr.msk.bf16.mxu0 %vm6199_vm1, %v6198_v23  ;;  %v5584_v27 = vcombine.low %v7276_v58, %v1932_v60  ;;  %v1543_v61 = vrot.slane %v1541_v30, 4  ;;  %v1549_v26 = vrot.slane %v1547_v55, 5  ;;  %v680_v62 = vrot.slane %v678_v56, 4  ;;  %v5713_v3 = vld [vmem:[%s6256_s24 + $0x78] sm:$0xf] }
  0xd3   : > { %1095 = vrot.lane.b32.xlu0 %v5419_v32, %s6192_s27  ;;  %v1535_v11 = vrot.slane %v1534_v35, 4  ;;  %v687_v2 = vshll.u32 %v395_v51, 16  ;;  %v691_v52 = vshrl.u32 %v395_v51, 16  ;;  %v697_v9 = vshll.u32 %v396_v14, 16 }
  0xd4   : > { %v2025_v31 = vpop.permute.xlu0 %2024  ;;  %v7300_v29 = vpop.permute.xlu1 %1087  ;;  %v1544_v44 = vor.u32 %v1543_v61, %v1539_v42  ;;  %v701_v18 = vshrl.u32 %v396_v14, 16  ;;  %v2472_v24 = vrot.slane %v2470_v7, 4  ;;  %v683_v45 = vrot.slane %v681_v6, 5  ;;  %v5559_v61 = vld [vmem:[%s6256_s24 + $0x94] sm:$0xf] }
  0xd5   : > { %2067 = vst.msk [vmem:[#allocation2 + $0x18] sm:$0xff] %vm2063_vm11, %v2025_v31  ;;  %2979 = vrot.lane.b32.xlu1 %v5752_v57, %s6193_s28  ;;  %v1540_v49 = vsel %vm6320_vm5, %v1535_v11, %v1539_v42  ;;  %v689_v25 = vrot.slane %v687_v2, 5  ;;  %v693_v39 = vrot.slane %v691_v52, 4  ;;  %v699_v36 = vrot.slane %v697_v9, 5  ;;  %v5714_v42 = vld [vmem:[%s6256_s24 + $0x7c] sm:$0x1] }
  0xd6   : > { %2234 = vst.msk [vmem:[#allocation2 + $0x18] sm:$0xff] %vm2230_vm12, %v2192_v43  ;;  %v1545_v4 = vrot.slane %v1544_v44, 4  ;;  %v703_v12 = vrot.slane %v701_v18, 4  ;;  %v2473_v41 = vor.u32 %v2472_v24, %v7163_v50  ;;  %v883_v43 = vld [vmem:[%s6256_s24 + $0x80] sm:$0xe]  ;;  %v684_v8 = vor.u32 %v683_v45, %v680_v62 }
  0xd7   : > { %1262 = vrot.lane.b32.xlu0 %v6130_v16, %s6190_s25  ;;  %v694_v7 = vor.u32 %v693_v39, %v689_v25  ;;  %v2476_v17 = vshll.u32 %v5658_v37, 16  ;;  %v2480_v32 = vshrl.u32 %v5658_v37, 16  ;;  %v2486_v58 = vshll.u32 %v5659_v22, 16  ;;  %v5560_v11 = vld [vmem:[%s6256_s24 + $0x98] sm:$0xf] }
  0xd8   : > { %v2678_v38 = vpop.permute.xlu0 %2677  ;;  %v1550_v5 = vsel %vm6320_vm5, %v1545_v4, %v1549_v26  ;;  %v704_v59 = vor.u32 %v703_v12, %v699_v36  ;;  %v2474_v50 = vrot.slane %v2473_v41, 4  ;;  %v685_v30 = vrot.slane %v684_v8, 4 }
  0xd9   : > { %2720 = vst.msk [vmem:[#allocation2 + $0x18] sm:$0xff] %vm2716_vm13, %v2678_v38  ;;  %2034 = vrot.lane.b32.xlu1 %v5584_v27, %s6194_s29  ;;  %v5519_v47 = vcombine.low %v1540_v49, %v1550_v5  ;;  %v695_v55 = vrot.slane %v694_v7, 4  ;;  %v2478_v51 = vrot.slane %v2476_v17, 5  ;;  %v2482_v57 = vrot.slane %v2480_v32, 4  ;;  %v5558_v27 = vld [vmem:[%s6256_s24 + $0x90] sm:$0xe] }
  0xda   : > { %3006 = vst.msk [vmem:[#allocation2 + $0x18] sm:$0xff] %vm8749_vm14, %v2964_v48  ;;  %v7319_v19 = vpop.permute.xlu1 %1740  ;;  %v7323_v56 = vrot.slane %v704_v59, 4  ;;  %v2488_v60 = vrot.slane %v2486_v58, 5  ;;  %v5409_v35 = vrot.slane %v883_v43, 9  ;;  %v690_v48 = vsel %vm6320_vm5, %v685_v30, %v689_v25  ;;  %v5503_v49 = vld [vmem:[%s6256_s24 + $0x90] sm:$0xf] }
  0xdb   : > { %1748 = vrot.lane.b32.xlu0 %v5519_v47, %s6196_s6  ;;  %v700_v14 = vsel %vm6320_vm5, %v695_v55, %v699_v36  ;;  %v2479_v28 = vsel %vm6320_vm5, %v2474_v50, %v2478_v51  ;;  %v1016_v16 = vrot.slane %v884_v46, 5  ;;  %v2483_v62 = vor.u32 %v2482_v57, %v2478_v51  ;;  %v5504_v36 = vld [vmem:[%s6256_s24 + $0x94] sm:$0xf]  ;;  %v5505_v7 = vld [vmem:[%s6256_s24 + $0x98] sm:$0xf] }
  0xdc   : > { %v5398_v26 = vcombine.low %v690_v48, %v700_v14  ;;  %v1019_v31 = vrot.slane %v885_v21, 5  ;;  %v2866_v37 = vrot.slane %v2864_v54, 4  ;;  %v2867_v22 = vrot.slane %v5713_v3, 5  ;;  %v386_v17 = vld [vmem:[%s6256_s24 + $0x60] sm:$0xf]  ;;  %v6133_v30 = vld [vmem:[%s6256_s24 + $0x90] sm:$0xff]  }
  0xdd   : > { %2201 = vrot.lane.b32.xlu1 %v6132_v15, %s6191_s26  ;;  %v1017_v2 = vsel %vm6249_vm2, %v5409_v35, %v1016_v16  ;;  %v1018_v52 = vrot.slane %v1016_v16, 4  ;;  %v2870_v44 = vrot.slane %v5714_v42, 5  ;;  %v2484_v18 = vrot.slane %v2483_v62, 4  ;;  %v387_v15 = vld [vmem:[%s6256_s24 + $0x64] sm:$0xf] }
  0xde   : > { %v7338_v6 = vpop.permute.xlu1 %2193  ;;  %v7343_v24 = vrot.slane %v1019_v31, 4  ;;  %v5574_v40 = vrot.slane %v5558_v27, 9  ;;  %v1955_v54 = vrot.slane %v5559_v61, 5  ;;  %v2868_v25 = vsel %vm6249_vm2, %v2866_v37, %v2867_v22 }
  0xdf   : > { %v799_v9 = vpop.permute.xlu0 %798  ;;  %814 = vrot.lane.b32.xlu0 %v5398_v26, %s6195_s30  ;;  %v1020_v45 = vsel %vm6249_vm2, %v1018_v52, %v1019_v31  ;;  %v2869_v39 = vrot.slane %v2867_v22, 4  ;;  %v1958_v4 = vrot.slane %v5560_v11, 5  ;;  %v2489_v41 = vsel %vm6320_vm5, %v2484_v18, %v2488_v60  ;;  %v6149_v22 = vld [vmem:[%s6256_s24 + $0x60] sm:$0xff]  }
  0xe0   : > { %840 = vst.msk [vmem:[#allocation2 + $0x20] sm:$0xff] %vm835_vm7, %v799_v9  ;;  %v5423_v43 = vcombine.low %v1017_v2, %v1020_v45  ;;  %v7359_v38 = vsel %vm6249_vm2, %v5574_v40, %v1955_v54  ;;  %v1957_v8 = vrot.slane %v1955_v54, 4  ;;  %v1620_v5 = vshrl.u32 %v5503_v49, 16  ;;  %v5670_v40 = vld [vmem:[%s6256_s24 + $0xa8] sm:$0xf] }
  0xe1   : > { %1129 = vst.msk [vmem:[#allocation2 + $0x20] sm:$0xff] %vm1124_vm8, %v7300_v29  ;;  %v3021_v12 = vld [vmem:[#allocation2 + $0x18] sm:$0xff]  ;;  %v5684_v29 = vcombine.low %v2479_v28, %v2489_v41  ;;  %v2871_v46 = vsel %vm6249_vm2, %v2869_v39, %v2870_v44  ;;  %v7368_v21 = vrot.slane %v1958_v4, 4  ;;  %v1623_v3 = vshll.u32 %v5503_v49, 16  ;;  %v5668_v28 = vld [vmem:[%s6256_s24 + $0xa0] sm:$0xf] }
  0xe2   : > { %6001 = vmatmul.mubr.msk.bf16.gmra.mrb[12].mxu0 %vm3060_vm0, %v3021_v12  ;;  %v7364_v32 = vpop.permute.xlu1 %2965  ;;  %v5749_v50 = vcombine.low %v2868_v25, %v2871_v46  ;;  %v1959_v58 = vsel %vm6249_vm2, %v1957_v8, %v1958_v4  ;;  %v1629_v47 = vshll.u32 %v5504_v36, 16  ;;  %v1622_v51 = vrot.slane %v1620_v5, 4  ;;  %v875_v4 = vld [vmem:[%s6256_s24 + $0x60] sm:$0xe]  ;;  %356 = vst.msk [vmem:[#allocation2 + $0x48] sm:$0xff] %vm346_vm6, %v6149_v22 }
  0xe3   : > { %v1255_v59 = vpop.permute.xlu0 %1254  ;;  %6004 = vmatprep.mubr.msk.bf16.mxu0 %vm6199_vm1, %v6198_v23  ;;  %2687 = vrot.lane.b32.xlu1 %v5684_v29, %s6197_s7  ;;  %v5588_v55 = vcombine.low %v7359_v38, %v1959_v58  ;;  %v1633_v57 = vshrl.u32 %v5504_v36, 16  ;;  %v1639_v60 = vshll.u32 %v5505_v7, 16  ;;  %v1625_v35 = vrot.slane %v1623_v3, 5  ;;  %v876_v38 = vld [vmem:[%s6256_s24 + $0x64] sm:$0xf] }
  0xe4   : > { %1296 = vst.msk [vmem:[#allocation2 + $0x20] sm:$0xff] %vm1291_vm9, %v1255_v59  ;;  %1103 = vrot.lane.b32.xlu0 %v5423_v43, %s6192_s27  ;;  %v1631_v42 = vrot.slane %v1629_v47, 5  ;;  %v1643_v48 = vshrl.u32 %v5505_v7, 16  ;;  %v610_v14 = vshrl.u32 %v386_v17, 16  ;;  %v613_v61 = vshll.u32 %v386_v17, 16  ;;  %v6135_v59 = vld [vmem:[%s6256_s24 + $0xa0] sm:$0xff]  }
  0xe5   : > { %1782 = vst.msk [vmem:[#allocation2 + $0x20] sm:$0xff] %vm1777_vm10, %v7319_v19  ;;  %v1635_v16 = vrot.slane %v1633_v57, 4  ;;  %v1641_v27 = vrot.slane %v1639_v60, 5  ;;  %v619_v26 = vshll.u32 %v387_v15, 16  ;;  %v1626_v37 = vor.u32 %v1625_v35, %v1622_v51  ;;  %v5669_v19 = vld [vmem:[%s6256_s24 + $0xa4] sm:$0xf] }
  0xe6   : > { %v7383_v31 = vpop.permute.xlu1 %1089  ;;  %v1645_v11 = vrot.slane %v1643_v48, 4  ;;  %v612_v2 = vrot.slane %v610_v14, 4  ;;  %v623_v52 = vshrl.u32 %v387_v15, 16  ;;  %v615_v9 = vrot.slane %v613_v61, 5  ;;  %v5723_v46 = vld [vmem:[%s6256_s24 + $0xa0] sm:$0xe] }
  0xe7   : > { %v2027_v62 = vpop.permute.xlu0 %2026  ;;  %2973 = vrot.lane.b32.xlu1 %v5749_v50, %s6193_s28  ;;  %v1636_v44 = vor.u32 %v1635_v16, %v1631_v42  ;;  %v621_v18 = vrot.slane %v619_v26, 5  ;;  %v2559_v54 = vshrl.u32 %v5668_v28, 16  ;;  %v1627_v49 = vrot.slane %v1626_v37, 4  ;;  %v5724_v47 = vld [vmem:[%s6256_s24 + $0xa4] sm:$0xf] }
  0xe8   : > { %2068 = vst.msk [vmem:[#allocation2 + $0x20] sm:$0xff] %vm2063_vm11, %v2027_v62  ;;  %1270 = vrot.lane.b32.xlu0 %v6133_v30, %s6190_s25  ;;  %v1646_v45 = vor.u32 %v1645_v11, %v1641_v27  ;;  %v625_v25 = vrot.slane %v623_v52, 4  ;;  %v2562_v39 = vshll.u32 %v5668_v28, 16  ;;  %v616_v12 = vor.u32 %v615_v9, %v612_v2  ;;  %v7410_v35 = vld [vmem:[%s6256_s24 + $0xa8] sm:$0xf] }
  0xe9   : > { %2235 = vst.msk [vmem:[#allocation2 + $0x20] sm:$0xff] %vm2230_vm12, %v7338_v6  ;;  %v1637_v36 = vrot.slane %v1636_v44, 4  ;;  %v2561_v41 = vrot.slane %v2559_v54, 4  ;;  %v2568_v43 = vshll.u32 %v5669_v19, 16  ;;  %v1632_v6 = vsel %vm6320_vm5, %v1627_v49, %v1631_v42  ;;  %v6142_v16 = vld [vmem:[%s6256_s24 + $0x68] ss:$8 sps:$4 sm:$0xff]  }
  0xea   : > { %v7398_v7 = vrot.slane %v1646_v45, 4  ;;  %v626_v17 = vor.u32 %v625_v25, %v621_v18  ;;  %v2564_v29 = vrot.slane %v2562_v39, 5  ;;  %v617_v50 = vrot.slane %v616_v12, 4  ;;  %v5550_v62 = vld [vmem:[%s6256_s24 + $0x70] sm:$0xe]  ;;  %357 = vst.msk [vmem:[#allocation2 + $0x50] sm:$0xff] %vm346_vm6, %v6142_v16 }
  0xeb   : > { %v2680_v8 = vpop.permute.xlu0 %2679  ;;  %2042 = vrot.lane.b32.xlu1 %v5588_v55, %s6194_s29  ;;  %v1642_v5 = vsel %vm6320_vm5, %v1637_v36, %v1641_v27  ;;  %v2570_v58 = vrot.slane %v2568_v43, 5  ;;  %v2572_v3 = vshrl.u32 %v5669_v19, 16  ;;  %v2578_v60 = vshll.u32 %v5670_v40, 16  ;;  %v5551_v19 = vld [vmem:[%s6256_s24 + $0x74] sm:$0xf] }
  0xec   : > { %2721 = vst.msk [vmem:[#allocation2 + $0x20] sm:$0xff] %vm2716_vm13, %v2680_v8  ;;  %v5523_v30 = vcombine.low %v1632_v6, %v1642_v5  ;;  %v627_v51 = vrot.slane %v626_v17, 4  ;;  %v2565_v57 = vor.u32 %v2564_v29, %v2561_v41  ;;  %v622_v55 = vsel %vm6320_vm5, %v617_v50, %v621_v18  ;;  %v5496_v43 = vld [vmem:[%s6256_s24 + $0x74] sm:$0xf]  ;;  %v397_v29 = vld [vmem:[%s6256_s24 + $0x8c] sm:$0x1] }
  0xed   : > { %3007 = vst.msk [vmem:[#allocation2 + $0x20] sm:$0xff] %vm8749_vm14, %v7364_v32  ;;  %v1743_v15 = vpop.permute.xlu1 %1742  ;;  %v2574_v42 = vrot.slane %v2572_v3, 4  ;;  %v2582_v48 = vshrl.u32 %v5670_v40, 16  ;;  %v5407_v14 = vrot.slane %v875_v4, 9  ;;  %v2580_v61 = vrot.slane %v2578_v60, 5 }
  0xee   : > { %1756 = vrot.lane.b32.xlu0 %v5523_v30, %s6196_s6  ;;  %v632_v32 = vsel %vm6320_vm5, %v627_v51, %v6823_v13  ;;  %v2566_v27 = vrot.slane %v2565_v57, 4  ;;  %v996_v26 = vrot.slane %v876_v38, 5  ;;  %v5739_v52 = vrot.slane %v5723_v46, 9  ;;  %v5495_v40 = vld [vmem:[%s6256_s24 + $0x70] sm:$0xf] }
  0xef   : > { %v801_v28 = vpop.permute.xlu0 %800  ;;  %2209 = vrot.lane.b32.xlu1 %v6135_v59, %s6191_s26  ;;  %v5395_v37 = vcombine.low %v622_v55, %v632_v32  ;;  %v2575_v11 = vor.u32 %v2574_v42, %v2570_v58  ;;  %v2584_v2 = vrot.slane %v2582_v48, 4  ;;  %v2894_v18 = vrot.slane %v5724_v47, 5  ;;  %v398_v46 = vld [vmem:[%s6256_s24 + $0x90] sm:$0xf]  ;;  %v7456_v47 = vld [vmem:[%s6256_s24 + $0x94] sm:$0xf] }
  0xf0   : > { %841 = vst.msk [vmem:[#allocation2 + $0x28] sm:$0xff] %vm835_vm7, %v801_v28  ;;  %v2571_v13 = vsel %vm6320_vm5, %v2566_v27, %v2570_v58  ;;  %v997_v44 = vsel %vm6249_vm2, %v5407_v14, %v996_v26  ;;  %v998_v9 = vrot.slane %v996_v26, 4  ;;  %v2897_v45 = vrot.slane %v7410_v35, 5  ;;  %v6136_v55 = vld [vmem:[%s6256_s24 + $0x70] sm:$0xff]   ;;  %v5660_v32 = vld [vmem:[%s6256_s24 + $0x80] sm:$0xf] }
  0xf1   : > { %1130 = vst.msk [vmem:[#allocation2 + $0x28] sm:$0xff] %vm1124_vm8, %v7383_v31  ;;  %v2196_v22 = vpop.permute.xlu1 %2195  ;;  %v2576_v54 = vrot.slane %v2575_v11, 4  ;;  %v2585_v49 = vor.u32 %v2584_v2, %v2580_v61  ;;  %v5572_v31 = vrot.slane %v5550_v62, 9  ;;  %v8757_v39 = vrot.slane %v6841_v1, 5 }
  0xf2   : > { %808 = vrot.lane.b32.xlu0 %v5395_v37, %s6195_s30  ;;  %v2895_v36 = vsel %vm6249_vm2, %v5739_v52, %v2894_v18  ;;  %v2896_v12 = vrot.slane %v2894_v18, 4  ;;  %v1935_v41 = vrot.slane %v5551_v19, 5  ;;  %v1552_v1 = vshrl.u32 %v5495_v40, 16  ;;  %v5661_v37 = vld [vmem:[%s6256_s24 + $0x84] sm:$0xf] }
  0xf3   : > { %v1257_v25 = vpop.permute.xlu0 %1256  ;;  %v1000_v4 = vsel %vm6249_vm2, %v998_v9, %v8757_v39  ;;  %v2581_v8 = vsel %vm6320_vm5, %v2576_v54, %v2580_v61  ;;  %v7443_v6 = vrot.slane %v2585_v49, 4  ;;  %v1555_v51 = vshll.u32 %v5495_v40, 16  ;;  %v887_v54 = vld [vmem:[%s6256_s24 + $0x90] sm:$0xe] }
  0xf4   : > { %1297 = vst.msk [vmem:[#allocation2 + $0x28] sm:$0xff] %vm1291_vm9, %v1257_v25  ;;  %v3022_v38 = vld [vmem:[#allocation2 + $0x20] sm:$0xff]  ;;  %v5420_v17 = vcombine.low %v997_v44, %v1000_v4  ;;  %v5688_v59 = vcombine.low %v2571_v13, %v2581_v8  ;;  %v2898_v50 = vsel %vm6249_vm2, %v2896_v12, %v2897_v45  ;;  %v1936_v58 = vsel %vm6249_vm2, %v5572_v31, %v1935_v41  ;;  %v886_v13 = vld [vmem:[%s6256_s24 + $0x8c] sm:$0x1]  ;;  %v7483_v4 = vld [vmem:[%s6256_s24 + $0x94] sm:$0xf] }
  0xf5   : > { %1783 = vst.msk [vmem:[#allocation2 + $0x28] sm:$0xff] %vm1777_vm10, %v1743_v15  ;;  %6005 = vmatmul.mubr.msk.bf16.gmra.mrb[16].mxu0 %vm3060_vm0, %v3022_v38  ;;  %v2968_v5 = vpop.permute.xlu1 %2967  ;;  %v1937_v3 = vrot.slane %v1935_v41, 4  ;;  %v5753_v15 = vcombine.low %v2895_v36, %v2898_v50  ;;  %v1554_v30 = vrot.slane %v1552_v1, 4  ;;  %v1561_v57 = vshll.u32 %v5496_v43, 16  ;;  %v5715_v36 = vld [vmem:[%s6256_s24 + $0x80] sm:$0xe] }
  0xf6   : > { %6008 = vmatprep.mubr.msk.bf16.mxu0 %vm6199_vm1, %v6198_v23  ;;  %2695 = vrot.lane.b32.xlu1 %v5688_v59, %s6197_s7  ;;  %v8758_v42 = vrot.slane %v6871_v10, 5  ;;  %v1565_v14 = vshrl.u32 %v5496_v43, 16  ;;  %v707_v28 = vshll.u32 %v397_v29, 16  ;;  %v712_v16 = vshrl.u32 %v398_v46, 16  ;;  %v5716_v8 = vld [vmem:[%s6256_s24 + $0x84] sm:$0xf] }
  0xf7   : > { %v2029_v60 = vpop.permute.xlu0 %2028  ;;  %1097 = vrot.lane.b32.xlu0 %v5420_v17, %s6192_s27  ;;  %v1557_v61 = vrot.slane %v1555_v51, 5  ;;  %v1563_v26 = vrot.slane %v1561_v57, 5  ;;  %v715_v62 = vshll.u32 %v398_v46, 16  ;;  %v721_v19 = vshll.u32 %v7456_v47, 16 }
  0xf8   : > { %v1939_v48 = vsel %vm6249_vm2, %v1937_v3, %v8758_v42  ;;  %2069 = vst.msk [vmem:[#allocation2 + $0x28] sm:$0xff] %vm2063_vm11, %v2029_v60  ;;  %v1567_v10 = vrot.slane %v1565_v14, 4  ;;  %v709_v2 = vrot.slane %v707_v28, 5  ;;  %v714_v52 = vrot.slane %v712_v16, 4  ;;  %v5506_v42 = vld [vmem:[%s6256_s24 + $0x9c] sm:$0x1] }
  0xf9   : > { %v5585_v27 = vcombine.low %v1936_v58, %v1939_v48  ;;  %2236 = vst.msk [vmem:[#allocation2 + $0x28] sm:$0xff] %vm2230_vm12, %v2196_v22  ;;  %v1092_v11 = vpop.permute.xlu1 %1091  ;;  %v1558_v44 = vor.u32 %v1557_v61, %v1554_v30  ;;  %v717_v9 = vrot.slane %v715_v62, 5  ;;  %v725_v18 = vshrl.u32 %v7456_v47, 16  ;;  %v6138_v30 = vld [vmem:[%s6256_s24 + $0x80] sm:$0xff]   ;;  %v5561_v61 = vld [vmem:[%s6256_s24 + $0x9c] sm:$0x1] }
  0xfa   : > { %v2491_v40 = vshrl.u32 %v5660_v32, 16  ;;  %2981 = vrot.lane.b32.xlu1 %v5753_v15, %s6193_s28  ;;  %v1568_v22 = vor.u32 %v1567_v10, %v1563_v26  ;;  %v710_v31 = vsel %vm6320_vm5, %v7323_v56, %v709_v2  ;;  %v7480_v25 = vrot.slane %v721_v19, 5  ;;  %v6145_v15 = vld [vmem:[%s6256_s24 + $0x48] ss:$8 sps:$4 sm:$0xff]   ;;  %v5507_v48 = vld [vmem:[%s6256_s24 + $0xa0] sm:$0xf] }
  0xfb   : > { %v2682_v49 = vpop.permute.xlu0 %2681  ;;  %1264 = vrot.lane.b32.xlu0 %v6136_v55, %s6190_s25  ;;  %v2494_v39 = vshll.u32 %v5660_v32, 16  ;;  %v1559_v12 = vrot.slane %v1558_v44, 4  ;;  %v718_v41 = vor.u32 %v717_v9, %v714_v52  ;;  %v2500_v38 = vshll.u32 %v5661_v37, 16  ;;  %354 = vst.msk [vmem:[#allocation2 + $0x38] sm:$0xff] %vm346_vm6, %v6145_v15  ;;  %v5509_v47 = vld [vmem:[%s6256_s24 + $0xa8] sm:$0xf] }
  0xfc   : > { %2722 = vst.msk [vmem:[#allocation2 + $0x28] sm:$0xff] %vm2716_vm13, %v2682_v49  ;;  %v2493_v43 = vrot.slane %v2491_v40, 4  ;;  %v1569_v1 = vrot.slane %v1568_v22, 4  ;;  %v2504_v29 = vshrl.u32 %v5661_v37, 16  ;;  %v1022_v46 = vrot.slane %v886_v13, 5 }
  0xfd   : > { %3008 = vst.msk [vmem:[#allocation2 + $0x28] sm:$0xff] %vm8749_vm14, %v2968_v5  ;;  %v1745_v17 = vpop.permute.xlu1 %1744  ;;  %v2496_v56 = vrot.slane %v2494_v39, 5  ;;  %v1564_v59 = vsel %vm6320_vm5, %v1559_v12, %v1563_v26  ;;  %v719_v50 = vrot.slane %v718_v41, 4  ;;  %v2502_v58 = vrot.slane %v2500_v38, 5  ;;  %v5562_v13 = vld [vmem:[%s6256_s24 + $0xa0] sm:$0xe] }
  0xfe   : > { %v5410_v3 = vrot.slane %v887_v54, 9  ;;  %2036 = vrot.lane.b32.xlu1 %v5585_v27, %s6194_s29  ;;  %v1574_v5 = vsel %vm6320_vm5, %v1569_v1, %v6931_v34  ;;  %v2506_v57 = vrot.slane %v2504_v29, 4  ;;  %v7500_v60 = vsel %vm6249_vm2, %v7343_v24, %v1022_v46  ;;  %v7510_v34 = vld [vmem:[%s6256_s24 + $0xa4] sm:$0xf]  ;;  %v5671_v22 = vld [vmem:[%s6256_s24 + $0xac] sm:$0x1] }
  0xff   : > { %v2497_v51 = vor.u32 %v2496_v56, %v2493_v43  ;;  %v5520_v14 = vcombine.low %v1564_v59, %v1574_v5  ;;  %v724_v28 = vsel %vm6320_vm5, %v719_v50, %v7480_v25  ;;  %v1026_v16 = vrot.slane %v7483_v4, 5  ;;  %v7527_v54 = vld [vmem:[%s6256_s24 + $0xa4] sm:$0xf]  ;;  %v7540_v29 = vld [vmem:[%s6256_s24 + $0xb4] sm:$0xf] }
 0x100   : > { %v803_v55 = vpop.permute.xlu0 %802  ;;  %v5737_v32 = vrot.slane %v5715_v36, 9  ;;  %v5399_v24 = vcombine.low %v710_v31, %v724_v28  ;;  %v2507_v62 = vor.u32 %v2506_v57, %v2502_v58  ;;  %v2874_v37 = vrot.slane %v5716_v8, 5  ;;  %v5672_v31 = vld [vmem:[%s6256_s24 + $0xb0] sm:$0xf] }
 0x101   : > { %842 = vst.msk [vmem:[#allocation2 + $0x30] sm:$0xff] %vm835_vm7, %v803_v55  ;;  %v2031_v27 = vpop.permute.xlu1 %2030  ;;  %v2498_v26 = vrot.slane %v2497_v51, 4  ;;  %1750 = vrot.lane.b32.xlu0 %v5520_v14, %s6196_s6  ;;  %v1027_v10 = vsel %vm6249_vm2, %v5410_v3, %v1026_v16  ;;  %v1649_v2 = vshll.u32 %v5506_v42, 16  ;;  %v1654_v52 = vshrl.u32 %v5507_v48, 16  ;;  %v5727_v5 = vld [vmem:[%s6256_s24 + $0xb0] sm:$0xe] }
 0x102   : > { %1131 = vst.msk [vmem:[#allocation2 + $0x30] sm:$0xff] %vm1124_vm8, %v1092_v11  ;;  %v1657_v19 = vshll.u32 %v5507_v48, 16  ;;  %2203 = vrot.lane.b32.xlu1 %v6138_v30, %s6191_s26  ;;  %v2508_v9 = vrot.slane %v2507_v62, 4  ;;  %v2875_v11 = vsel %vm6249_vm2, %v5737_v32, %v2874_v37  ;;  %v2876_v39 = vrot.slane %v2874_v37, 4  ;;  %v7564_v30 = vld [vmem:[%s6256_s24 + $0xb4] sm:$0xf] }
 0x103   : > { %v2503_v44 = vsel %vm6320_vm5, %v2498_v26, %v2502_v58  ;;  %v1651_v36 = vrot.slane %v1649_v2, 5  ;;  %v1656_v12 = vrot.slane %v1654_v52, 4  ;;  %v5424_v38 = vcombine.low %v7500_v60, %v1027_v10  ;;  %v6139_v51 = vld [vmem:[%s6256_s24 + $0x98] ss:$8 sps:$4 sm:$0xff]   ;;  %v6141_v37 = vld [vmem:[%s6256_s24 + $0xa8] ss:$8 sps:$4 sm:$0xff]  }
 0x104   : > { %v1259_v40 = vpop.permute.xlu0 %1258  ;;  %v3023_v49 = vld [vmem:[#allocation2 + $0x28] sm:$0xff]  ;;  %v1659_v41 = vrot.slane %v1657_v19, 5  ;;  %v2513_v43 = vsel %vm6320_vm5, %v2508_v9, %v6988_v53  ;;  %v1663_v8 = vshll.u32 %v7510_v34, 16  ;;  %v1961_v1 = vrot.slane %v5561_v61, 5 }
 0x105   : > { %1298 = vst.msk [vmem:[#allocation2 + $0x30] sm:$0xff] %vm1291_vm9, %v1259_v40  ;;  %6009 = vmatmul.mubr.msk.bf16.gmra.mrb[20].mxu0 %vm3060_vm0, %v3023_v49  ;;  %v2198_v56 = vpop.permute.xlu1 %2197  ;;  %816 = vrot.lane.b32.xlu0 %v5399_v24, %s6195_s30  ;;  %v5685_v53 = vcombine.low %v2503_v44, %v2513_v43  ;;  %v1652_v46 = vsel %vm6320_vm5, %v7398_v7, %v1651_v36  ;;  %v5575_v20 = vrot.slane %v5562_v13, 9  ;;  %v6150_v7 = vld [vmem:[%s6256_s24 + $0x88] ss:$8 sps:$4 sm:$0xff]   ;;  %v1965_v60 = vrot.slane %v7527_v54, 5 }
 0x106   : > { %1784 = vst.msk [vmem:[#allocation2 + $0x30] sm:$0xff] %vm1777_vm10, %v1745_v17  ;;  %6012 = vmatprep.mubr.msk.bf16.mxu0 %vm6199_vm1, %v6198_v23  ;;  %v2878_v17 = vsel %vm6249_vm2, %v2876_v39, %v2877_v33  ;;  %v1660_v59 = vor.u32 %v1659_v41, %v1656_v12  ;;  %v7553_v58 = vrot.slane %v1663_v8, 5  ;;  %v7558_v3 = vsel %vm6249_vm2, %v7368_v21, %v1961_v1  ;;  %v5726_v33 = vld [vmem:[%s6256_s24 + $0xac] sm:$0x1]  ;;  %v400_v24 = vld [vmem:[%s6256_s24 + $0x98] sm:$0xf] }
 0x107   : > { %2070 = vst.msk [vmem:[#allocation2 + $0x30] sm:$0xff] %vm2063_vm11, %v2031_v27  ;;  %v5750_v50 = vcombine.low %v2875_v11, %v2878_v17  ;;  %2689 = vrot.lane.b32.xlu1 %v5685_v53, %s6197_s7  ;;  %v2588_v21 = vshll.u32 %v5671_v22, 16  ;;  %v2593_v55 = vshrl.u32 %v5672_v31, 16  ;;  %v1667_v42 = vshrl.u32 %v7510_v34, 16  ;;  %v401_v13 = vld [vmem:[%s6256_s24 + $0x9c] sm:$0x1] }
 0x108   : > { %2237 = vst.msk [vmem:[#allocation2 + $0x30] sm:$0xff] %vm2230_vm12, %v2198_v56  ;;  %v811_v15 = vpop.permute.xlu0 %810  ;;  %v1661_v57 = vrot.slane %v1660_v59, 4  ;;  %v2596_v48 = vshll.u32 %v5672_v31, 16  ;;  %v2602_v14 = vshll.u32 %v7540_v29, 16  ;;  %v2606_v28 = vshrl.u32 %v7540_v29, 16 }
 0x109   : > { %846 = vst.msk [vmem:[#allocation2 + $0x50] sm:$0xff] %vm835_vm7, %v811_v15  ;;  %1105 = vrot.lane.b32.xlu0 %v5424_v38, %s6192_s27  ;;  %v7583_v27 = vsel %vm6249_vm2, %v5575_v20, %v1965_v60  ;;  %v2595_v34 = vrot.slane %v2593_v55, 4  ;;  %v2899_v61 = vrot.slane %v2897_v45, 4  ;;  %v2590_v10 = vrot.slane %v2588_v21, 5  ;;  %v889_v11 = vld [vmem:[%s6256_s24 + $0x98] sm:$0xf] }
 0x10a   : > { %360 = vst.msk [vmem:[#allocation2 + $0x68] sm:$0xff] %vm346_vm6, %v6150_v7  ;;  %v1666_v32 = vsel %vm6320_vm5, %v1661_v57, %v7553_v58  ;;  %v5589_v62 = vcombine.low %v7558_v3, %v7583_v27  ;;  %v2598_v2 = vrot.slane %v2596_v48, 5  ;;  %v7593_v44 = vrot.slane %v2602_v14, 5  ;;  %v890_v39 = vld [vmem:[%s6256_s24 + $0x9c] sm:$0x1] }
 0x10b   : > { %v5524_v26 = vcombine.low %v1652_v46, %v1666_v32  ;;  %v2684_v52 = vpop.permute.xlu1 %2683  ;;  %2975 = vrot.lane.b32.xlu1 %v5750_v50, %s6193_s28  ;;  %v2900_v9 = vrot.slane %v5726_v33, 5  ;;  %v5740_v35 = vrot.slane %v5727_v5, 9  ;;  %v2904_v45 = vrot.slane %v7564_v30, 5  ;;  %v5510_v50 = vld [vmem:[%s6256_s24 + $0xac] sm:$0x1]  ;;  %v6144_v30 = vld [vmem:[%s6256_s24 + $0xb4] sm:$0xff]  }
 0x10c   : > { %v1100_v19 = vpop.permute.xlu0 %1099  ;;  %2723 = vst.msk [vmem:[#allocation2 + $0x30] sm:$0xff] %vm2716_vm13, %v2684_v52  ;;  %v2599_v40 = vor.u32 %v2598_v2, %v2595_v34  ;;  %v727_v49 = vrot.slane %v725_v18, 4  ;;  %v731_v22 = vshll.u32 %v400_v24, 16  ;;  %v735_v31 = vshrl.u32 %v400_v24, 16  ;;  %v5564_v48 = vld [vmem:[%s6256_s24 + $0xa8] sm:$0xf] }
 0x10d   : > { %1135 = vst.msk [vmem:[#allocation2 + $0x50] sm:$0xff] %vm1124_vm8, %v1100_v19  ;;  %1272 = vrot.lane.b32.xlu0 %v6139_v51, %s6190_s25  ;;  %v2901_v36 = vsel %vm6249_vm2, %v2899_v61, %v2900_v9  ;;  %v2905_v12 = vsel %vm6249_vm2, %v5740_v35, %v2904_v45  ;;  %v741_v41 = vshll.u32 %v401_v13, 16  ;;  %v1028_v43 = vrot.slane %v1026_v16, 4  ;;  %v6151_v16 = vld [vmem:[%s6256_s24 + $0x94] sm:$0xff]  }
 0x10e   : > { %v2591_v18 = vsel %vm6320_vm5, %v7443_v6, %v2590_v10  ;;  %v2600_v38 = vrot.slane %v2599_v40, 4  ;;  %v728_v8 = vor.u32 %v727_v49, %v7480_v25  ;;  %v733_v1 = vrot.slane %v731_v22, 5  ;;  %361 = vst.msk [vmem:[#allocation2 + $0x70] sm:$0xff] %vm346_vm6, %v6151_v16  ;;  %v5565_v10 = vld [vmem:[%s6256_s24 + $0xac] sm:$0x1] }
 0x10f   : > { %v2970_v56 = vpop.permute.xlu1 %2969  ;;  %2211 = vrot.lane.b32.xlu1 %v6141_v37, %s6191_s26  ;;  %v5754_v17 = vcombine.low %v2901_v36, %v2905_v12  ;;  %v737_v46 = vrot.slane %v735_v31, 4  ;;  %v1029_v59 = vrot.slane %v889_v11, 5  ;;  %v1032_v4 = vrot.slane %v890_v39, 5  ;;  %v5674_v2 = vld [vmem:[%s6256_s24 + $0xb8] sm:$0xf] }
 0x110   : > { %v1267_v53 = vpop.permute.xlu0 %1266  ;;  %3009 = vst.msk [vmem:[#allocation2 + $0x30] sm:$0xff] %vm8749_vm14, %v2970_v56  ;;  %v2605_v6 = vsel %vm6320_vm5, %v2600_v38, %v7593_v44  ;;  %v743_v25 = vrot.slane %v741_v41, 5  ;;  %v1669_v20 = vrot.slane %v1667_v42, 4  ;;  %v1673_v15 = vshll.u32 %v5509_v47, 16  ;;  %v5729_v9 = vld [vmem:[%s6256_s24 + $0xb8] sm:$0xf] }
 0x111   : > { %1302 = vst.msk [vmem:[#allocation2 + $0x50] sm:$0xff] %vm1291_vm9, %v1267_v53  ;;  %1758 = vrot.lane.b32.xlu0 %v5524_v26, %s6196_s6  ;;  %v729_v33 = vrot.slane %v728_v8, 4  ;;  %v738_v5 = vor.u32 %v737_v46, %v733_v1  ;;  %v1030_v7 = vsel %vm6249_vm2, %v1028_v43, %v1029_v59  ;;  %v1031_v51 = vrot.slane %v1029_v59, 4  ;;  %v6143_v46 = vld [vmem:[%s6256_s24 + $0xa4] sm:$0xff]  }
 0x112   : > { %v1670_v57 = vor.u32 %v1669_v20, %v7553_v58  ;;  %v1675_v21 = vrot.slane %v1673_v15, 5  ;;  %v1677_v55 = vshrl.u32 %v5509_v47, 16  ;;  %v1683_v32 = vshll.u32 %v5510_v50, 16  ;;  %v5730_v47 = vld [vmem:[%s6256_s24 + $0xbc] sm:$0x1] }
 0x113   : > { %2983 = vrot.lane.b32.xlu1 %v5754_v17, %s6193_s28  ;;  %v739_v42 = vrot.slane %v738_v5, 4  ;;  %v1033_v14 = vsel %vm6249_vm2, %v1031_v51, %v1032_v4  ;;  %v2039_v34 = vpop.permute.xlu1 %2038  ;;  %v5689_v61 = vcombine.low %v2591_v18, %v2605_v6  ;;  %v734_v58 = vsel %vm6320_vm5, %v729_v33, %v733_v1 }
 0x114   : > { %v5425_v24 = vcombine.low %v1030_v7, %v1033_v14  ;;  %v1671_v26 = vrot.slane %v1670_v57, 4  ;;  %v1679_v37 = vrot.slane %v1677_v55, 4  ;;  %v1968_v19 = vrot.slane %v5564_v48, 5 }
 0x115   : > { %2044 = vrot.lane.b32.xlu0 %v5589_v62, %s6194_s29  ;;  %v744_v52 = vsel %vm6320_vm5, %v739_v42, %v743_v25  ;;  %v2608_v13 = vrot.slane %v2606_v28, 4  ;;  %v1685_v11 = vrot.slane %v1683_v32, 5  ;;  %v1967_v3 = vrot.slane %v1965_v60, 4  ;;  %v5675_v62 = vld [vmem:[%s6256_s24 + $0xbc] sm:$0x1]  ;;  %s6200_s24 = smov 48  }
 0x116   : > { %v1680_v35 = vor.u32 %v1679_v37, %v1675_v21  ;;  %v1971_v27 = vrot.slane %v5565_v10, 5  ;;  %v2612_v22 = vshll.u32 %v5674_v2, 16  ;;  %v2616_v31 = vshrl.u32 %v5674_v2, 16 }
 0x117   : > { %v3024_v40 = vld [vmem:[#allocation2 + $0x30] sm:$0xff]  ;;  %1107 = vrot.lane.b32.xlu1 %v5425_v24, %s6192_s27  ;;  %v5400_v39 = vcombine.low %v734_v58, %v744_v52  ;;  %v1676_v29 = vsel %vm6320_vm5, %v1671_v26, %v1675_v21  ;;  %v2907_v36 = vrot.slane %v5729_v9, 5  ;;  %v1970_v54 = vrot.slane %v1968_v19, 4  ;;  %v2206_v60 = vpop.permute.xlu1 %2205 }
 0x118   : > { %6013 = vmatmul.mubr.msk.bf16.gmra.mrb[24].mxu0 %vm3060_vm0, %v3024_v40  ;;  %v1681_v28 = vrot.slane %v1680_v35, 4  ;;  %v2609_v12 = vor.u32 %v2608_v13, %v7593_v44  ;;  %v2614_v41 = vrot.slane %v2612_v22, 5  ;;  %v2618_v43 = vrot.slane %v2616_v31, 4 }
 0x119   : > { %v1753_v49 = vpop.permute.xlu0 %1752  ;;  %6016 = vmatprep.mubr.msk.bf16.mxu0 %vm6199_vm1, %v6198_v23  ;;  %2697 = vrot.lane.b32.xlu0 %v5689_v61, %s6197_s7  ;;  %v2622_v38 = vshll.u32 %v5675_v62, 16  ;;  %v2906_v8 = vrot.slane %v2904_v45, 4  ;;  %v2909_v17 = vrot.slane %v2907_v36, 4  ;;  %v2910_v44 = vrot.slane %v5730_v47, 5 }
 0x11a   : > { %1788 = vst.msk [vmem:[#allocation2 + $0x50] sm:$0xff] %vm1777_vm10, %v1753_v49  ;;  %v1686_v18 = vsel %vm6320_vm5, %v1681_v28, %v1685_v11  ;;  %v2619_v53 = vor.u32 %v2618_v43, %v2614_v41  ;;  %v1969_v59 = vsel %vm6249_vm2, %v1967_v3, %v1968_v19  ;;  %v1972_v4 = vsel %vm6249_vm2, %v1970_v54, %v1971_v27 }
 0x11b   : > { %2074 = vst.msk [vmem:[#allocation2 + $0x50] sm:$0xff] %vm2063_vm11, %v2039_v34  ;;  %v5525_v1 = vcombine.low %v1676_v29, %v1686_v18  ;;  %v2610_v45 = vrot.slane %v2609_v12, 4  ;;  %v2624_v6 = vrot.slane %v2622_v38, 5  ;;  %v2908_v25 = vsel %vm6249_vm2, %v2906_v8, %v2907_v36 }
 0x11c   : > { %2241 = vst.msk [vmem:[#allocation2 + $0x50] sm:$0xff] %vm2230_vm12, %v2206_v60  ;;  %v2620_v16 = vrot.slane %v2619_v53, 4  ;;  %v2911_v50 = vsel %vm6249_vm2, %v2909_v17, %v2910_v44  ;;  %v5590_v33 = vcombine.low %v1969_v59, %v1972_v4  ;;  %v3305_v4 = vlaneseq }
 0x11d   : > { %v805_v56 = vpop.permute.xlu0 %804  ;;  %818 = vrot.lane.b32.xlu0 %v5400_v39, %s6195_s30  ;;  %1760 = vrot.lane.b32.xlu1 %v5525_v1, %s6196_s6  ;;  %v5755_v5 = vcombine.low %v2908_v25, %v2911_v50  ;;  %v2615_v7 = vsel %vm6320_vm5, %v2610_v45, %v2614_v41  ;;  %v3311_v50 = vstv %s3310_s19  ;;  %vm3513_vm15 = vcmask 60416   ;;  %s6203_s30 = smov 40  }
 0x11e   : > { %843 = vst.msk [vmem:[#allocation2 + $0x38] sm:$0xff] %vm835_vm7, %v805_v56  ;;  %v2625_v51 = vsel %vm6320_vm5, %v2620_v16, %v2624_v6  ;;  %v7753_v16 = vshrl.u32 %v3305_v4, 7  ;;  %vm7762_vm3 = vcmp.eq.s32.totalorder %v3311_v50, 1 }
 0x11f   : > { %v5690_v55 = vcombine.low %v2615_v7, %v2625_v51 }
 0x120   : > { %v2692_v20 = vpop.permute.xlu1 %2691  ;;  %vm3317_vm4 = vcmp.gt.s32.totalorder %v7753_v16, 0 }
 0x121   : > { %v1094_v15 = vpop.permute.xlu0 %1093  ;;  %2727 = vst.msk [vmem:[#allocation2 + $0x50] sm:$0xff] %vm2716_vm13, %v2692_v20  ;;  %1274 = vrot.lane.b32.xlu0 %v6143_v46, %s6190_s25  ;;  %2213 = vrot.lane.b32.xlu1 %v6144_v30, %s6191_s26  ;;  %vm3326_vm6 = vmand %vm7762_vm3, %vm3317_vm4  ;;  %s6201_s25 = smov 56  }
 0x122   : > { %1132 = vst.msk [vmem:[#allocation2 + $0x38] sm:$0xff] %vm1124_vm8, %v1094_v15  ;;  %v7759_v15 = vld [vmem:[%s8742_s2] ss:$0 sm:$0xff] }
 0x124   : > { %v2978_v57 = vpop.permute.xlu1 %2977 }
 0x125   : > { %v1261_v21 = vpop.permute.xlu0 %1260  ;;  %3013 = vst.msk [vmem:[#allocation2 + $0x50] sm:$0xff] %vm8749_vm14, %v2978_v57  ;;  %2046 = vrot.lane.b32.xlu0 %v5590_v33, %s6194_s29  ;;  %2985 = vrot.lane.b32.xlu1 %v5755_v5, %s6193_s28  ;;  %s6202_s29 = smov 64  }
 0x126   : > { %1299 = vst.msk [vmem:[#allocation2 + $0x38] sm:$0xff] %vm1291_vm9, %v1261_v21 }
 0x128   : > { %v2033_v48 = vpop.permute.xlu1 %2032 }
 0x129   : > { %2699 = vrot.lane.b32.xlu0 %v5690_v55, %s6197_s7 }
 0x12b   : > { %v1747_v42 = vpop.permute.xlu0 %1746 }
 0x12c   : > { %v3028_v14 = vld [vmem:[#allocation2 + $0x50] sm:$0xff]  ;;  %1785 = vst.msk [vmem:[#allocation2 + $0x38] sm:$0xff] %vm1777_vm10, %v1747_v42  ;;  %v2200_v32 = vpop.permute.xlu1 %2199 }
 0x12d   : > { %6029 = vmatmul.mubr.msk.bf16.vlgmr.msra.gmra.mrb[0].mxu1 %vm3060_vm0, %v3028_v14  ;;  %2071 = vst.msk [vmem:[#allocation2 + $0x38] sm:$0xff] %vm2063_vm11, %v2033_v48 }
 0x12e   : > { %6032 = vmatprep.mubr.msk.bf16.mxu1 %vm6199_vm1, %v6198_v23  ;;  %2238 = vst.msk [vmem:[#allocation2 + $0x38] sm:$0xff] %vm2230_vm12, %v2200_v32  ;;  %v7777_v32 = vadd.s32 16, %v7753_v16 }
 0x12f   : > { %v813_v34 = vpop.permute.xlu0 %812 }
 0x130   : > { %847 = vst.msk [vmem:[#allocation2 + $0x58] sm:$0xff] %vm835_vm7, %v813_v34 }
 0x133   : > { %v2686_v61 = vpop.permute.xlu1 %2685 }
 0x134   : > { %v1102_v24 = vpop.permute.xlu0 %1101  ;;  %2724 = vst.msk [vmem:[#allocation2 + $0x38] sm:$0xff] %vm2716_vm13, %v2686_v61 }
 0x135   : > { %1136 = vst.msk [vmem:[#allocation2 + $0x58] sm:$0xff] %vm1124_vm8, %v1102_v24 }
 0x137   : > { %v2972_v26 = vpop.permute.xlu1 %2971 }
 0x138   : > { %v1269_v37 = vpop.permute.xlu0 %1268  ;;  %3010 = vst.msk [vmem:[#allocation2 + $0x38] sm:$0xff] %vm8749_vm14, %v2972_v26 }
 0x139   : > { %1303 = vst.msk [vmem:[#allocation2 + $0x58] sm:$0xff] %vm1291_vm9, %v1269_v37 }
 0x13b   : > { %v2041_v10 = vpop.permute.xlu1 %2040 }
 0x13d   : > { %v1755_v2 = vpop.permute.xlu0 %1754 }
 0x13e   : > { %1789 = vst.msk [vmem:[#allocation2 + $0x58] sm:$0xff] %vm1777_vm10, %v1755_v2 }
 0x13f   : > { %2075 = vst.msk [vmem:[#allocation2 + $0x58] sm:$0xff] %vm2063_vm11, %v2041_v10  ;;  %v2208_v58 = vpop.permute.xlu1 %2207  ;;  %v3025_v52 = vld [vmem:[#allocation2 + $0x38] sm:$0xff] }
 0x140   : > { %2242 = vst.msk [vmem:[#allocation2 + $0x58] sm:$0xff] %vm2230_vm12, %v2208_v58  ;;  %6017 = vmatmul.mubr.msk.bf16.gmra.mrb[28].mxu0 %vm3060_vm0, %v3025_v52 }
 0x141   : > { %v807_v19 = vpop.permute.xlu0 %806  ;;  %6020 = vmatprep.mubr.msk.bf16.mxu0 %vm6199_vm1, %v6198_v23 }
 0x142   : > { %844 = vst.msk [vmem:[#allocation2 + $0x40] sm:$0xff] %vm835_vm7, %v807_v19 }
 0x143   : > { %v2694_v13 = vpop.permute.xlu1 %2693 }
 0x144   : > { %2728 = vst.msk [vmem:[#allocation2 + $0x58] sm:$0xff] %vm2716_vm13, %v2694_v13 }
 0x145   : > { %v1096_v9 = vpop.permute.xlu0 %1095 }
 0x146   : > { %1133 = vst.msk [vmem:[#allocation2 + $0x40] sm:$0xff] %vm1124_vm8, %v1096_v9 }
 0x147   : > { %v2980_v35 = vpop.permute.xlu1 %2979 }
 0x148   : > { %3014 = vst.msk [vmem:[#allocation2 + $0x58] sm:$0xff] %vm8749_vm14, %v2980_v35 }
 0x149   : > { %v1263_v11 = vpop.permute.xlu0 %1262 }
 0x14a   : > { %1300 = vst.msk [vmem:[#allocation2 + $0x40] sm:$0xff] %vm1291_vm9, %v1263_v11 }
 0x14b   : > { %v2035_v40 = vpop.permute.xlu1 %2034 }
 0x14d   : > { %v1749_v49 = vpop.permute.xlu0 %1748 }
 0x14e   : > { %1786 = vst.msk [vmem:[#allocation2 + $0x40] sm:$0xff] %vm1777_vm10, %v1749_v49 }
 0x14f   : > { %2072 = vst.msk [vmem:[#allocation2 + $0x40] sm:$0xff] %vm2063_vm11, %v2035_v40  ;;  %v2202_v3 = vpop.permute.xlu1 %2201  ;;  %v3029_v27 = vld [vmem:[#allocation2 + $0x58] sm:$0xff] }
 0x150   : > { %2239 = vst.msk [vmem:[#allocation2 + $0x40] sm:$0xff] %vm2230_vm12, %v2202_v3  ;;  %6033 = vmatmul.mubr.msk.bf16.gmra.mrb[4].mxu1 %vm3060_vm0, %v3029_v27 }
 0x151   : > { %v815_v62 = vpop.permute.xlu0 %814  ;;  %6036 = vmatprep.mubr.msk.bf16.mxu1 %vm6199_vm1, %v6198_v23 }
 0x152   : > { %848 = vst.msk [vmem:[#allocation2 + $0x60] sm:$0xff] %vm835_vm7, %v815_v62 }
 0x155   : > { %v2688_v22 = vpop.permute.xlu1 %2687 }
 0x156   : > { %v1104_v31 = vpop.permute.xlu0 %1103  ;;  %2725 = vst.msk [vmem:[#allocation2 + $0x40] sm:$0xff] %vm2716_vm13, %v2688_v22 }
 0x157   : > { %1137 = vst.msk [vmem:[#allocation2 + $0x60] sm:$0xff] %vm1124_vm8, %v1104_v31 }
 0x159   : > { %v2974_v39 = vpop.permute.xlu1 %2973 }
 0x15a   : > { %v1271_v29 = vpop.permute.xlu0 %1270  ;;  %3011 = vst.msk [vmem:[#allocation2 + $0x40] sm:$0xff] %vm8749_vm14, %v2974_v39 }
 0x15b   : > { %1304 = vst.msk [vmem:[#allocation2 + $0x60] sm:$0xff] %vm1291_vm9, %v1271_v29 }
 0x15d   : > { %v2043_v28 = vpop.permute.xlu1 %2042 }
 0x160   : > { %v1757_v36 = vpop.permute.xlu0 %1756 }
 0x161   : > { %1790 = vst.msk [vmem:[#allocation2 + $0x60] sm:$0xff] %vm1777_vm10, %v1757_v36  ;;  %v3026_v54 = vld [vmem:[#allocation2 + $0x40] sm:$0xff]  ;;  %v2210_v60 = vpop.permute.xlu1 %2209 }
 0x162   : > { %2076 = vst.msk [vmem:[#allocation2 + $0x60] sm:$0xff] %vm2063_vm11, %v2043_v28  ;;  %6021 = vmatmul.mubr.msk.bf16.gmra.mrb[32].mxu0 %vm3060_vm0, %v3026_v54 }
 0x163   : > { %2243 = vst.msk [vmem:[#allocation2 + $0x60] sm:$0xff] %vm2230_vm12, %v2210_v60  ;;  %6024 = vmatprep.mubr.msk.bf16.mxu0 %vm6199_vm1, %v6198_v23 }
 0x164   : > { %v809_v12 = vpop.permute.xlu0 %808 }
 0x165   : > { %845 = vst.msk [vmem:[#allocation2 + $0x48] sm:$0xff] %vm835_vm7, %v809_v12 }
 0x168   : > { %v2696_v41 = vpop.permute.xlu1 %2695 }
 0x169   : > { %v1098_v43 = vpop.permute.xlu0 %1097  ;;  %2729 = vst.msk [vmem:[#allocation2 + $0x60] sm:$0xff] %vm2716_vm13, %v2696_v41 }
 0x16a   : > { %1134 = vst.msk [vmem:[#allocation2 + $0x48] sm:$0xff] %vm1124_vm8, %v1098_v43 }
 0x16c   : > { %v2982_v47 = vpop.permute.xlu1 %2981 }
 0x16d   : > { %v1265_v18 = vpop.permute.xlu0 %1264  ;;  %3015 = vst.msk [vmem:[#allocation2 + $0x60] sm:$0xff] %vm8749_vm14, %v2982_v47 }
 0x16e   : > { %1301 = vst.msk [vmem:[#allocation2 + $0x48] sm:$0xff] %vm1291_vm9, %v1265_v18 }
 0x170   : > { %v2037_v38 = vpop.permute.xlu1 %2036 }
 0x173   : > { %v1751_v8 = vpop.permute.xlu0 %1750 }
 0x174   : > { %1787 = vst.msk [vmem:[#allocation2 + $0x48] sm:$0xff] %vm1777_vm10, %v1751_v8  ;;  %v2204_v1 = vpop.permute.xlu1 %2203  ;;  %v3030_v56 = vld [vmem:[#allocation2 + $0x60] sm:$0xff] }
 0x175   : > { %2073 = vst.msk [vmem:[#allocation2 + $0x48] sm:$0xff] %vm2063_vm11, %v2037_v38  ;;  %6037 = vmatmul.mubr.msk.bf16.gmra.mrb[8].mxu1 %vm3060_vm0, %v3030_v56 }
 0x176   : > { %2240 = vst.msk [vmem:[#allocation2 + $0x48] sm:$0xff] %vm2230_vm12, %v2204_v1  ;;  %6040 = vmatprep.mubr.msk.bf16.mxu1 %vm6199_vm1, %v6198_v23 }
 0x177   : > { %v817_v53 = vpop.permute.xlu0 %816 }
 0x178   : > { %849 = vst.msk [vmem:[#allocation2 + $0x68] sm:$0xff] %vm835_vm7, %v817_v53 }
 0x179   : > { %v2690_v17 = vpop.permute.xlu1 %2689 }
 0x17a   : > { %2726 = vst.msk [vmem:[#allocation2 + $0x48] sm:$0xff] %vm2716_vm13, %v2690_v17 }
 0x17b   : > { %v1106_v44 = vpop.permute.xlu0 %1105 }
 0x17c   : > { %1138 = vst.msk [vmem:[#allocation2 + $0x68] sm:$0xff] %vm1124_vm8, %v1106_v44 }
 0x17d   : > { %v2976_v46 = vpop.permute.xlu1 %2975 }
 0x17e   : > { %3012 = vst.msk [vmem:[#allocation2 + $0x48] sm:$0xff] %vm8749_vm14, %v2976_v46 }
 0x17f   : > { %v1273_v59 = vpop.permute.xlu0 %1272 }
 0x180   : > { %1305 = vst.msk [vmem:[#allocation2 + $0x68] sm:$0xff] %vm1291_vm9, %v1273_v59 }
 0x181   : > { %v2212_v30 = vpop.permute.xlu1 %2211 }
 0x183   : > { %v1759_v45 = vpop.permute.xlu0 %1758 }
 0x184   : > { %1791 = vst.msk [vmem:[#allocation2 + $0x68] sm:$0xff] %vm1777_vm10, %v1759_v45 }
 0x185   : > { %v3027_v6 = vld [vmem:[#allocation2 + $0x48] sm:$0xff]  ;;  %v2984_v25 = vpop.permute.xlu1 %2983 }
 0x186   : > { %6025 = vmatmul.mubr.msk.bf16.gmra.mrb[36].mxu0 %vm3060_vm0, %v3027_v6 }
 0x187   : > { %v2045_v20 = vpop.permute.xlu0 %2044 }
 0x188   : > { %2077 = vst.msk [vmem:[#allocation2 + $0x68] sm:$0xff] %vm2063_vm11, %v2045_v20  ;;  %v3144_v7 = vpop.f32.mrb[0].mxu0 }
 0x189   : > { %2244 = vst.msk [vmem:[#allocation2 + $0x68] sm:$0xff] %vm2230_vm12, %v2212_v30  ;;  %v1108_v5 = vpop.permute.xlu1 %1107  ;;  %v3145_v51 = vadd.f32 %v7759_v15, %v3144_v7  ;;  %v5990_v57 = vpop.f32.mrb[1].mxu0 }
 0x18a   : > { %v3147_v55 = vpop.f32.mrb[2].mxu0 }
 0x18b   : > { %v2698_v21 = vpop.permute.xlu0 %2697  ;;  %v3263_v48 = vmax.f32 %v3145_v51, 0.0  ;;  %v3148_v42 = vadd.f32 %v7759_v15, %v3147_v55  ;;  %v5991_v14 = vpop.f32.mrb[3].mxu0 }
 0x18c   : > { %2730 = vst.msk [vmem:[#allocation2 + $0x68] sm:$0xff] %vm2716_vm13, %v2698_v21 }
 0x18d   : > { %3016 = vst.msk [vmem:[#allocation2 + $0x68] sm:$0xff] %vm8749_vm14, %v2984_v25  ;;  %v3353_v34 = vsel %vm3326_vm6, %v3263_v48, 0.0  ;;  %v3264_v61 = vmax.f32 %v3148_v42, 0.0  ;;  %vm3322_vm14 = vcmp.lt.s32.totalorder %v7777_v32, 17  ;;  %vm4656_vm6 = vcmask 458112  }
 0x18e   : > { %v5921_v37 = vpack.c.bf16 %v3353_v34, %v3353_v34 }
 0x18f   : > { %v819_v24 = vpop.permute.xlu0 %818  ;;  %v1761_v26 = vpop.permute.xlu1 %1760  ;;  %v3354_v10 = vsel %vm7762_vm3, %v3264_v61, 0.0 }
 0x190   : > { %850 = vst.msk [vmem:[#allocation2 + $0x70] sm:$0xff] %vm835_vm7, %v819_v24  ;;  %v5922_v2 = vpack.c.bf16 %v3354_v10, %v3354_v10  ;;  %vm3328_vm7 = vmand %vm7762_vm3, %vm3322_vm14  ;;  %vm4405_vm3 = vcmask 326912  }
 0x191   : > { %1139 = vst.msk [vmem:[#allocation2 + $0x70] sm:$0xff] %vm1124_vm8, %v1108_v5  ;;  %vm3608_vm8 = vcmask 64512  }
 0x192   : > { %3514 = vst.msk [vmem:[#allocation3] sm:$0xf] %vm3513_vm15, %v5921_v37  ;;  %3515 = vst.msk [vmem:[#allocation3 + $0x4] sm:$0xf] %vm3513_vm15, %v5922_v2 }
 0x193   : > { %v1275_v52 = vpop.permute.xlu0 %1274  ;;  %v2214_v9 = vpop.permute.xlu1 %2213 }
 0x194   : > { %v3152_v58 = vpop.f32.mrb[4].mxu0  ;;  %1306 = vst.msk [vmem:[#allocation2 + $0x70] sm:$0xff] %vm1291_vm9, %v1275_v52  ;;  %v3031_v13 = vld [vmem:[#allocation2 + $0x68] sm:$0xff]  ;;  %vm8761_vm9 = vcmask 294144  }
 0x195   : > { %v3153_v19 = vadd.f32 %v7759_v15, %v3152_v58  ;;  %v5994_v35 = vpop.f32.mrb[5].mxu0  ;;  %1792 = vst.msk [vmem:[#allocation2 + $0x70] sm:$0xff] %vm1777_vm10, %v1761_v26  ;;  %6041 = vmatmul.mubr.msk.bf16.gmra.mrb[12].mxu1 %vm3060_vm0, %v3031_v13 }
 0x196   : > { %v3155_v40 = vpop.f32.mrb[6].mxu0  ;;  %6044 = vmatprep.mubr.msk.bf16.mxu1 %vm6199_vm1, %v6198_v23  ;;  %vm4132_vm1 = vcmask 261312  }
 0x197   : > { %v3265_v11 = vmax.f32 %v3153_v19, 0.0  ;;  %v3156_v49 = vadd.f32 %v7759_v15, %v3155_v40  ;;  %v5995_v3 = vpop.f32.mrb[7].mxu0  ;;  %v2047_v27 = vpop.permute.xlu0 %2046 }
 0x198   : > { %2078 = vst.msk [vmem:[#allocation2 + $0x70] sm:$0xff] %vm2063_vm11, %v2047_v27  ;;  %v2986_v39 = vpop.permute.xlu1 %2985 }
 0x199   : > { %v3355_v62 = vsel %vm3328_vm7, %v3265_v11, 0.0  ;;  %v3266_v31 = vmax.f32 %v3156_v49, 0.0  ;;  %2245 = vst.msk [vmem:[#allocation2 + $0x70] sm:$0xff] %vm2230_vm12, %v2214_v9  ;;  %v6166_v28 = vld [vmem:[#allocation3] sm:$0xff]   ;;  %vm5090_vm7 = vcmask 589312  }
 0x19a   : > { %v5923_v22 = vpack.c.bf16 %v3355_v62, %v3355_v62  ;;  %3609 = vst.msk [vmem:[#allocation4] sm:$0xff] %vm3608_vm8, %v6166_v28 }
 0x19b   : > { %v3356_v29 = vsel %vm3317_vm4, %v3266_v31, 0.0  ;;  %v2700_v23 = vpop.permute.xlu0 %2699 }
 0x19c   : > { %3516 = vst.msk [vmem:[#allocation3 + $0x8] sm:$0xf] %vm3513_vm15, %v5923_v22  ;;  %v5924_v36 = vpack.c.bf16 %v3356_v29, %v3356_v29 }
 0x19d   : > { %2731 = vst.msk [vmem:[#allocation2 + $0x70] sm:$0xff] %vm2716_vm13, %v2700_v23  ;;  %vm5175_vm13 = vcmask 1043456  }
 0x19e   : > { %3017 = vst.msk [vmem:[#allocation2 + $0x70] sm:$0xff] %vm8761_vm9, %v2986_v39 }
 0x19f   : > { %3517 = vst.msk [vmem:[#allocation3 + $0xc] sm:$0xf] %vm3513_vm15, %v5924_v36 }
 0x1a4   : > { %v3160_v54 = vpop.f32.mrb[8].mxu0 }
 0x1a5   : > { %v3161_v60 = vadd.f32 %v7759_v15, %v3160_v54  ;;  %v5998_v12 = vpop.f32.mrb[9].mxu0  ;;  %v3032_v41 = vld [vmem:[#allocation2 + $0x70] sm:$0xff] }
 0x1a6   : > { %v3163_v43 = vpop.f32.mrb[10].mxu0  ;;  %6045 = vmatmul.mubr.msk.bf16.gmra.mrb[16].mxu1 %vm3060_vm0, %v3032_v41  ;;  %vm4042_vm0 = vcmask 195712  }
 0x1a7   : > { %v3267_v47 = vmax.f32 %v3161_v60, 0.0  ;;  %v3164_v18 = vadd.f32 %v7759_v15, %v3163_v43  ;;  %v5999_v38 = vpop.f32.mrb[11].mxu0 }
 0x1a9   : > { %v5925_v8 = vpack.c.bf16 %v3267_v47, %v3267_v47  ;;  %v3268_v1 = vmax.f32 %v3164_v18, 0.0 }
 0x1ab   : > { %3518 = vst.msk [vmem:[#allocation3 + $0x10] sm:$0xf] %vm3513_vm15, %v5925_v8  ;;  %v3358_v56 = vsel %vm3322_vm14, %v3268_v1, 0.0 }
 0x1ac   : > { %v5926_v53 = vpack.c.bf16 %v3358_v56, %v3358_v56 }
 0x1ae   : > { %3519 = vst.msk [vmem:[#allocation3 + $0x14] sm:$0xf] %vm3513_vm15, %v5926_v53 }
 0x1b2   : > { %v6170_v17 = vld [vmem:[#allocation3 + $0xc] sm:$0xff]  }
 0x1b3   : > { %3610 = vst.msk [vmem:[#allocation4 + $0x8] sm:$0xff] %vm3608_vm8, %v6170_v17 }
 0x1b5   : > { %v3168_v44 = vpop.f32.mrb[12].mxu0 }
 0x1b6   : > { %v3169_v46 = vadd.f32 %v7759_v15, %v3168_v44  ;;  %v6002_v59 = vpop.f32.mrb[13].mxu0 }
 0x1b7   : > { %v3171_v4 = vpop.f32.mrb[14].mxu0 }
 0x1b8   : > { %v3269_v30 = vmax.f32 %v3169_v46, 0.0  ;;  %v3172_v45 = vadd.f32 %v7759_v15, %v3171_v4  ;;  %v6003_v6 = vpop.f32.mrb[15].mxu0 }
 0x1ba   : > { %v3359_v25 = vsel %vm3317_vm4, %v3269_v30, 0.0  ;;  %v3270_v50 = vmax.f32 %v3172_v45, 0.0 }
 0x1bb   : > { %v5927_v20 = vpack.c.bf16 %v3359_v25, %v3359_v25 }
 0x1bc   : > { %v5928_v33 = vpack.c.bf16 %v3270_v50, %v3270_v50  ;;  %v3617_v50 = vld [vmem:[#allocation3] sm:$0xf] }
 0x1bd   : > { %3520 = vst.msk [vmem:[#allocation3 + $0x18] sm:$0xf] %vm3513_vm15, %v5927_v20  ;;  %v3618_v20 = vld [vmem:[#allocation3 + $0x4] sm:$0xf] }
 0x1be   : > { %3521 = vst.msk [vmem:[#allocation3 + $0x1c] sm:$0xf] %vm3513_vm15, %v5928_v33 }
 0x1c5   : > { %v6171_v57 = vld [vmem:[#allocation3 + $0x18] sm:$0xff]  }
 0x1c6   : > { %3611 = vst.msk [vmem:[#allocation4 + $0x10] sm:$0xff] %vm3608_vm8, %v6171_v57  ;;  %v3645_v57 = vshll.u32 %v3617_v50, 16 }
 0x1c8   : > { %v3176_v5 = vpop.f32.mrb[16].mxu0 }
 0x1c9   : > { %v3177_v7 = vadd.f32 %v7759_v15, %v3176_v5  ;;  %v6006_v51 = vpop.f32.mrb[17].mxu0 }
 0x1ca   : > { %v3179_v21 = vpop.f32.mrb[18].mxu0  ;;  %v3642_v51 = vshrl.u32 %v3617_v50, 16 }
 0x1cb   : > { %v3271_v55 = vmax.f32 %v3177_v7, 0.0  ;;  %v3180_v48 = vadd.f32 %v7759_v15, %v3179_v21  ;;  %v6007_v42 = vpop.f32.mrb[19].mxu0 }
 0x1cd   : > { %v3361_v14 = vsel %vm3322_vm14, %v3271_v55, 0.0  ;;  %v3272_v34 = vmax.f32 %v3180_v48, 0.0  ;;  %v3651_v55 = vshll.u32 %v3618_v20, 16  ;;  %v3655_v48 = vshrl.u32 %v3618_v20, 16 }
 0x1ce   : > { %v5929_v61 = vpack.c.bf16 %v3361_v14, %v3361_v14  ;;  %v3644_v14 = vrot.slane %v3642_v51, 4 }
 0x1cf   : > { %v3362_v24 = vsel %vm3317_vm4, %v3272_v34, 0.0  ;;  %v3647_v34 = vrot.slane %v3645_v57, 5 }
 0x1d0   : > { %3522 = vst.msk [vmem:[#allocation3 + $0x20] sm:$0xf] %vm3513_vm15, %v5929_v61  ;;  %v5930_v26 = vpack.c.bf16 %v3362_v24, %v3362_v24  ;;  %v7859_v61 = vld [vmem:[#allocation3 + $0x4] sm:$0xf]  ;;  %v7861_v24 = vrot.slane %v3651_v55, 5 }
 0x1d2   : > { %3523 = vst.msk [vmem:[#allocation3 + $0x24] sm:$0xf] %vm3513_vm15, %v5930_v26  ;;  %v3657_v26 = vrot.slane %v3655_v48, 4 }
 0x1d8   : > { %v3184_v37 = vpop.f32.mrb[20].mxu0 }
 0x1d9   : > { %v3185_v10 = vadd.f32 %v7759_v15, %v3184_v37  ;;  %v6010_v2 = vpop.f32.mrb[21].mxu0  ;;  %v3619_v37 = vld [vmem:[#allocation3 + $0x8] sm:$0x1] }
 0x1da   : > { %v3187_v58 = vpop.f32.mrb[22].mxu0  ;;  %v3648_v2 = vor.u32 %v3647_v34, %v3644_v14 }
 0x1db   : > { %v3273_v52 = vmax.f32 %v3185_v10, 0.0  ;;  %v3188_v19 = vadd.f32 %v7759_v15, %v3187_v58  ;;  %v6011_v13 = vpop.f32.mrb[23].mxu0  ;;  %v3940_v10 = vrot.slane %v7859_v61, 5  ;;  %v7864_v58 = vld [vmem:[#allocation3] sm:$0xe] }
 0x1dc   : > { %v7867_v13 = vld [vmem:[#allocation3 + $0x8] sm:$0x1] }
 0x1dd   : > { %v5931_v9 = vpack.c.bf16 %v3273_v52, %v3273_v52  ;;  %v3274_v35 = vmax.f32 %v3188_v19, 0.0  ;;  %v3658_v52 = vor.u32 %v3657_v26, %v7861_v24 }
 0x1df   : > { %3524 = vst.msk [vmem:[#allocation3 + $0x28] sm:$0xf] %vm3513_vm15, %v5931_v9  ;;  %v3364_v11 = vsel %vm3322_vm14, %v3274_v35, 0.0  ;;  %v3661_v9 = vshll.u32 %v3619_v37, 16 }
 0x1e0   : > { %v5932_v40 = vpack.c.bf16 %v3364_v11, %v3364_v11 }
 0x1e2   : > { %3525 = vst.msk [vmem:[#allocation3 + $0x2c] sm:$0xf] %vm3513_vm15, %v5932_v40  ;;  %v4141_v40 = vld [vmem:[#allocation3 + $0xc] sm:$0xf] }
 0x1e6   : > { %v6176_v49 = vld [vmem:[#allocation3 + $0x24] sm:$0xff]  }
 0x1e7   : > { %3612 = vst.msk [vmem:[#allocation4 + $0x18] sm:$0xff] %vm3608_vm8, %v6176_v49 }
 0x1eb   : > { %v3192_v3 = vpop.f32.mrb[24].mxu0 }
 0x1ec   : > { %v3193_v27 = vadd.f32 %v7759_v15, %v3192_v3  ;;  %v6014_v62 = vpop.f32.mrb[25].mxu0  ;;  %v5824_v3 = vrot.slane %v7864_v58, 9 }
 0x1ed   : > { %v3195_v22 = vpop.f32.mrb[26].mxu0  ;;  %v7873_v62 = vrot.slane %v3648_v2, 4 }
 0x1ee   : > { %v3275_v31 = vmax.f32 %v3193_v27, 0.0  ;;  %v3196_v39 = vadd.f32 %v7759_v15, %v3195_v22  ;;  %v6015_v29 = vpop.f32.mrb[27].mxu0  ;;  %v3942_v27 = vrot.slane %v3940_v10, 4 }
 0x1ef   : > { %v3943_v29 = vrot.slane %v7867_v13, 5 }
 0x1f0   : > { %v3365_v28 = vsel %vm3317_vm4, %v3275_v31, 0.0  ;;  %v3276_v23 = vmax.f32 %v3196_v39, 0.0 }
 0x1f1   : > { %v5933_v36 = vpack.c.bf16 %v3365_v28, %v3365_v28  ;;  %v7877_v28 = vrot.slane %v3658_v52, 4 }
 0x1f2   : > { %v5934_v54 = vpack.c.bf16 %v3276_v23, %v3276_v23  ;;  %v3620_v23 = vld [vmem:[#allocation3 + $0xc] sm:$0xf] }
 0x1f3   : > { %3526 = vst.msk [vmem:[#allocation3 + $0x30] sm:$0xf] %vm3513_vm15, %v5933_v36  ;;  %v7879_v36 = vrot.slane %v3661_v9, 5 }
 0x1f4   : > { %3527 = vst.msk [vmem:[#allocation3 + $0x34] sm:$0xf] %vm3513_vm15, %v5934_v54  ;;  %v7881_v54 = vld [vmem:[#allocation3 + $0xc] sm:$0xe] }
 0x1fb   : > { %v6178_v60 = vld [vmem:[#allocation3 + $0x30] sm:$0xff]  }
 0x1fc   : > { %3613 = vst.msk [vmem:[#allocation4 + $0x20] sm:$0xff] %vm3608_vm8, %v6178_v60  ;;  %v7883_v60 = vld [vmem:[#allocation3 + $0x10] sm:$0xf] }
 0x200   : > { %v3224_v12 = vpop.f32.mrb[0].mxu1 }
 0x201   : > { %v3225_v41 = vadd.f32 %v7759_v15, %v3224_v12  ;;  %v6030_v43 = vpop.f32.mrb[1].mxu1  ;;  %v4166_v12 = vshrl.u32 %v4141_v40, 16 }
 0x202   : > { %v3227_v47 = vpop.f32.mrb[2].mxu1 }
 0x203   : > { %v3283_v18 = vmax.f32 %v3225_v41, 0.0  ;;  %v3228_v38 = vadd.f32 %v7759_v15, %v3227_v47  ;;  %v6031_v8 = vpop.f32.mrb[3].mxu1 }
 0x204   : > { %v7885_v8 = vld [vmem:[#allocation3 + $0x10] sm:$0xf] }
 0x205   : > { %v3373_v1 = vsel %vm3322_vm14, %v3283_v18, 0.0  ;;  %v3284_v56 = vmax.f32 %v3228_v38, 0.0  ;;  %v4169_v18 = vshll.u32 %v4141_v40, 16  ;;  %v3664_v40 = vsel %vm6320_vm5, %v7877_v28, %v7879_v36 }
 0x206   : > { %v5941_v53 = vpack.c.bf16 %v3373_v1, %v3373_v1  ;;  %v3666_v1 = vshrl.u32 %v3620_v23, 16 }
 0x207   : > { %v3374_v17 = vsel %vm3317_vm4, %v3284_v56, 0.0  ;;  %v3669_v56 = vshll.u32 %v3620_v23, 16  ;;  %v7906_v51 = vrot.slane %v4169_v18, 5 }
 0x208   : > { %3534 = vst.msk [vmem:[#allocation3 + $0x50] sm:$0xf] %vm3513_vm15, %v5941_v53  ;;  %v5942_v44 = vpack.c.bf16 %v3374_v17, %v3374_v17  ;;  %v4175_v17 = vshll.u32 %v7883_v60, 16  ;;  %v7908_v57 = vrot.slane %v3666_v1, 4 }
 0x20a   : > { %3535 = vst.msk [vmem:[#allocation3 + $0x54] sm:$0xf] %vm3513_vm15, %v5942_v44  ;;  %v7891_v44 = vld [vmem:[#allocation3 + $0x10] sm:$0xf]  ;;  %v7914_v48 = vrot.slane %v4175_v17, 5 }
 0x20b   : > { %v3947_v14 = vrot.slane %v7891_v44, 5 }
 0x211   : > { %v4680_v47 = vld [vmem:[#allocation3 + $0x54] sm:$0xf] }
 0x212   : > { %v3638_v38 = vld [vmem:[#allocation3 + $0x54] sm:$0xf] }
 0x213   : > { %v3200_v46 = vpop.f32.mrb[28].mxu0  ;;  %v3810_v50 = vshrl.u32 %v3638_v38, 16  ;;  %v3813_v20 = vshll.u32 %v3638_v38, 16  ;;  %v7912_v55 = vld [vmem:[#allocation3 + $0x54] sm:$0xf] }
 0x214   : > { %v3201_v59 = vadd.f32 %v7759_v15, %v3200_v46  ;;  %v6018_v4 = vpop.f32.mrb[29].mxu0  ;;  %v7893_v46 = vld [vmem:[#allocation3 + $0x10] sm:$0xf] }
 0x215   : > { %v3203_v30 = vpop.f32.mrb[30].mxu0  ;;  %v7895_v4 = vld [vmem:[#allocation3 + $0x54] sm:$0xe]  ;;  %v3675_v34 = vshll.u32 %v7893_v46, 16  ;;  %v3679_v58 = vshrl.u32 %v7893_v46, 16  ;;  %v7924_v13 = vrot.slane %v3813_v20, 5 }
 0x216   : > { %v3277_v45 = vmax.f32 %v3201_v59, 0.0  ;;  %v3204_v6 = vadd.f32 %v7759_v15, %v3203_v30  ;;  %v6019_v25 = vpop.f32.mrb[31].mxu0  ;;  %v4810_v30 = vshrl.u32 %v4680_v47, 16  ;;  %v5831_v26 = vrot.slane %v7895_v4, 9 }
 0x217   : > { %v7898_v25 = vld [vmem:[#allocation3 + $0x54] sm:$0xe] }
 0x218   : > { %v3367_v33 = vsel %vm3322_vm14, %v3277_v45, 0.0  ;;  %v3278_v5 = vmax.f32 %v3204_v6, 0.0  ;;  %v5856_v45 = vrot.slane %v7881_v54, 9  ;;  %v4813_v6 = vshll.u32 %v4680_v47, 16  ;;  %v4144_v54 = vld [vmem:[#allocation3 + $0x18] sm:$0xf] }
 0x219   : > { %v5935_v7 = vpack.c.bf16 %v3367_v33, %v3367_v33  ;;  %v7900_v33 = vrot.slane %v4166_v12, 4  ;;  %v4812_v37 = vrot.slane %v4810_v30, 4  ;;  %v5893_v2 = vrot.slane %v7898_v25, 9 }
 0x21a   : > { %v3368_v21 = vsel %vm3317_vm4, %v3278_v5, 0.0  ;;  %v7903_v5 = vld [vmem:[#allocation3 + $0x54] sm:$0xe]  ;;  %v4815_v52 = vrot.slane %v4813_v6, 5  ;;  %v4313_v12 = vshll.u32 %v7912_v55, 16 }
 0x21b   : > { %3528 = vst.msk [vmem:[#allocation3 + $0x38] sm:$0xf] %vm3513_vm15, %v5935_v7  ;;  %v5936_v42 = vpack.c.bf16 %v3368_v21, %v3368_v21  ;;  %v4464_v7 = vrot.slane %v7885_v8, 5  ;;  %v7910_v21 = vrot.slane %v3669_v56, 5  ;;  %v5862_v9 = vrot.slane %v7903_v5, 9 }
 0x21c   : > { %v4816_v18 = vor.u32 %v4815_v52, %v4812_v37  ;;  %v4172_v1 = vor.u32 %v7906_v51, %v7900_v33  ;;  %v3681_v5 = vrot.slane %v3679_v58, 4  ;;  %v4666_v51 = vld [vmem:[#allocation3 + $0x1c] sm:$0xf] }
 0x21d   : > { %3529 = vst.msk [vmem:[#allocation3 + $0x3c] sm:$0xf] %vm3513_vm15, %v5936_v42  ;;  %v4179_v42 = vshrl.u32 %v7883_v60, 16  ;;  %v7999_v60 = vld [vmem:[#allocation3 + $0x14] sm:$0x1] }
 0x21e   : > { %v8009_v58 = vrot.slane %v4172_v1, 4  ;;  %v3950_v33 = vrot.slane %v7999_v60, 5 }
 0x223   : > { %v3232_v19 = vpop.f32.mrb[4].mxu1 }
 0x224   : > { %v3233_v35 = vadd.f32 %v7759_v15, %v3232_v19  ;;  %v6034_v11 = vpop.f32.mrb[5].mxu1  ;;  %v7922_v19 = vrot.slane %v3810_v50, 4 }
 0x225   : > { %v3235_v49 = vpop.f32.mrb[6].mxu1  ;;  %v3944_v11 = vsel %vm6249_vm2, %v3942_v27, %v3943_v29  ;;  %v3654_v29 = vsel %vm6320_vm5, %v7873_v62, %v7861_v24 }
 0x226   : > { %v3285_v22 = vmax.f32 %v3233_v35, 0.0  ;;  %v3236_v31 = vadd.f32 %v7759_v15, %v3235_v49  ;;  %v6035_v39 = vpop.f32.mrb[7].mxu1  ;;  %v4310_v49 = vshrl.u32 %v7912_v55, 16  ;;  %v3816_v62 = vor.u32 %v7924_v13, %v7922_v19 }
 0x228   : > { %v5943_v41 = vpack.c.bf16 %v3285_v22, %v3285_v22  ;;  %v3286_v43 = vmax.f32 %v3236_v31, 0.0  ;;  %v3941_v31 = vsel %vm6249_vm2, %v5824_v3, %v3940_v10  ;;  %v4312_v25 = vrot.slane %v4310_v49, 4 }
 0x229   : > { %v5832_v10 = vcombine.low %v3941_v31, %v3944_v11 }
 0x22a   : > { %3536 = vst.msk [vmem:[#allocation3 + $0x58] sm:$0xf] %vm3513_vm15, %v5943_v41  ;;  %v3376_v53 = vsel %vm3322_vm14, %v3286_v43, 0.0  ;;  %v5816_v43 = vcombine.low %v3654_v29, %v3664_v40 }
 0x22b   : > { %v5944_v59 = vpack.c.bf16 %v3376_v53, %v3376_v53 }
 0x22d   : > { %3537 = vst.msk [vmem:[#allocation3 + $0x5c] sm:$0xf] %vm3513_vm15, %v5944_v59 }
 0x231   : > { %v6152_v35 = vld [vmem:[#allocation3 + $0x54] sm:$0xff]  }
 0x232   : > { %v6153_v22 = vld [vmem:[#allocation3 + $0x54] sm:$0xff]   ;;  %4642 = vrot.lane.b32.xlu1 %v6152_v35, %s6200_s24 }
 0x233   : > { %v3912_v39 = vld [vmem:[#allocation3 + $0x58] sm:$0xf]  ;;  %4120 = vrot.lane.b32.xlu0 %v6153_v22, %s6191_s26 }
 0x234   : > { %v4681_v23 = vld [vmem:[#allocation3 + $0x58] sm:$0xf]  ;;  %v3989_v27 = vrot.slane %v3912_v39, 5  ;;  %v3913_v3 = vld [vmem:[#allocation3 + $0x5c] sm:$0x1] }
 0x235   : > { %v4819_v28 = vshll.u32 %v4681_v23, 16  ;;  %v4823_v36 = vshrl.u32 %v4681_v23, 16  ;;  %v4954_v41 = vld [vmem:[#allocation3 + $0x58] sm:$0xf]  ;;  %v4682_v47 = vld [vmem:[#allocation3 + $0x5c] sm:$0x1] }
 0x236   : > { %v6167_v61 = vld [vmem:[#allocation3 + $0x54] sm:$0xff]   ;;  %v4955_v38 = vld [vmem:[#allocation3 + $0x5c] sm:$0x1]  ;;  %v3208_v56 = vpop.f32.mrb[32].mxu0  ;;  %v3991_v53 = vrot.slane %v3989_v27, 4  ;;  %v3992_v17 = vrot.slane %v3913_v3, 5  ;;  %v3990_v52 = vsel %vm6249_vm2, %v5831_v26, %v3989_v27 }
 0x237   : > { %v4821_v59 = vrot.slane %v4819_v28, 5  ;;  %v3639_v24 = vld [vmem:[#allocation3 + $0x58] sm:$0xf]  ;;  %3616 = vst.msk [vmem:[#allocation4 + $0x38] sm:$0xff] %vm3608_vm8, %v6167_v61  ;;  %v3209_v4 = vadd.f32 %v7759_v15, %v3208_v56  ;;  %v6022_v30 = vpop.f32.mrb[33].mxu0  ;;  %v4825_v6 = vrot.slane %v4823_v36, 4  ;;  %4018 = vrot.lane.b32.xlu0 %v5832_v10, %s6196_s6 }
 0x238   : > { %v4829_v50 = vshll.u32 %v4682_v47, 16  ;;  %v5023_v20 = vrot.slane %v4954_v41, 5  ;;  %v3211_v37 = vpop.f32.mrb[34].mxu0  ;;  %v3993_v35 = vsel %vm6249_vm2, %v3991_v53, %v3992_v17  ;;  %v5026_v11 = vrot.slane %v4955_v38, 5  ;;  %v3640_v23 = vld [vmem:[#allocation3 + $0x5c] sm:$0x1] }
 0x239   : > { %v3819_v40 = vshll.u32 %v3639_v24, 16  ;;  %v3279_v22 = vmax.f32 %v3209_v4, 0.0  ;;  %v3212_v19 = vadd.f32 %v7759_v15, %v3211_v37  ;;  %v6023_v13 = vpop.f32.mrb[35].mxu0  ;;  %v5839_v31 = vcombine.low %v3990_v52, %v3993_v35  ;;  %v4433_v29 = vld [vmem:[#allocation3 + $0x58] sm:$0xf] }
 0x23a   : > { %v4826_v39 = vor.u32 %v4825_v6, %v4821_v59  ;;  %v4817_v28 = vrot.slane %v4816_v18, 4  ;;  %v4831_v36 = vrot.slane %v4829_v50, 5  ;;  %v5025_v41 = vrot.slane %v5023_v20, 4  ;;  %v4434_v53 = vld [vmem:[#allocation3 + $0x5c] sm:$0x1] }
 0x23b   : > { %v3821_v61 = vrot.slane %v3819_v40, 5  ;;  %v5937_v26 = vpack.c.bf16 %v3279_v22, %v3279_v22  ;;  %v3280_v27 = vmax.f32 %v3212_v19, 0.0  ;;  %4032 = vrot.lane.b32.xlu1 %v5839_v31, %s6196_s6  ;;  %v3823_v47 = vshrl.u32 %v3639_v24, 16  ;;  %v4160_v4 = vld [vmem:[#allocation3 + $0x58] sm:$0xf]  ;;  %3857 = vrot.lane.b32.xlu0 %v5816_v43, %s6192_s27 }
 0x23c   : > { %v4827_v3 = vrot.slane %v4826_v39, 4  ;;  %v4822_v38 = vsel %vm6320_vm5, %v4817_v28, %v4821_v59  ;;  %v5027_v10 = vsel %vm6249_vm2, %v5025_v41, %v5026_v11  ;;  %v3829_v56 = vshll.u32 %v3640_v23, 16  ;;  %v4161_v6 = vld [vmem:[#allocation3 + $0x5c] sm:$0x1]  ;;  %v7978_v13 = vld [vmem:[#allocation3 + $0xc] sm:$0xe] }
 0x23d   : > { %v4506_v17 = vrot.slane %v4433_v29, 5  ;;  %3530 = vst.msk [vmem:[#allocation3 + $0x40] sm:$0xf] %vm3513_vm15, %v5937_v26  ;;  %v3370_v18 = vsel %vm3322_vm14, %v3280_v27, 0.0  ;;  %v5024_v59 = vsel %vm6249_vm2, %v5893_v2, %v5023_v20  ;;  %v3825_v30 = vrot.slane %v3823_v47, 4 }
 0x23e   : > { %v4832_v24 = vsel %vm6320_vm5, %v4827_v3, %v4831_v36  ;;  %v5938_v50 = vpack.c.bf16 %v3370_v18, %v3370_v18  ;;  %v5901_v52 = vcombine.low %v5024_v59, %v5027_v10  ;;  %v3831_v35 = vrot.slane %v3829_v56, 5  ;;  %v4416_v28 = vld [vmem:[#allocation3 + $0x14] sm:$0x1] }
 0x23f   : > { %v5885_v37 = vcombine.low %v4822_v38, %v4832_v24  ;;  %v3826_v11 = vor.u32 %v3825_v30, %v3821_v61  ;;  %v4508_v40 = vrot.slane %v4506_v17, 4  ;;  %v4509_v22 = vrot.slane %v4434_v53, 5  ;;  %v3622_v56 = vld [vmem:[#allocation3 + $0x14] sm:$0x1] }
 0x240   : > { %v4319_v19 = vshll.u32 %v4160_v4, 16  ;;  %3531 = vst.msk [vmem:[#allocation3 + $0x44] sm:$0xf] %vm3513_vm15, %v5938_v50  ;;  %v4315_v2 = vrot.slane %v4313_v12, 5  ;;  %v4323_v43 = vshrl.u32 %v4160_v4, 16  ;;  %v4329_v20 = vshll.u32 %v4161_v6, 16  ;;  %5076 = vrot.lane.b32.xlu0 %v5901_v52, %s6202_s29 }
 0x241   : > { %4915 = vrot.lane.b32.xlu1 %v5885_v37, %s6201_s25  ;;  %v3817_v31 = vrot.slane %v3816_v62, 4  ;;  %v3827_v39 = vrot.slane %v3826_v11, 4  ;;  %v4510_v23 = vsel %vm6249_vm2, %v4508_v40, %v4509_v22  ;;  %v4507_v55 = vsel %vm6249_vm2, %v5862_v9, %v4506_v17  ;;  %v4143_v12 = vld [vmem:[#allocation3 + $0x14] sm:$0x1]  ;;  %v4665_v17 = vld [vmem:[#allocation3 + $0x18] sm:$0xf] }
 0x242   : > { %v4321_v29 = vrot.slane %v4319_v19, 5  ;;  %v4325_v49 = vrot.slane %v4323_v43, 4  ;;  %v4181_v36 = vrot.slane %v4179_v42, 4  ;;  %v7991_v41 = vrot.slane %v3675_v34, 5  ;;  %v6154_v4 = vld [vmem:[#allocation3 + $0xc] sm:$0xff]  }
 0x243   : > { %v3822_v62 = vsel %vm6320_vm5, %v3817_v31, %v3821_v61  ;;  %v3832_v26 = vsel %vm6320_vm5, %v3827_v39, %v3831_v35  ;;  %v5870_v27 = vcombine.low %v4507_v55, %v4510_v23  ;;  %v4316_v3 = vor.u32 %v4315_v2, %v4312_v25 }
 0x244   : > { %v5823_v9 = vcombine.low %v3822_v62, %v3832_v26  ;;  %v4326_v47 = vor.u32 %v4325_v49, %v4321_v29  ;;  %v4331_v38 = vrot.slane %v4329_v20, 5  ;;  %v4466_v42 = vrot.slane %v4464_v7, 4  ;;  %v6179_v1 = vld [vmem:[#allocation3 + $0x3c] sm:$0xff]  }
 0x245   : > { %4554 = vrot.lane.b32.xlu0 %v5870_v27, %s6203_s30  ;;  %v4467_v34 = vrot.slane %v4416_v28, 5  ;;  %v4185_v61 = vshll.u32 %v4143_v12, 16  ;;  %v5825_v10 = vrot.slane %v7978_v13, 9  ;;  %v3672_v53 = vor.u32 %v7910_v21, %v7908_v57  ;;  %3614 = vst.msk [vmem:[#allocation4 + $0x28] sm:$0xff] %vm3608_vm8, %v6179_v1  ;;  %v8039_v49 = vld [vmem:[#allocation3 + $0x1c] sm:$0xf] }
 0x246   : > { %3871 = vrot.lane.b32.xlu1 %v5823_v9, %s6192_s27  ;;  %v4327_v46 = vrot.slane %v4326_v47, 4  ;;  %v4465_v18 = vsel %vm6249_vm2, %v5856_v45, %v4464_v7  ;;  %v4182_v24 = vor.u32 %v4181_v36, %v7914_v48  ;;  %v3949_v59 = vrot.slane %v3947_v14, 4  ;;  %v8043_v26 = vld [vmem:[#allocation3 + $0x1c] sm:$0xf] }
 0x247   : > { %v4317_v30 = vrot.slane %v4316_v3, 4  ;;  %v3682_v8 = vor.u32 %v3681_v5, %v7991_v41  ;;  %v3685_v21 = vshll.u32 %v3622_v56, 16  ;;  %v4468_v45 = vsel %vm6249_vm2, %v4466_v42, %v4467_v34  ;;  %v4938_v3 = vld [vmem:[#allocation3 + $0x18] sm:$0xe]  ;;  %v8049_v47 = vld [vmem:[#allocation3 + $0x1c] sm:$0xf] }
 0x248   : > { %v4332_v57 = vsel %vm6320_vm5, %v4327_v46, %v4331_v38  ;;  %v3240_v6 = vpop.f32.mrb[8].mxu1  ;;  %v4187_v7 = vrot.slane %v4185_v61, 5  ;;  %v4690_v50 = vshrl.u32 %v4665_v17, 16  ;;  %v4693_v37 = vshll.u32 %v4665_v17, 16  ;;  %v3896_v46 = vld [vmem:[#allocation3 + $0x18] sm:$0xe] }
 0x249   : > { %4108 = vrot.lane.b32.xlu0 %v6154_v4, %s6191_s26  ;;  %v3241_v52 = vadd.f32 %v7759_v15, %v3240_v6  ;;  %v6038_v35 = vpop.f32.mrb[9].mxu1  ;;  %v4322_v11 = vsel %vm6320_vm5, %v4317_v30, %v4321_v29  ;;  %v4699_v40 = vshll.u32 %v4666_v51, 16  ;;  %v4703_v22 = vshrl.u32 %v4666_v51, 16  ;;  %v4145_v17 = vld [vmem:[#allocation3 + $0x1c] sm:$0xf] }
 0x24a   : > { %v3243_v19 = vpop.f32.mrb[10].mxu1  ;;  %v5854_v25 = vcombine.low %v4322_v11, %v4332_v57  ;;  %v4183_v2 = vrot.slane %v4182_v24, 4  ;;  %v4190_v43 = vshrl.u32 %v4144_v54, 16  ;;  %v4193_v20 = vshll.u32 %v4144_v54, 16  ;;  %v3898_v6 = vld [vmem:[#allocation3 + $0x20] sm:$0x1] }
 0x24b   : > { %v3287_v13 = vmax.f32 %v3241_v52, 0.0  ;;  %v3244_v31 = vadd.f32 %v7759_v15, %v3243_v19  ;;  %v6039_v39 = vpop.f32.mrb[11].mxu1  ;;  %v8034_v23 = vrot.slane %v3682_v8, 4  ;;  %v8036_v28 = vrot.slane %v3685_v21, 5  ;;  %v3624_v8 = vld [vmem:[#allocation3 + $0x1c] sm:$0xf] }
 0x24c   : > { %v5864_v55 = vcombine.low %v4465_v18, %v4468_v45  ;;  %v4692_v29 = vrot.slane %v4690_v50, 4  ;;  %v4695_v12 = vrot.slane %v4693_v37, 5  ;;  %v8045_v27 = vrot.slane %v4699_v40, 5  ;;  %v4667_v37 = vld [vmem:[#allocation3 + $0x20] sm:$0x1]  ;;  %v6156_v40 = vld [vmem:[#allocation3 + $0x18] sm:$0xff]  }
 0x24d   : > { %4393 = vrot.lane.b32.xlu0 %v5854_v25, %s6193_s28  ;;  %v3377_v36 = vsel %vm3317_vm4, %v3287_v13, 0.0  ;;  %v3288_v62 = vmax.f32 %v3244_v31, 0.0  ;;  %v4705_v15 = vrot.slane %v4703_v22, 4  ;;  %v4188_v9 = vsel %vm6320_vm5, %v4183_v2, %v4187_v7 }
 0x24e   : > { %v5945_v5 = vpack.c.bf16 %v3377_v36, %v3377_v36  ;;  %v4192_v38 = vrot.slane %v4190_v43, 4  ;;  %v4195_v60 = vrot.slane %v4193_v20, 5  ;;  %v8055_v34 = vsel %vm6249_vm2, %v5825_v10, %v3947_v14  ;;  %v4940_v14 = vld [vmem:[#allocation3 + $0x20] sm:$0x1]  ;;  %v4147_v20 = vld [vmem:[#allocation3 + $0x24] sm:$0xf] }
 0x24f   : > { %v5946_v42 = vpack.c.bf16 %v3288_v62, %v3288_v62  ;;  %v4988_v61 = vrot.slane %v8039_v49, 5  ;;  %v3673_v56 = vrot.slane %v3672_v53, 4  ;;  %v4178_v4 = vsel %vm6320_vm5, %v8009_v58, %v7914_v48  ;;  %v3623_v53 = vld [vmem:[#allocation3 + $0x18] sm:$0xf]  ;;  %v8097_v49 = vld [vmem:[#allocation3 + $0x20] sm:$0x1] }
 0x250   : > { %3538 = vst.msk [vmem:[#allocation3 + $0x60] sm:$0xf] %vm3513_vm15, %v5945_v5  ;;  %v8066_v44 = vsel %vm6249_vm2, %v3949_v59, %v3950_v33  ;;  %v3954_v10 = vrot.slane %v8043_v26, 5  ;;  %v4696_v18 = vor.u32 %v4695_v12, %v4692_v29  ;;  %v5848_v24 = vcombine.low %v4178_v4, %v4188_v9  ;;  %v8075_v48 = vld [vmem:[#allocation3 + $0x18] sm:$0xe] }
 0x251   : > { %4542 = vrot.lane.b32.xlu0 %v5864_v55, %s6203_s30  ;;  %3539 = vst.msk [vmem:[#allocation3 + $0x64] sm:$0xf] %vm3513_vm15, %v5946_v42  ;;  %v3688_v51 = vsel %vm6320_vm5, %v8034_v23, %v8036_v28  ;;  %v4706_v1 = vor.u32 %v4705_v15, %v8045_v27  ;;  %v4471_v58 = vrot.slane %v8049_v47, 5  ;;  %v5888_v59 = vrot.slane %v4938_v3, 9  ;;  %v8106_v15 = vld [vmem:[#allocation3 + $0x24] sm:$0xe] }
 0x252   : > { %v4196_v33 = vor.u32 %v4195_v60, %v4192_v38  ;;  %v4199_v30 = vshll.u32 %v4145_v17, 16  ;;  %v4203_v57 = vshrl.u32 %v4145_v17, 16  ;;  %v4990_v21 = vrot.slane %v4988_v61, 4  ;;  %v8110_v3 = vld [vmem:[#allocation3 + $0x24] sm:$0xe] }
 0x253   : > { %v4991_v54 = vrot.slane %v4940_v14, 5  ;;  %v5826_v45 = vrot.slane %v3896_v46, 9  ;;  %v3690_v7 = vshrl.u32 %v3623_v53, 16  ;;  %v3956_v50 = vrot.slane %v3954_v10, 4  ;;  %v4148_v4 = vld [vmem:[#allocation3 + $0x28] sm:$0xf] }
 0x254   : > { %v8079_v52 = vrot.slane %v4696_v18, 4  ;;  %v5857_v35 = vrot.slane %v8075_v48, 9  ;;  %v3693_v11 = vshll.u32 %v3623_v53, 16  ;;  %v8082_v22 = vrot.slane %v4706_v1, 4 }
 0x255   : > { %4381 = vrot.lane.b32.xlu0 %v5848_v24, %s6193_s28  ;;  %v8086_v19 = vrot.slane %v4471_v58, 4  ;;  %v3699_v25 = vshll.u32 %v3624_v8, 16  ;;  %v3703_v2 = vshrl.u32 %v3624_v8, 16  ;;  %v3957_v43 = vrot.slane %v3898_v6, 5 }
 0x256   : > { %v8088_v13 = vrot.slane %v4196_v33, 4  ;;  %v8090_v31 = vrot.slane %v4199_v30, 5  ;;  %v4205_v39 = vrot.slane %v4203_v57, 4  ;;  %v4992_v23 = vsel %vm6249_vm2, %v4990_v21, %v4991_v54  ;;  %v8134_v30 = vld [vmem:[#allocation3 + $0x28] sm:$0xf] }
 0x257   : > { %v3678_v28 = vsel %vm6320_vm5, %v3673_v56, %v7991_v41  ;;  %v4709_v55 = vshll.u32 %v4667_v37, 16  ;;  %v8099_v29 = vrot.slane %v3690_v7, 4  ;;  %v5833_v36 = vcombine.low %v8055_v34, %v8066_v44  ;;  %v8119_v34 = vld [vmem:[%s8742_s2] ss:$0 sm:$0xff]  ;;  %v4146_v57 = vld [vmem:[#allocation3 + $0x20] sm:$0x1] }
 0x258   : > { %v6155_v12 = vld [vmem:[#allocation3 + $0x60] sm:$0xff]   ;;  %v4989_v62 = vsel %vm6249_vm2, %v5888_v59, %v4988_v61  ;;  %v5817_v26 = vcombine.low %v3678_v28, %v3688_v51  ;;  %v3695_v5 = vrot.slane %v3693_v11, 5  ;;  %v3955_v41 = vsel %vm6249_vm2, %v5826_v45, %v3954_v10  ;;  %v8138_v54 = vld [vmem:[#allocation3 + $0x28] sm:$0xf]  ;;  %v4943_v28 = vld [vmem:[#allocation3 + $0x2c] sm:$0x1] }
 0x259   : > { %4632 = vrot.lane.b32.xlu0 %v6156_v40, %s6200_s24  ;;  %v3216_v9 = vpop.f32.mrb[36].mxu0  ;;  %v4214_v38 = vshrl.u32 %v4147_v20, 16  ;;  %v8112_v60 = vrot.slane %v3699_v25, 5  ;;  %v8114_v42 = vrot.slane %v3703_v2, 4  ;;  %4122 = vrot.lane.b32.xlu1 %v6155_v12, %s6191_s26  ;;  %v5896_v46 = vcombine.low %v4989_v62, %v4992_v23  ;;  %v3625_v11 = vld [vmem:[#allocation3 + $0x20] sm:$0x1] }
 0x25a   : > { %v3217_v61 = vadd.f32 %v8119_v34, %v3216_v9  ;;  %v6026_v56 = vpop.f32.mrb[37].mxu0  ;;  %v3958_v17 = vsel %vm6249_vm2, %v3956_v50, %v3957_v43  ;;  %v4217_v44 = vshll.u32 %v4147_v20, 16  ;;  %v4711_v10 = vrot.slane %v4709_v55, 5  ;;  %v8150_v20 = vld [vmem:[#allocation3 + $0x24] sm:$0xe] }
 0x25b   : > { %v3219_v14 = vpop.f32.mrb[38].mxu0  ;;  %v5889_v18 = vrot.slane %v8106_v15, 9  ;;  %v4474_v53 = vrot.slane %v8097_v49, 5  ;;  %v4206_v24 = vor.u32 %v4205_v39, %v8090_v31  ;;  %v4702_v33 = vsel %vm6320_vm5, %v8079_v52, %v8045_v27  ;;  %v4668_v39 = vld [vmem:[#allocation3 + $0x24] sm:$0xf] }
 0x25c   : > { %v3281_v51 = vmax.f32 %v3217_v61, 0.0  ;;  %v3220_v1 = vadd.f32 %v8119_v34, %v3219_v14  ;;  %v6027_v59 = vpop.f32.mrb[39].mxu0  ;;  %v3696_v8 = vor.u32 %v3695_v5, %v8099_v29  ;;  %v5834_v21 = vcombine.low %v3955_v41, %v3958_v17 }
 0x25d   : > { %5066 = vrot.lane.b32.xlu0 %v5896_v46, %s6202_s29  ;;  %v5858_v6 = vrot.slane %v8110_v3, 9  ;;  %v4223_v45 = vshll.u32 %v4148_v4, 16  ;;  %v4227_v7 = vshrl.u32 %v4148_v4, 16  ;;  %4020 = vrot.lane.b32.xlu1 %v5833_v36, %s6196_s6  ;;  %v4216_v27 = vrot.slane %v4214_v38, 4  ;;  %v3626_v36 = vld [vmem:[#allocation3 + $0x24] sm:$0xf] }
 0x25e   : > { %v3371_v50 = vsel %vm3317_vm4, %v3281_v51, 0.0  ;;  %v3282_v37 = vmax.f32 %v3220_v1, 0.0  ;;  %v4219_v52 = vrot.slane %v4217_v44, 5  ;;  %v4712_v25 = vsel %vm6320_vm5, %v8082_v22, %v4711_v10  ;;  %v4422_v38 = vld [vmem:[#allocation3 + $0x2c] sm:$0x1] }
 0x25f   : > { %v5939_v40 = vpack.c.bf16 %v3371_v50, %v3371_v50  ;;  %v4995_v2 = vrot.slane %v8134_v30, 5  ;;  %v8148_v43 = vrot.slane %v4206_v24, 4  ;;  %v4478_v55 = vrot.slane %v8138_v54, 5  ;;  %v8167_v44 = vld [vmem:[#allocation3 + $0x28] sm:$0xf]  ;;  %v6157_v24 = vld [vmem:[#allocation3 + $0x18] sm:$0xff]  }
 0x260   : > { %v5940_v23 = vpack.c.bf16 %v3282_v37, %v3282_v37  ;;  %v4209_v29 = vshll.u32 %v4146_v57, 16  ;;  %v3706_v12 = vor.u32 %v8114_v42, %v8112_v60  ;;  %v8161_v22 = vrot.slane %v4223_v45, 5  ;;  %v4149_v42 = vld [vmem:[#allocation3 + $0x2c] sm:$0x1]  ;;  %v4671_v3 = vld [vmem:[#allocation3 + $0x30] sm:$0xf] }
 0x261   : > { %4022 = vrot.lane.b32.xlu0 %v5834_v21, %s6196_s6  ;;  %3532 = vst.msk [vmem:[#allocation3 + $0x48] sm:$0xf] %vm3513_vm15, %v5939_v40  ;;  %v4229_v62 = vrot.slane %v4227_v7, 4  ;;  %v8163_v5 = vrot.slane %v3696_v8, 4  ;;  %v3709_v9 = vshll.u32 %v3625_v11, 16  ;;  %3859 = vrot.lane.b32.xlu1 %v5817_v26, %s6192_s27  ;;  %v5880_v41 = vcombine.low %v4702_v33, %v4712_v25  ;;  %v6158_v21 = vld [vmem:[#allocation3 + $0x24] sm:$0xff]  }
 0x262   : > { %3533 = vst.msk [vmem:[#allocation3 + $0x4c] sm:$0xf] %vm3513_vm15, %v5940_v23  ;;  %v4220_v61 = vor.u32 %v4219_v52, %v4216_v27  ;;  %v4714_v56 = vshrl.u32 %v4668_v39, 16  ;;  %v4717_v46 = vshll.u32 %v4668_v39, 16  ;;  %v4997_v17 = vrot.slane %v4995_v2, 4 }
 0x263   : > { %v4998_v4 = vrot.slane %v4943_v28, 5  ;;  %v3714_v14 = vshrl.u32 %v3626_v36, 16  ;;  %v3717_v10 = vshll.u32 %v3626_v36, 16  ;;  %v4480_v51 = vrot.slane %v4478_v55, 4 }
 0x264   : > { %v8172_v26 = vrot.slane %v4209_v29, 5  ;;  %v8174_v1 = vrot.slane %v3706_v12, 4  ;;  %v3315_v33 = vstv %s8159_s9  ;;  %v4481_v30 = vrot.slane %v4422_v38, 5  ;;  %v8211_v29 = vld [vmem:[#allocation3 + $0x2c] sm:$0x1] }
 0x265   : > { %4905 = vrot.lane.b32.xlu0 %v5880_v41, %s6201_s25  ;;  %v4230_v57 = vor.u32 %v4229_v62, %v8161_v22  ;;  %v4233_v8 = vshll.u32 %v4149_v42, 16  ;;  %4110 = vrot.lane.b32.xlu1 %v6157_v24, %s6191_s26  ;;  %v8180_v45 = vrot.slane %v4220_v61, 4  ;;  %v8182_v7 = vrot.slane %v3709_v9, 5  ;;  %v3902_v61 = vld [vmem:[#allocation3 + $0x30] sm:$0xe] }
 0x266   : > { %v8750_v50 = vrot.slane %v8167_v44, 5  ;;  %v8185_v37 = vrot.slane %v4714_v56, 4  ;;  %v4999_v27 = vsel %vm6249_vm2, %v4997_v17, %v4998_v4  ;;  %v8189_v52 = vrot.slane %v4717_v46, 5  ;;  %v4946_v46 = vld [vmem:[#allocation3 + $0x38] sm:$0x1] }
 0x267   : > { %v8191_v11 = vrot.slane %v3714_v14, 4  ;;  %v8193_v40 = vrot.slane %v3717_v10, 5  ;;  %vm8195_vm10 = vcmp.eq.s32.totalorder %v3315_v33, 1  ;;  %v4996_v23 = vsel %vm6249_vm2, %v5889_v18, %v4995_v2  ;;  %v4162_v18 = vld [vmem:[#allocation3 + $0x60] sm:$0xf] }
 0x268   : > { %v3248_v25 = vpop.f32.mrb[12].mxu1  ;;  %v8209_v28 = vsel %vm6249_vm2, %v8086_v19, %v4474_v53  ;;  %v4482_v62 = vsel %vm6249_vm2, %v4480_v51, %v4481_v30  ;;  %v4231_v9 = vrot.slane %v4230_v57, 4  ;;  %v4235_v15 = vrot.slane %v4233_v8, 5  ;;  %v8216_v2 = vld [vmem:[#allocation3 + $0x34] sm:$0xf]  ;;  %vm8235_vm11 = vmand %vm8195_vm10, %vm3317_vm4 }
 0x269   : > { %4112 = vrot.lane.b32.xlu0 %v6158_v21, %s6191_s26  ;;  %v3249_v12 = vadd.f32 %v8119_v34, %v3248_v25  ;;  %v6042_v36 = vpop.f32.mrb[13].mxu1  ;;  %v5897_v38 = vcombine.low %v4996_v23, %v4999_v27  ;;  %v8224_v19 = vsel %vm6249_vm2, %v5857_v35, %v4471_v58  ;;  %v8228_v49 = vrot.slane %v8750_v50, 4  ;;  %v4163_v58 = vld [vmem:[#allocation3 + $0x64] sm:$0xf]  ;;  %v6180_v56 = vld [vmem:[#allocation3 + $0x48] sm:$0xff]   ;;  %vm8306_vm12 = vmand %vm8195_vm10, %vm3322_vm14 }
 0x26a   : > { %v3251_v41 = vpop.f32.mrb[14].mxu1  ;;  %v4479_v48 = vsel %vm6249_vm2, %v5858_v6, %v4478_v55  ;;  %v3964_v35 = vrot.slane %v8211_v29, 5  ;;  %v5865_v17 = vcombine.low %v8224_v19, %v8209_v28  ;;  %v4202_v54 = vsel %vm6320_vm5, %v8088_v13, %v8090_v31  ;;  %v4672_v4 = vld [vmem:[#allocation3 + $0x34] sm:$0xf]  ;;  %v8253_v14 = vld [vmem:[#allocation3 + $0x28] sm:$0xf] }
 0x26b   : > { %v3289_v53 = vmax.f32 %v3249_v12, 0.0  ;;  %v3252_v42 = vadd.f32 %v8119_v34, %v3251_v41  ;;  %v6043_v47 = vpop.f32.mrb[15].mxu1  ;;  %v5866_v16 = vcombine.low %v4479_v48, %v4482_v62  ;;  %v4236_v10 = vsel %vm6320_vm5, %v4231_v9, %v4235_v15  ;;  %3615 = vst.msk [vmem:[#allocation4 + $0x30] sm:$0xff] %vm3608_vm8, %v6180_v56  ;;  %v4944_v21 = vld [vmem:[#allocation3 + $0x30] sm:$0xe] }
 0x26c   : > { %v4334_v24 = vshrl.u32 %v4162_v18, 16  ;;  %v4337_v33 = vshll.u32 %v4162_v18, 16  ;;  %v4343_v30 = vshll.u32 %v4163_v58, 16  ;;  %v4347_v57 = vshrl.u32 %v4163_v58, 16  ;;  %v8269_v62 = vld [vmem:[#allocation3 + $0x34] sm:$0xf] }
 0x26d   : > { %5068 = vrot.lane.b32.xlu0 %v5897_v38, %s6202_s29  ;;  %v3379_v6 = vsel %vm3322_vm14, %v3289_v53, 0.0  ;;  %v3290_v55 = vmax.f32 %v3252_v42, 0.0  ;;  %v5002_v27 = vrot.slane %v8216_v2, 5  ;;  %v4738_v25 = vshrl.u32 %v4671_v3, 16  ;;  %v3904_v9 = vld [vmem:[#allocation3 + $0x38] sm:$0x1] }
 0x26e   : > { %v5947_v51 = vpack.c.bf16 %v3379_v6, %v3379_v6  ;;  %v4741_v23 = vshll.u32 %v4671_v3, 16  ;;  %v4226_v36 = vsel %vm6320_vm5, %v8180_v45, %v8161_v22  ;;  %v4747_v15 = vshll.u32 %v4672_v4, 16  ;;  %v8271_v38 = vld [vmem:[#allocation3 + $0x28] sm:$0xf]  ;;  %v4435_v2 = vld [vmem:[#allocation3 + $0x60] sm:$0xe] }
 0x26f   : > { %v3380_v8 = vsel %vm8235_vm11, %v3290_v55, 0.0  ;;  %v4751_v41 = vshrl.u32 %v4672_v4, 16  ;;  %v5850_v18 = vcombine.low %v4226_v36, %v4236_v10  ;;  %v4436_v53 = vld [vmem:[#allocation3 + $0x64] sm:$0xf]  ;;  %v5005_v42 = vrot.slane %v4946_v46, 5 }
 0x270   : > { %3540 = vst.msk [vmem:[#allocation3 + $0x68] sm:$0xf] %vm3513_vm15, %v5947_v51  ;;  %v5948_v12 = vpack.c.bf16 %v3380_v8, %v3380_v8  ;;  %v4723_v48 = vshll.u32 %v8253_v14, 16  ;;  %v4336_v22 = vrot.slane %v4334_v24, 4  ;;  %v4339_v45 = vrot.slane %v4337_v33, 5 }
 0x271   : > { %4546 = vrot.lane.b32.xlu0 %v5866_v16, %s6203_s30  ;;  %v8279_v58 = vrot.slane %v4343_v30, 5  ;;  %v4349_v56 = vrot.slane %v4347_v57, 4  ;;  %v5890_v16 = vrot.slane %v4944_v21, 9  ;;  %v3968_v3 = vrot.slane %v8269_v62, 5  ;;  %v4673_v10 = vld [vmem:[#allocation3 + $0x38] sm:$0x1] }
 0x272   : > { %3541 = vst.msk [vmem:[#allocation3 + $0x6c] sm:$0xf] %vm3513_vm15, %v5948_v12  ;;  %v4740_v4 = vrot.slane %v4738_v25, 4  ;;  %v4743_v46 = vrot.slane %v4741_v23, 5  ;;  %v4513_v6 = vrot.slane %v4436_v53, 5  ;;  %v5004_v55 = vrot.slane %v5002_v27, 4 }
 0x273   : > { %v8283_v51 = vrot.slane %v4747_v15, 5  ;;  %v4753_v8 = vrot.slane %v4751_v41, 4  ;;  %v5863_v36 = vrot.slane %v4435_v2, 9  ;;  %v3971_v12 = vrot.slane %v3904_v9, 5  ;;  %v6159_v30 = vld [vmem:[#allocation3 + $0x30] sm:$0xff]  }
 0x274   : > { %v4727_v24 = vshrl.u32 %v8253_v14, 16  ;;  %v3723_v33 = vshll.u32 %v8271_v38, 16  ;;  %v4340_v57 = vor.u32 %v4339_v45, %v4336_v22  ;;  %v4350_v21 = vor.u32 %v4349_v56, %v8279_v58 }
 0x275   : > { %4385 = vrot.lane.b32.xlu0 %v5850_v18, %s6193_s28  ;;  %v5006_v25 = vsel %vm6249_vm2, %v5004_v55, %v5005_v42  ;;  %v5828_v23 = vrot.slane %v3902_v61, 9  ;;  %v5003_v15 = vsel %vm6249_vm2, %v5890_v16, %v5002_v27  ;;  %v3970_v41 = vrot.slane %v3968_v3, 4 }
 0x276   : > { %v4744_v2 = vor.u32 %v4743_v46, %v4740_v4  ;;  %v4757_v9 = vshll.u32 %v4673_v10, 16  ;;  %v4515_v59 = vrot.slane %v4513_v6, 4  ;;  %v4754_v45 = vor.u32 %v4753_v8, %v8283_v51 }
 0x277   : > { %v4437_v62 = vld [vmem:[#allocation3 + $0x68] sm:$0x1]  ;;  %v4514_v61 = vsel %vm6249_vm2, %v5863_v36, %v4513_v6  ;;  %v5898_v55 = vcombine.low %v5003_v15, %v5006_v25  ;;  %v3972_v27 = vsel %vm6249_vm2, %v3970_v41, %v3971_v12  ;;  %v4341_v46 = vrot.slane %v4340_v57, 4  ;;  %v8315_v36 = vld [vmem:[#allocation3 + $0x40] sm:$0xf] }
 0x278   : > { %v4164_v18 = vld [vmem:[#allocation3 + $0x68] sm:$0x1]  ;;  %v4516_v50 = vrot.slane %v4437_v62, 5  ;;  %v4351_v10 = vrot.slane %v4350_v21, 4  ;;  %v4755_v21 = vrot.slane %v4754_v45, 4  ;;  %v4720_v6 = vor.u32 %v8189_v52, %v8185_v37  ;;  %v6160_v52 = vld [vmem:[#allocation3 + $0x3c] sm:$0xff]  }
 0x279   : > { %v3256_v53 = vpop.f32.mrb[16].mxu1  ;;  %4636 = vrot.lane.b32.xlu0 %v6159_v30, %s6200_s24  ;;  %v4353_v22 = vshll.u32 %v4164_v18, 16  ;;  %v4346_v15 = vsel %vm6320_vm5, %v4341_v46, %v8279_v58  ;;  %v4153_v41 = vld [vmem:[#allocation3 + $0x3c] sm:$0xf]  ;;  %v4212_v58 = vsel %vm6320_vm5, %v8148_v43, %v8172_v26  ;;  %vm3881_vm14 = vcmask 130112  }
 0x27a   : > { %v3257_v56 = vadd.f32 %v8119_v34, %v3256_v53  ;;  %v6046_v42 = vpop.f32.mrb[17].mxu1  ;;  %v4517_v4 = vsel %vm6249_vm2, %v4515_v59, %v4516_v50  ;;  %v4759_v53 = vrot.slane %v4757_v9, 5  ;;  %v4745_v50 = vrot.slane %v4744_v2, 4 }
 0x27b   : > { %v3259_v16 = vpop.f32.mrb[18].mxu1  ;;  %v4355_v30 = vrot.slane %v4353_v22, 5  ;;  %v5871_v18 = vcombine.low %v4514_v61, %v4517_v4  ;;  %v4154_v42 = vld [vmem:[#allocation3 + $0x40] sm:$0xf]  ;;  %v5009_v22 = vrot.slane %v8315_v36, 5  ;;  %v4262_v46 = vshrl.u32 %v4153_v41, 16 }
 0x27c   : > { %v3291_v62 = vmax.f32 %v3257_v56, 0.0  ;;  %v3260_v8 = vadd.f32 %v8119_v34, %v3259_v16  ;;  %v6047_v47 = vpop.f32.mrb[19].mxu1  ;;  %v3969_v34 = vsel %vm6249_vm2, %v5828_v23, %v3968_v3  ;;  %v4271_v3 = vshll.u32 %v4154_v42, 16  ;;  %v4949_v56 = vld [vmem:[#allocation3 + $0x44] sm:$0x1] }
 0x27d   : > { %v4356_v59 = vsel %vm6320_vm5, %v4351_v10, %v4355_v30  ;;  %5070 = vrot.lane.b32.xlu0 %v5898_v55, %s6202_s29  ;;  %v3727_v47 = vshrl.u32 %v8271_v38, 16  ;;  %4556 = vrot.lane.b32.xlu1 %v5871_v18, %s6203_s30  ;;  %v5836_v57 = vcombine.low %v3969_v34, %v3972_v27  ;;  %v4275_v23 = vshrl.u32 %v4154_v42, 16  ;;  %v8335_v61 = vld [vmem:[#allocation3 + $0x40] sm:$0xf]  ;;  %v4670_v4 = vld [vmem:[#allocation3 + $0x2c] sm:$0x1] }
 0x27e   : > { %v3381_v32 = vsel %vm8195_vm10, %v3291_v62, 0.0  ;;  %v3292_v12 = vmax.f32 %v3260_v8, 0.0  ;;  %v5855_v9 = vcombine.low %v4346_v15, %v4356_v59  ;;  %v4760_v39 = vsel %vm6320_vm5, %v4755_v21, %v4759_v53  ;;  %v3628_v30 = vld [vmem:[#allocation3 + $0x2c] sm:$0x1]  ;;  %v4947_v53 = vld [vmem:[#allocation3 + $0x3c] sm:$0xe] }
 0x27f   : > { %v5949_v25 = vpack.c.bf16 %v3381_v32, %v3381_v32  ;;  %v8339_v55 = vrot.slane %v4723_v48, 5  ;;  %v4729_v27 = vrot.slane %v4727_v24, 4  ;;  %v4750_v16 = vsel %vm6320_vm5, %v4745_v50, %v8283_v51  ;;  %v4428_v42 = vld [vmem:[#allocation3 + $0x44] sm:$0x1]  ;;  %v4426_v32 = vld [vmem:[#allocation3 + $0x3c] sm:$0xe] }
 0x280   : > { %v3382_v2 = vsel %vm8306_vm12, %v3292_v12, 0.0  ;;  %v8347_v10 = vrot.slane %v3723_v33, 5  ;;  %v3729_v43 = vrot.slane %v3727_v47, 4  ;;  %v5882_v26 = vcombine.low %v4750_v16, %v4760_v39  ;;  %v4155_v33 = vld [vmem:[#allocation3 + $0x44] sm:$0x1]  ;;  %v6172_v21 = vld [vmem:[%s8743_s3] sm:$0xff]  }
 0x281   : > { %3542 = vst.msk [vmem:[#allocation3 + $0x70] sm:$0xf] %vm3513_vm15, %v5949_v25  ;;  %v5950_v45 = vpack.c.bf16 %v3382_v2, %v3382_v2  ;;  %4026 = vrot.lane.b32.xlu0 %v5836_v57, %s6196_s6  ;;  %4395 = vrot.lane.b32.xlu1 %v5855_v9, %s6193_s28  ;;  %v4265_v14 = vshll.u32 %v4153_v41, 16  ;;  %v8350_v48 = vrot.slane %v4271_v3, 5  ;;  %v4277_v24 = vrot.slane %v4275_v23, 4 }
 0x282   : > { %v5849_v51 = vcombine.low %v4202_v54, %v4212_v58  ;;  %v5011_v62 = vrot.slane %v5009_v22, 4  ;;  %v5012_v8 = vrot.slane %v4949_v56, 5  ;;  %v4492_v38 = vrot.slane %v8335_v61, 5  ;;  %v4150_v15 = vld [vmem:[#allocation3 + $0x30] sm:$0xf]  ;;  %6048 = vmatprep.subr.bf16.mxu1 %v6172_v21 }
 0x283   : > { %3543 = vst.msk [vmem:[#allocation3 + $0x74] sm:$0xf] %vm3513_vm15, %v5950_v45  ;;  %v3712_v18 = vsel %vm6320_vm5, %v8174_v1, %v8182_v7  ;;  %v4730_v13 = vor.u32 %v4729_v27, %v8339_v55  ;;  %v4733_v31 = vshll.u32 %v4670_v4, 16  ;;  %v8375_v54 = vsel %vm6249_vm2, %v8228_v49, %v3964_v35  ;;  %v8410_v9 = vld [vmem:[#allocation3 + $0x30] sm:$0xe]  ;;  %6049 = vmatpush3.bf16.msra.mxu1 %v6172_v21 }
 0x284   : > { %v3720_v1 = vor.u32 %v8193_v40, %v8191_v11  ;;  %v3730_v7 = vor.u32 %v3729_v43, %v8347_v10  ;;  %v3733_v37 = vshll.u32 %v3628_v30, 16  ;;  %v4264_v59 = vrot.slane %v4262_v46, 4  ;;  %v4151_v39 = vld [vmem:[#allocation3 + $0x34] sm:$0xf]  ;;  %v8418_v61 = vld [vmem:[#allocation3 + $0x4c] sm:$0xf] }
 0x285   : > { %4909 = vrot.lane.b32.xlu0 %v5882_v26, %s6201_s25  ;;  %4544 = vrot.lane.b32.xlu1 %v5865_v17, %s6203_s30  ;;  %v4267_v34 = vrot.slane %v4265_v14, 5  ;;  %v4278_v50 = vor.u32 %v4277_v24, %v8350_v48  ;;  %v4281_v28 = vshll.u32 %v4155_v33, 16  ;;  %v5891_v19 = vrot.slane %v4947_v53, 9  ;;  %v4677_v43 = vld [vmem:[#allocation3 + $0x48] sm:$0xf]  ;;  %v6174_v14 = vld [vmem:[%s8743_s3 + $0x10] sm:$0xff]  }
 0x286   : > { %v5013_v29 = vsel %vm6249_vm2, %v5011_v62, %v5012_v8  ;;  %v4494_v17 = vrot.slane %v4492_v38, 4  ;;  %v4495_v36 = vrot.slane %v4428_v42, 5  ;;  %v8768_v11 = vsel %vm6320_vm5, %v8163_v5, %v8112_v60  ;;  %v6173_v60 = vld [vmem:[%s8743_s3 + $0x8] sm:$0xff]   ;;  %v4678_v26 = vld [vmem:[#allocation3 + $0x4c] sm:$0xf]  ;;  %v6161_v8 = vld [vmem:[#allocation3 + $0x24] sm:$0xff]  }
 0x287   : > { %v5818_v40 = vcombine.low %v8768_v11, %v3712_v18  ;;  %v8769_v49 = vrot.slane %v8167_v44, 5  ;;  %v8770_v35 = vrot.slane %v8150_v20, 9  ;;  %v4731_v12 = vrot.slane %v4730_v13, 4  ;;  %6050 = vmatprep.subr.bf16.mxu1 %v6173_v60  ;;  %v8436_v24 = vld [vmem:[#allocation3 + $0x34] sm:$0xf] }
 0x288   : > { %v4735_v57 = vrot.slane %v4733_v31, 5  ;;  %v5010_v20 = vsel %vm6249_vm2, %v5891_v19, %v5009_v22  ;;  %v4721_v44 = vrot.slane %v4720_v6, 4  ;;  %v8408_v25 = vrot.slane %v3720_v1, 4  ;;  %v4950_v42 = vld [vmem:[#allocation3 + $0x48] sm:$0xe]  ;;  %6051 = vmatpush3.bf16.msra.mxu1 %v6173_v60 }
 0x289   : > { %4116 = vrot.lane.b32.xlu0 %v6160_v52, %s6191_s26  ;;  %v8395_v47 = vsel %vm6249_vm2, %v8770_v35, %v8769_v49  ;;  %4383 = vrot.lane.b32.xlu1 %v5849_v51, %s6193_s28  ;;  %v5899_v41 = vcombine.low %v5010_v20, %v5013_v29  ;;  %v4268_v3 = vor.u32 %v4267_v34, %v4264_v59  ;;  %v4279_v23 = vrot.slane %v4278_v50, 4  ;;  %v8442_v13 = vld [vmem:[#allocation3 + $0x4c] sm:$0xf]  ;;  %v3629_v50 = vld [vmem:[#allocation3 + $0x30] sm:$0xf] }
 0x28a   : > { %v5835_v5 = vcombine.low %v8395_v47, %v8375_v54  ;;  %v4283_v2 = vrot.slane %v4281_v28, 5  ;;  %v5860_v45 = vrot.slane %v4426_v32, 9  ;;  %v4496_v58 = vsel %vm6249_vm2, %v4494_v17, %v4495_v36  ;;  %6052 = vmatprep.subr.bf16.mxu1 %v6174_v14  ;;  %v6175_v28 = vld [vmem:[%s8743_s3 + $0x18] sm:$0xff]   ;;  %v4952_v17 = vld [vmem:[#allocation3 + $0x50] sm:$0x1] }
 0x28b   : > { %v8414_v22 = vrot.slane %v3730_v7, 4  ;;  %v8416_v56 = vrot.slane %v3733_v37, 5  ;;  %v4726_v27 = vsel %vm6320_vm5, %v4721_v44, %v8339_v55  ;;  %v4736_v16 = vsel %vm6320_vm5, %v4731_v12, %v4735_v57  ;;  %v4679_v57 = vld [vmem:[#allocation3 + $0x50] sm:$0x1]  ;;  %v3908_v21 = vld [vmem:[#allocation3 + $0x48] sm:$0xe] }
 0x28c   : > { %v3726_v4 = vsel %vm6320_vm5, %v8408_v25, %v8347_v10  ;;  %v4238_v46 = vshrl.u32 %v4150_v15, 16  ;;  %v4493_v55 = vsel %vm6249_vm2, %v5860_v45, %v4492_v38  ;;  %v5859_v30 = vrot.slane %v8410_v9, 9  ;;  %6053 = vmatpush3.bf16.msra.mxu1 %v6174_v14  ;;  %v3910_v45 = vld [vmem:[#allocation3 + $0x50] sm:$0x1]  ;;  %v4683_v47 = vld [vmem:[#allocation3 + $0x60] sm:$0xf] }
 0x28d   : > { %5072 = vrot.lane.b32.xlu0 %v5899_v41, %s6202_s29  ;;  %3861 = vrot.lane.b32.xlu1 %v5818_v40, %s6192_s27  ;;  %v4241_v51 = vshll.u32 %v4150_v15, 16  ;;  %v4247_v62 = vshll.u32 %v4151_v39, 16  ;;  %v5868_v33 = vcombine.low %v4493_v55, %v4496_v58  ;;  %v4269_v18 = vrot.slane %v4268_v3, 4  ;;  %v3630_v40 = vld [vmem:[#allocation3 + $0x34] sm:$0xf] }
 0x28e   : > { %v4284_v53 = vsel %vm6320_vm5, %v4279_v23, %v4283_v2  ;;  %v5016_v6 = vrot.slane %v8418_v61, 5  ;;  %v4786_v31 = vshrl.u32 %v4677_v43, 16  ;;  %v4789_v1 = vshll.u32 %v4677_v43, 16  ;;  %6054 = vmatprep.subr.bf16.mxu1 %v6175_v28  ;;  %v6177_v2 = vld [vmem:[%s8743_s3 + $0x20] ss:$0 sps:$4 sm:$0xff]  }
 0x28f   : > { %v4795_v38 = vshll.u32 %v4678_v26, 16  ;;  %v4799_v7 = vshrl.u32 %v4678_v26, 16  ;;  %v5881_v37 = vcombine.low %v4726_v27, %v4736_v16  ;;  %v4485_v52 = vrot.slane %v8436_v24, 5  ;;  %v6162_v61 = vld [vmem:[#allocation3 + $0x48] sm:$0xff]   ;;  %v4425_v10 = vld [vmem:[#allocation3 + $0x38] sm:$0x1] }
 0x290   : > { %v8446_v59 = vrot.slane %v4238_v46, 4  ;;  %v4251_v34 = vshrl.u32 %v4151_v39, 16  ;;  %v4274_v19 = vsel %vm6320_vm5, %v4269_v18, %v8350_v48  ;;  %v3736_v29 = vsel %vm6320_vm5, %v8414_v22, %v8416_v56  ;;  %6055 = vmatpush3.bf16.msra.mxu1 %v6175_v28 }
 0x291   : > { %4550 = vrot.lane.b32.xlu0 %v5868_v33, %s6203_s30  ;;  %4634 = vrot.lane.b32.xlu1 %v6161_v8, %s6200_s24  ;;  %v8459_v36 = vrot.slane %v4241_v51, 5  ;;  %v8461_v11 = vrot.slane %v4247_v62, 5  ;;  %v5852_v49 = vcombine.low %v4274_v19, %v4284_v53  ;;  %v5892_v35 = vrot.slane %v4950_v42, 9  ;;  %v4152_v62 = vld [vmem:[#allocation3 + $0x38] sm:$0x1] }
 0x292   : > { %v5018_v32 = vrot.slane %v5016_v6, 4  ;;  %v3982_v12 = vrot.slane %v8442_v13, 5  ;;  %v4788_v60 = vrot.slane %v4786_v31, 4  ;;  %v4791_v48 = vrot.slane %v4789_v1, 5  ;;  %6080 = vmatprep.subr.msk.bf16.mxu1 %vm5175_vm13, %v6177_v2  ;;  %v3631_v19 = vld [vmem:[#allocation3 + $0x38] sm:$0x1] }
 0x293   : > { %v8464_v20 = vrot.slane %v4795_v38, 5  ;;  %v4801_v44 = vrot.slane %v4799_v7, 4  ;;  %v8467_v15 = vrot.slane %v4251_v34, 4  ;;  %v3738_v41 = vshrl.u32 %v3629_v50, 16 }
 0x294   : > { %v3741_v3 = vshll.u32 %v3629_v50, 16  ;;  %v3747_v23 = vshll.u32 %v3630_v40, 16  ;;  %v5019_v39 = vrot.slane %v4952_v17, 5  ;;  %v4805_v58 = vshll.u32 %v4679_v57, 16  ;;  %v4675_v57 = vld [vmem:[#allocation3 + $0x40] sm:$0xf] }
 0x295   : > { %4389 = vrot.lane.b32.xlu0 %v5852_v49, %s6193_s28  ;;  %4024 = vrot.lane.b32.xlu1 %v5835_v5, %s6196_s6  ;;  %v3751_v22 = vshrl.u32 %v3630_v40, 16  ;;  %v5819_v56 = vcombine.low %v3726_v4, %v3736_v29  ;;  %v5017_v27 = vsel %vm6249_vm2, %v5892_v35, %v5016_v6  ;;  %v5830_v16 = vrot.slane %v3908_v21, 9  ;;  %v4684_v5 = vld [vmem:[#allocation3 + $0x64] sm:$0xf]  ;;  %v4685_v29 = vld [vmem:[#allocation3 + $0x68] sm:$0x1] }
 0x296   : > { %v4244_v54 = vor.u32 %v8459_v36, %v8446_v59  ;;  %v5020_v46 = vsel %vm6249_vm2, %v5018_v32, %v5019_v39  ;;  %v3984_v43 = vrot.slane %v3982_v12, 4  ;;  %v4792_v26 = vor.u32 %v4791_v48, %v4788_v60  ;;  %v4674_v35 = vld [vmem:[#allocation3 + $0x3c] sm:$0xf]  ;;  %v6163_v21 = vld [vmem:[#allocation3 + $0x30] sm:$0xff]  }
 0x297   : > { %v4802_v14 = vor.u32 %v4801_v44, %v8464_v20  ;;  %v3985_v25 = vrot.slane %v3910_v45, 5  ;;  %v3740_v4 = vrot.slane %v3738_v41, 4  ;;  %v3743_v55 = vrot.slane %v3741_v3, 5 }
 0x298   : > { %v5177_v51 = vsel %vm5175_vm13, %v6177_v2, 0  ;;  %v4834_v8 = vshrl.u32 %v4683_v47, 16  ;;  %v4837_v33 = vshll.u32 %v4683_v47, 16  ;;  %v4843_v18 = vshll.u32 %v4684_v5, 16  ;;  %v3632_v47 = vld [vmem:[#allocation3 + $0x3c] sm:$0xf] }
 0x299   : > { %4640 = vrot.lane.b32.xlu0 %v6162_v61, %s6200_s24  ;;  %4907 = vrot.lane.b32.xlu1 %v5881_v37, %s6201_s25  ;;  %v4847_v53 = vshrl.u32 %v4684_v5, 16  ;;  %v5900_v42 = vcombine.low %v5017_v27, %v5020_v46  ;;  %v4807_v6 = vrot.slane %v4805_v58, 5  ;;  %v8492_v13 = vrot.slane %v3747_v23, 5  ;;  %v3633_v5 = vld [vmem:[#allocation3 + $0x40] sm:$0xf] }
 0x29a   : > { %v3753_v31 = vrot.slane %v3751_v22, 4  ;;  %v3983_v1 = vsel %vm6249_vm2, %v5830_v16, %v3982_v12  ;;  %v3986_v38 = vsel %vm6249_vm2, %v3984_v43, %v3985_v25  ;;  %v4793_v7 = vrot.slane %v4792_v26, 4  ;;  %6057 = vmatpush3.bf16.msra.mxu1 %v5177_v51 }
 0x29b   : > { %v4803_v59 = vrot.slane %v4802_v14, 4  ;;  %v4486_v37 = vsel %vm6249_vm2, %v5859_v30, %v4485_v52  ;;  %v4488_v34 = vrot.slane %v4425_v10, 5  ;;  %v4254_v50 = vor.u32 %v8467_v15, %v8461_v11  ;;  %v8529_v14 = vld [vmem:[#allocation3 + $0x40] sm:$0xf]  ;;  %v4958_v10 = vld [vmem:[#allocation3 + $0x68] sm:$0x1] }
 0x29c   : > { %v4257_v28 = vshll.u32 %v4152_v62, 16  ;;  %v4836_v17 = vrot.slane %v4834_v8, 4  ;;  %v4839_v36 = vrot.slane %v4837_v33, 5  ;;  %v8508_v40 = vrot.slane %v4843_v18, 5  ;;  %v4676_v62 = vld [vmem:[#allocation3 + $0x44] sm:$0x1] }
 0x29d   : > { %5074 = vrot.lane.b32.xlu0 %v5900_v42, %s6202_s29  ;;  %3863 = vrot.lane.b32.xlu1 %v5819_v56, %s6192_s27  ;;  %v4849_v49 = vrot.slane %v4847_v53, 4  ;;  %v4487_v9 = vrot.slane %v4485_v52, 4  ;;  %v5838_v32 = vcombine.low %v3983_v1, %v3986_v38  ;;  %v3744_v30 = vor.u32 %v3743_v55, %v3740_v4  ;;  %v4957_v56 = vld [vmem:[#allocation3 + $0x64] sm:$0xf]  ;;  %v4956_v53 = vld [vmem:[#allocation3 + $0x60] sm:$0xe] }
 0x29e   : > { %v3754_v12 = vor.u32 %v3753_v31, %v8492_v13  ;;  %v4245_v60 = vrot.slane %v4244_v54, 4  ;;  %v4798_v48 = vsel %vm6320_vm5, %v4793_v7, %v8464_v20  ;;  %v4808_v44 = vsel %vm6320_vm5, %v4803_v59, %v4807_v6  ;;  %v6164_v18 = vld [vmem:[#allocation3 + $0x60] sm:$0xff]  }
 0x29f   : > { %v4853_v15 = vshll.u32 %v4685_v29, 16  ;;  %v4489_v41 = vsel %vm6249_vm2, %v4487_v9, %v4488_v34  ;;  %v4259_v24 = vrot.slane %v4257_v28, 5  ;;  %v3757_v52 = vshll.u32 %v3631_v19, 16 }
 0x2a0   : > { %v4762_v3 = vshrl.u32 %v4674_v35, 16  ;;  %v4255_v23 = vrot.slane %v4254_v50, 4  ;;  %v4840_v2 = vor.u32 %v4839_v36, %v4836_v17  ;;  %v4850_v39 = vor.u32 %v4849_v49, %v8508_v40 }
 0x2a1   : > { %4030 = vrot.lane.b32.xlu0 %v5838_v32, %s6196_s6  ;;  %4114 = vrot.lane.b32.xlu1 %v6163_v21, %s6191_s26  ;;  %v4771_v45 = vshll.u32 %v4675_v57, 16  ;;  %v5884_v20 = vcombine.low %v4798_v48, %v4808_v44  ;;  %v3745_v58 = vrot.slane %v3744_v30, 4  ;;  %v3755_v22 = vrot.slane %v3754_v12, 4  ;;  %v3634_v44 = vld [vmem:[#allocation3 + $0x44] sm:$0x1] }
 0x2a2   : > { %v4775_v61 = vshrl.u32 %v4675_v57, 16  ;;  %v5867_v27 = vcombine.low %v4486_v37, %v4489_v41  ;;  %v4855_v16 = vrot.slane %v4853_v15, 5  ;;  %v4765_v54 = vshll.u32 %v4674_v35, 16 }
 0x2a3   : > { %v4250_v46 = vsel %vm6320_vm5, %v4245_v60, %v8461_v11  ;;  %v4260_v43 = vsel %vm6320_vm5, %v4255_v23, %v4259_v24  ;;  %v3759_v26 = vrot.slane %v3757_v52, 5  ;;  %v8531_v25 = vrot.slane %v4762_v3, 4 }
 0x2a4   : > { %v4841_v4 = vrot.slane %v4840_v2, 4  ;;  %v4851_v55 = vrot.slane %v4850_v39, 4  ;;  %v5030_v51 = vrot.slane %v4957_v56, 5  ;;  %v8534_v8 = vrot.slane %v4771_v45, 5  ;;  %v8544_v37 = vpop.permute.xlu1 %4642 }
 0x2a5   : > { %4913 = vrot.lane.b32.xlu0 %v5884_v20, %s6201_s25  ;;  %4548 = vrot.lane.b32.xlu1 %v5867_v27, %s6203_s30  ;;  %v8536_v11 = vpop.permute.xlu0 %4120  ;;  %v3750_v33 = vsel %vm6320_vm5, %v3745_v58, %v8492_v13  ;;  %v4777_v42 = vrot.slane %v4775_v61, 4  ;;  %v3771_v6 = vshll.u32 %v3633_v5, 16  ;;  %v3775_v31 = vshrl.u32 %v3633_v5, 16  ;;  %v3907_v13 = vld [vmem:[#allocation3 + $0x44] sm:$0x1] }
 0x2a6   : > { %v5851_v1 = vcombine.low %v4250_v46, %v4260_v43  ;;  %v4856_v38 = vsel %vm6320_vm5, %v4851_v55, %v4855_v16  ;;  %v3975_v7 = vrot.slane %v8529_v14, 5  ;;  %v5033_v59 = vrot.slane %v4958_v10, 5  ;;  %v4156_v27 = vld [vmem:[#allocation3 + $0x48] sm:$0xf]  ;;  %v4157_v16 = vld [vmem:[#allocation3 + $0x4c] sm:$0xf] }
 0x2a7   : > { %v3760_v34 = vsel %vm6320_vm5, %v3755_v22, %v3759_v26  ;;  %v4767_v50 = vrot.slane %v4765_v54, 5  ;;  %v3762_v28 = vshrl.u32 %v3632_v47, 16  ;;  %v3765_v19 = vshll.u32 %v3632_v47, 16  ;;  %v6165_v22 = vld [vmem:[#allocation3 + $0x3c] sm:$0xff]  }
 0x2a8   : > { %v4846_v29 = vsel %vm6320_vm5, %v4841_v4, %v8508_v40  ;;  %v5894_v17 = vrot.slane %v4956_v53, 9  ;;  %v5032_v36 = vrot.slane %v5030_v51, 4  ;;  %v4781_v49 = vshll.u32 %v4676_v62, 16  ;;  %v3905_v40 = vld [vmem:[#allocation3 + $0x3c] sm:$0xe] }
 0x2a9   : > { %4644 = vrot.lane.b32.xlu0 %v6164_v18, %s6200_s24  ;;  %4387 = vrot.lane.b32.xlu1 %v5851_v1, %s6193_s28  ;;  %v4019_v35 = vpop.permute.xlu0 %4018  ;;  %v5886_v9 = vcombine.low %v4846_v29, %v4856_v38  ;;  %v4778_v32 = vor.u32 %v4777_v42, %v8534_v8  ;;  %v8554_v30 = vrot.slane %v3771_v6, 5  ;;  %v3777_v12 = vrot.slane %v3775_v31, 4  ;;  %v4430_v4 = vld [vmem:[#allocation3 + $0x4c] sm:$0xf] }
 0x2aa   : > { %v5820_v57 = vcombine.low %v3750_v33, %v3760_v34  ;;  %v3977_v21 = vrot.slane %v3975_v7, 4  ;;  %v3978_v60 = vrot.slane %v3907_v13, 5  ;;  %v5034_v48 = vsel %vm6249_vm2, %v5032_v36, %v5033_v59  ;;  %v3636_v29 = vld [vmem:[#allocation3 + $0x4c] sm:$0xf] }
 0x2ab   : > { %v3764_v41 = vrot.slane %v3762_v28, 4  ;;  %v3767_v24 = vrot.slane %v3765_v19, 5  ;;  %v5031_v52 = vsel %vm6249_vm2, %v5894_v17, %v5030_v51  ;;  %v4768_v3 = vor.u32 %v4767_v50, %v8531_v25  ;;  %v3635_v28 = vld [vmem:[#allocation3 + $0x48] sm:$0xf]  ;;  %v4431_v19 = vld [vmem:[#allocation3 + $0x50] sm:$0x1] }
 0x2ac   : > { %v4783_v23 = vrot.slane %v4781_v49, 5  ;;  %v5902_v39 = vcombine.low %v5031_v52, %v5034_v48  ;;  %v4779_v45 = vrot.slane %v4778_v32, 4  ;;  %v3778_v20 = vor.u32 %v3777_v12, %v8554_v30  ;;  %v6168_v52 = vld [vmem:[#allocation3 + $0x48] sm:$0xff]  }
 0x2ad   : > { %v4033_v15 = vpop.permute.xlu1 %4032  ;;  %4917 = vrot.lane.b32.xlu0 %v5886_v9, %s6201_s25  ;;  %3865 = vrot.lane.b32.xlu1 %v5820_v57, %s6192_s27  ;;  %v3858_v2 = vpop.permute.xlu0 %3857  ;;  %v3781_v58 = vshll.u32 %v3634_v44, 16  ;;  %v5829_v56 = vrot.slane %v3905_v40, 9  ;;  %v3979_v61 = vsel %vm6249_vm2, %v3977_v21, %v3978_v60  ;;  %v4769_v5 = vrot.slane %v4768_v3, 4  ;;  %v4158_v9 = vld [vmem:[#allocation3 + $0x50] sm:$0x1] }
 0x2ae   : > { %3882 = vst.msk [vmem:[#allocation4] sm:$0xff] %vm3881_vm14, %v3858_v2  ;;  %v3768_v46 = vor.u32 %v3767_v24, %v3764_v41  ;;  %v4784_v14 = vsel %vm6320_vm5, %v4779_v45, %v4783_v23  ;;  %v3779_v10 = vrot.slane %v3778_v20, 4  ;;  %v4286_v55 = vshrl.u32 %v4156_v27, 16 }
 0x2af   : > { %4043 = vst.msk [vmem:[#allocation4] sm:$0xff] %vm4042_vm0, %v4019_v35  ;;  %v3976_v54 = vsel %vm6249_vm2, %v5829_v56, %v3975_v7  ;;  %v3783_v25 = vrot.slane %v3781_v58, 5  ;;  %v4289_v51 = vshll.u32 %v4156_v27, 16  ;;  %v4295_v62 = vshll.u32 %v4157_v16, 16  ;;  %v4429_v7 = vld [vmem:[#allocation3 + $0x48] sm:$0xe] }
 0x2b0   : > { %v5837_v43 = vcombine.low %v3976_v54, %v3979_v61  ;;  %v4299_v33 = vshrl.u32 %v4157_v16, 16  ;;  %v4774_v18 = vsel %vm6320_vm5, %v4769_v5, %v8534_v8  ;;  %v3769_v6 = vrot.slane %v3768_v46, 4  ;;  %v4686_v58 = vld [vmem:[#allocation3 + $0x6c] sm:$0xf]  ;;  %v3637_v5 = vld [vmem:[#allocation3 + $0x50] sm:$0x1] }
 0x2b1   : > { %5078 = vrot.lane.b32.xlu0 %v5902_v39, %s6202_s29  ;;  %4638 = vrot.lane.b32.xlu1 %v6165_v22, %s6200_s24  ;;  %v5883_v53 = vcombine.low %v4774_v18, %v4784_v14  ;;  %v3784_v31 = vsel %vm6320_vm5, %v3779_v10, %v3783_v25  ;;  %v4499_v1 = vrot.slane %v4430_v4, 5  ;;  %v4288_v59 = vrot.slane %v4286_v55, 4 }
 0x2b2   : > { %v8574_v26 = vpop.permute.xlu0 %5076  ;;  %v4291_v34 = vrot.slane %v4289_v51, 5  ;;  %v4297_v13 = vrot.slane %v4295_v62, 5  ;;  %v4301_v50 = vrot.slane %v4299_v33, 4  ;;  %v3774_v8 = vsel %vm6320_vm5, %v3769_v6, %v8554_v30  ;;  %v4687_v30 = vld [vmem:[#allocation3 + $0x70] sm:$0xf] }
 0x2b3   : > { %v8572_v47 = vpop.permute.xlu1 %4915  ;;  %v5821_v17 = vcombine.low %v3774_v8, %v3784_v31  ;;  %v5861_v49 = vrot.slane %v4429_v7, 9  ;;  %v4501_v35 = vrot.slane %v4499_v1, 4  ;;  %v3786_v57 = vshrl.u32 %v3635_v28, 16  ;;  %v4688_v51 = vld [vmem:[#allocation3 + $0x74] sm:$0x1] }
 0x2b4   : > { %v4292_v32 = vor.u32 %v4291_v34, %v4288_v59  ;;  %v4302_v12 = vor.u32 %v4301_v50, %v4297_v13  ;;  %v3789_v21 = vshll.u32 %v3635_v28, 16  ;;  %v4502_v60 = vrot.slane %v4431_v19, 5  ;;  %v4960_v59 = vld [vmem:[#allocation3 + $0x70] sm:$0xf] }
 0x2b5   : > { %4028 = vrot.lane.b32.xlu1 %v5837_v43, %s6196_s6  ;;  %v3795_v48 = vshll.u32 %v3636_v29, 16  ;;  %v3799_v44 = vshrl.u32 %v3636_v29, 16  ;;  %v4500_v40 = vsel %vm6249_vm2, %v5861_v49, %v4499_v1  ;;  %v4305_v24 = vshll.u32 %v4158_v9, 16  ;;  %v6169_v50 = vld [vmem:[#allocation3 + $0x6c] sm:$0xff]  }
 0x2b6   : > { %v4503_v41 = vsel %vm6249_vm2, %v4501_v35, %v4502_v60  ;;  %v4293_v3 = vrot.slane %v4292_v32, 4  ;;  %v4303_v23 = vrot.slane %v4302_v12, 4  ;;  %v3788_v2 = vrot.slane %v3786_v57, 4  ;;  %v4961_v35 = vld [vmem:[#allocation3 + $0x74] sm:$0x1] }
 0x2b7   : > { %v8582_v42 = vpop.permute.xlu0 %4554  ;;  %v3791_v39 = vrot.slane %v3789_v21, 5  ;;  %v3797_v45 = vrot.slane %v3795_v48, 5  ;;  %v3801_v20 = vrot.slane %v3799_v44, 4  ;;  %v4867_v22 = vshll.u32 %v4687_v30, 16  ;;  %v4959_v44 = vld [vmem:[#allocation3 + $0x6c] sm:$0xe] }
 0x2b8   : > { %v3872_v38 = vpop.permute.xlu1 %3871  ;;  %v4871_v56 = vshrl.u32 %v4687_v30, 16  ;;  %v5869_v61 = vcombine.low %v4500_v40, %v4503_v41  ;;  %v4307_v16 = vrot.slane %v4305_v24, 5  ;;  %v4298_v54 = vsel %vm6320_vm5, %v4293_v3, %v4297_v13 }
 0x2b9   : > { %3889 = vst.msk [vmem:[#allocation4 + $0x38] sm:$0xff] %vm3881_vm14, %v3872_v38  ;;  %4911 = vrot.lane.b32.xlu1 %v5883_v53, %s6201_s25  ;;  %v3792_v46 = vor.u32 %v3791_v39, %v3788_v2  ;;  %v4858_v43 = vshrl.u32 %v4686_v58, 16  ;;  %v4861_v14 = vshll.u32 %v4686_v58, 16  ;;  %v3802_v25 = vor.u32 %v3801_v20, %v3797_v45 }
 0x2ba   : > { %4050 = vst.msk [vmem:[#allocation4 + $0x38] sm:$0xff] %vm4042_vm0, %v4033_v15  ;;  %v4308_v10 = vsel %vm6320_vm5, %v4303_v23, %v4307_v16  ;;  %v4869_v4 = vrot.slane %v4867_v22, 5  ;;  %v4873_v55 = vrot.slane %v4871_v56, 4  ;;  %vm4566_vm4 = vcmask 392512  }
 0x2bb   : > { %v4109_v36 = vpop.permute.xlu0 %4108  ;;  %v3805_v33 = vshll.u32 %v3637_v5, 16  ;;  %v5853_v18 = vcombine.low %v4298_v54, %v4308_v10  ;;  %v3793_v53 = vrot.slane %v3792_v46, 4  ;;  %v4860_v6 = vrot.slane %v4858_v43, 4 }
 0x2bc   : > { %4133 = vst.msk [vmem:[#allocation4] sm:$0xff] %vm4132_vm1, %v4109_v36  ;;  %v4863_v31 = vrot.slane %v4861_v14, 5  ;;  %v3803_v1 = vrot.slane %v3802_v25, 4  ;;  %v4874_v38 = vor.u32 %v4873_v55, %v4869_v4  ;;  %v4877_v7 = vshll.u32 %v4688_v51, 16 }
 0x2bd   : > { %3867 = vrot.lane.b32.xlu1 %v5821_v17, %s6192_s27  ;;  %v3807_v13 = vrot.slane %v3805_v33, 5  ;;  %v3798_v28 = vsel %vm6320_vm5, %v3793_v53, %v3797_v45  ;;  %v5037_v49 = vrot.slane %v4960_v59, 5  ;;  %v5040_v48 = vrot.slane %v4961_v35, 5 }
 0x2be   : > { %v4864_v8 = vor.u32 %v4863_v31, %v4860_v6  ;;  %v4875_v17 = vrot.slane %v4874_v38, 4  ;;  %v4879_v36 = vrot.slane %v4877_v7, 5  ;;  %vm4929_vm15 = vcmask 523712  }
 0x2bf   : > { %v8594_v15 = vpop.permute.xlu0 %4393  ;;  %v3808_v29 = vsel %vm6320_vm5, %v3803_v1, %v3807_v13  ;;  %v5039_v60 = vrot.slane %v5037_v49, 4 }
 0x2c0   : > { %v5822_v32 = vcombine.low %v3798_v28, %v3808_v29  ;;  %v4865_v57 = vrot.slane %v4864_v8, 4  ;;  %v4880_v21 = vsel %vm6320_vm5, %v4875_v17, %v4879_v36 }
 0x2c1   : > { %4118 = vrot.lane.b32.xlu1 %v6168_v52, %s6191_s26  ;;  %v5895_v52 = vrot.slane %v4959_v44, 9  ;;  %v5041_v3 = vsel %vm6249_vm2, %v5039_v60, %v5040_v48 }
 0x2c2   : > { %v4870_v30 = vsel %vm6320_vm5, %v4865_v57, %v4869_v4  ;;  %vm5150_vm5 = vcmask 588800  }
 0x2c3   : > { %v4543_v27 = vpop.permute.xlu0 %4542  ;;  %v5887_v41 = vcombine.low %v4870_v30, %v4880_v21  ;;  %v5038_v23 = vsel %vm6249_vm2, %v5895_v52, %v5037_v49 }
 0x2c4   : > { %v5903_v2 = vcombine.low %v5038_v23, %v5041_v3 }
 0x2c5   : > { %4552 = vrot.lane.b32.xlu1 %v5869_v61, %s6203_s30 }
 0x2c7   : > { %v4382_v62 = vpop.permute.xlu0 %4381 }
 0x2c8   : > { %4406 = vst.msk [vmem:[#allocation4] sm:$0xff] %vm4405_vm3, %v4382_v62 }
 0x2c9   : > { %4567 = vst.msk [vmem:[#allocation4] sm:$0xff] %vm4566_vm4, %v4543_v27  ;;  %4391 = vrot.lane.b32.xlu1 %v5853_v18, %s6193_s28  ;;  %s5920_s28 = sshll.u32 %s6246_s20, 7 }
 0x2ca   : > { %s8703_s23 = scalar_lea.vmem %s8745_s5, %s5920_s28 }
 0x2cb   : > { %v4633_v34 = vpop.permute.xlu0 %4632  ;;  %v4123_v19 = vpop.permute.xlu1 %4122 }
 0x2cc   : > { %4657 = vst.msk [vmem:[#allocation4] sm:$0xff] %vm4656_vm6, %v4633_v34 }
 0x2cd   : > { %4646 = vrot.lane.b32.xlu1 %v6169_v50, %s6200_s24  ;;  %4140 = vst.msk [vmem:[#allocation4 + $0x38] sm:$0xff] %vm4132_vm1, %v4123_v19 }
 0x2cf   : > { %v5067_v9 = vpop.permute.xlu0 %5066  ;;  %v4021_v12 = vpop.permute.xlu1 %4020 }
 0x2d1   : > { %3869 = vrot.lane.b32.xlu1 %v5822_v32, %s6192_s27 }
 0x2d3   : > { %v4023_v40 = vpop.permute.xlu0 %4022  ;;  %v3860_v24 = vpop.permute.xlu1 %3859 }
 0x2d4   : > { %3883 = vst.msk [vmem:[#allocation4 + $0x8] sm:$0xff] %vm3881_vm14, %v3860_v24 }
 0x2d5   : > { %4919 = vrot.lane.b32.xlu1 %v5887_v41, %s6201_s25  ;;  %4044 = vst.msk [vmem:[#allocation4 + $0x8] sm:$0xff] %vm4042_vm0, %v4021_v12 }
 0x2d7   : > { %v4906_v63 = vpop.permute.xlu0 %4905  ;;  %v4111_v39 = vpop.permute.xlu1 %4110 }
 0x2d8   : > { %4930 = vst.msk [vmem:[#allocation4] sm:$0xff] %vm4929_vm15, %v4906_v63 }
 0x2d9   : > { %5091 = vst.msk [vmem:[#allocation4] sm:$0xff] %vm5090_vm7, %v5067_v9  ;;  %5080 = vrot.lane.b32.xlu1 %v5903_v2, %s6202_s29 }
 0x2da   : > { %4134 = vst.msk [vmem:[#allocation4 + $0x8] sm:$0xff] %vm4132_vm1, %v4111_v39 }
 0x2db   : > { %v4113_v45 = vpop.permute.xlu0 %4112 }
 0x2df   : > { %v5069_v20 = vpop.permute.xlu0 %5068 }
 0x2e0   : > { %v5099_v58 = vld [vmem:[#allocation4] sm:$0xff] }
 0x2e1   : > { %6058 = vmatprep.mubr.msk.bf16.mxu1 %vm5150_vm5, %v5099_v58 }
 0x2e3   : > { %v4547_v22 = vpop.permute.xlu0 %4546 }
 0x2e7   : > { %v4386_v0 = vpop.permute.xlu0 %4385 }
 0x2eb   : > { %v4637_v56 = vpop.permute.xlu0 %4636 }
 0x2ef   : > { %v5071_v61 = vpop.permute.xlu0 %5070  ;;  %v4557_v27 = vpop.permute.xlu1 %4556 }
 0x2f3   : > { %v4027_v16 = vpop.permute.xlu0 %4026  ;;  %v4396_v54 = vpop.permute.xlu1 %4395 }
 0x2f4   : > { %4413 = vst.msk [vmem:[#allocation4 + $0x38] sm:$0xff] %vm4405_vm3, %v4396_v54 }
 0x2f5   : > { %4574 = vst.msk [vmem:[#allocation4 + $0x38] sm:$0xff] %vm4566_vm4, %v4557_v27 }
 0x2f7   : > { %v4910_v5 = vpop.permute.xlu0 %4909  ;;  %v4545_v46 = vpop.permute.xlu1 %4544 }
 0x2fb   : > { %v4384_v43 = vpop.permute.xlu1 %4383  ;;  %v4117_v14 = vpop.permute.xlu0 %4116 }
 0x2fc   : > { %4407 = vst.msk [vmem:[#allocation4 + $0x8] sm:$0xff] %vm4405_vm3, %v4384_v43 }
 0x2fd   : > { %4568 = vst.msk [vmem:[#allocation4 + $0x8] sm:$0xff] %vm4566_vm4, %v4545_v46 }
 0x2ff   : > { %v3862_v10 = vpop.permute.xlu1 %3861  ;;  %v5073_v25 = vpop.permute.xlu0 %5072 }
 0x300   : > { %3884 = vst.msk [vmem:[#allocation4 + $0x10] sm:$0xff] %vm3881_vm14, %v3862_v10 }
 0x301   : > { %4045 = vst.msk [vmem:[#allocation4 + $0x10] sm:$0xff] %vm4042_vm0, %v4023_v40 }
 0x302   : > { %4135 = vst.msk [vmem:[#allocation4 + $0x10] sm:$0xff] %vm4132_vm1, %v4113_v45 }
 0x303   : > { %4408 = vst.msk [vmem:[#allocation4 + $0x10] sm:$0xff] %vm4405_vm3, %v4386_v0  ;;  %v4635_v4 = vpop.permute.xlu1 %4634  ;;  %v4551_v51 = vpop.permute.xlu0 %4550 }
 0x304   : > { %4569 = vst.msk [vmem:[#allocation4 + $0x10] sm:$0xff] %vm4566_vm4, %v4547_v22 }
 0x305   : > { %4658 = vst.msk [vmem:[#allocation4 + $0x8] sm:$0xff] %vm4656_vm6, %v4635_v4  ;;  %4659 = vst.msk [vmem:[#allocation4 + $0x10] sm:$0xff] %vm4656_vm6, %v4637_v56 }
 0x306   : > { %4932 = vst.msk [vmem:[#allocation4 + $0x10] sm:$0xff] %vm4929_vm15, %v4910_v5 }
 0x307   : > { %5093 = vst.msk [vmem:[#allocation4 + $0x10] sm:$0xff] %vm5090_vm7, %v5071_v61  ;;  %v4025_v55 = vpop.permute.xlu1 %4024  ;;  %v4390_v33 = vpop.permute.xlu0 %4389 }
 0x30b   : > { %v4908_v62 = vpop.permute.xlu1 %4907  ;;  %v4641_v53 = vpop.permute.xlu0 %4640 }
 0x30c   : > { %4931 = vst.msk [vmem:[#allocation4 + $0x8] sm:$0xff] %vm4929_vm15, %v4908_v62 }
 0x30d   : > { %5092 = vst.msk [vmem:[#allocation4 + $0x8] sm:$0xff] %vm5090_vm7, %v5069_v20 }
 0x30e   : > { %v5101_v1 = vld [vmem:[#allocation4 + $0x10] sm:$0xff] }
 0x30f   : > { %v3864_v18 = vpop.permute.xlu1 %3863  ;;  %v5075_v7 = vpop.permute.xlu0 %5074 }
 0x310   : > { %3885 = vst.msk [vmem:[#allocation4 + $0x18] sm:$0xff] %vm3881_vm14, %v3864_v18 }
 0x311   : > { %4046 = vst.msk [vmem:[#allocation4 + $0x18] sm:$0xff] %vm4042_vm0, %v4025_v55 }
 0x313   : > { %v4115_v6 = vpop.permute.xlu1 %4114  ;;  %v4031_v34 = vpop.permute.xlu0 %4030 }
 0x314   : > { %4136 = vst.msk [vmem:[#allocation4 + $0x18] sm:$0xff] %vm4132_vm1, %v4115_v6  ;;  %v5100_v31 = vld [vmem:[#allocation4 + $0x8] sm:$0xff] }
 0x315   : > { %6059 = vmatmul.mubr.msk.bf16.vlgmr.msra.gmra.mrb[20].mxu1 %vm5150_vm5, %v5100_v31 }
 0x316   : > { %6062 = vmatprep.mubr.msk.bf16.mxu1 %vm5150_vm5, %v5101_v1 }
 0x317   : > { %v4549_v38 = vpop.permute.xlu1 %4548  ;;  %v4914_v28 = vpop.permute.xlu0 %4913 }
 0x31b   : > { %v4388_v59 = vpop.permute.xlu1 %4387  ;;  %v4645_v32 = vpop.permute.xlu0 %4644 }
 0x31c   : > { %4409 = vst.msk [vmem:[#allocation4 + $0x18] sm:$0xff] %vm4405_vm3, %v4388_v59 }
 0x31d   : > { %4570 = vst.msk [vmem:[#allocation4 + $0x18] sm:$0xff] %vm4566_vm4, %v4549_v38 }
 0x31f   : > { %v3866_v13 = vpop.permute.xlu1 %3865  ;;  %v4918_v21 = vpop.permute.xlu0 %4917 }
 0x320   : > { %3886 = vst.msk [vmem:[#allocation4 + $0x20] sm:$0xff] %vm3881_vm14, %v3866_v13 }
 0x321   : > { %4047 = vst.msk [vmem:[#allocation4 + $0x20] sm:$0xff] %vm4042_vm0, %v4027_v16 }
 0x322   : > { %4137 = vst.msk [vmem:[#allocation4 + $0x20] sm:$0xff] %vm4132_vm1, %v4117_v14 }
 0x323   : > { %4410 = vst.msk [vmem:[#allocation4 + $0x20] sm:$0xff] %vm4405_vm3, %v4390_v33  ;;  %v4639_v50 = vpop.permute.xlu1 %4638 }
 0x324   : > { %4571 = vst.msk [vmem:[#allocation4 + $0x20] sm:$0xff] %vm4566_vm4, %v4551_v51 }
 0x325   : > { %4660 = vst.msk [vmem:[#allocation4 + $0x18] sm:$0xff] %vm4656_vm6, %v4639_v50  ;;  %4661 = vst.msk [vmem:[#allocation4 + $0x20] sm:$0xff] %vm4656_vm6, %v4641_v53 }
 0x326   : > { %4934 = vst.msk [vmem:[#allocation4 + $0x20] sm:$0xff] %vm4929_vm15, %v4914_v28 }
 0x327   : > { %5095 = vst.msk [vmem:[#allocation4 + $0x20] sm:$0xff] %vm5090_vm7, %v5075_v7  ;;  %v4029_v8 = vpop.permute.xlu1 %4028 }
 0x32b   : > { %v4912_v19 = vpop.permute.xlu1 %4911 }
 0x32c   : > { %4933 = vst.msk [vmem:[#allocation4 + $0x18] sm:$0xff] %vm4929_vm15, %v4912_v19 }
 0x32d   : > { %5094 = vst.msk [vmem:[#allocation4 + $0x18] sm:$0xff] %vm5090_vm7, %v5073_v25 }
 0x32e   : > { %v5103_v49 = vld [vmem:[#allocation4 + $0x20] sm:$0xff] }
 0x32f   : > { %v3868_v29 = vpop.permute.xlu1 %3867 }
 0x330   : > { %3887 = vst.msk [vmem:[#allocation4 + $0x28] sm:$0xff] %vm3881_vm14, %v3868_v29 }
 0x331   : > { %4048 = vst.msk [vmem:[#allocation4 + $0x28] sm:$0xff] %vm4042_vm0, %v4029_v8 }
 0x333   : > { %v4119_v17 = vpop.permute.xlu1 %4118 }
 0x334   : > { %4138 = vst.msk [vmem:[#allocation4 + $0x28] sm:$0xff] %vm4132_vm1, %v4119_v17  ;;  %v5102_v36 = vld [vmem:[#allocation4 + $0x18] sm:$0xff] }
 0x335   : > { %6063 = vmatmul.mubr.msk.bf16.gmra.mrb[24].mxu1 %vm5150_vm5, %v5102_v36 }
 0x336   : > { %6066 = vmatprep.mubr.msk.bf16.mxu1 %vm5150_vm5, %v5103_v49 }
 0x337   : > { %v4553_v35 = vpop.permute.xlu1 %4552 }
 0x33b   : > { %v4392_v9 = vpop.permute.xlu1 %4391 }
 0x33c   : > { %4411 = vst.msk [vmem:[#allocation4 + $0x28] sm:$0xff] %vm4405_vm3, %v4392_v9 }
 0x33d   : > { %4572 = vst.msk [vmem:[#allocation4 + $0x28] sm:$0xff] %vm4566_vm4, %v4553_v35 }
 0x33e   : > { %4662 = vst.msk [vmem:[#allocation4 + $0x28] sm:$0xff] %vm4656_vm6, %v8544_v37 }
 0x33f   : > { %4935 = vst.msk [vmem:[#allocation4 + $0x28] sm:$0xff] %vm4929_vm15, %v8572_v47  ;;  %v4647_v12 = vpop.permute.xlu1 %4646 }
 0x340   : > { %5096 = vst.msk [vmem:[#allocation4 + $0x28] sm:$0xff] %vm5090_vm7, %v8574_v26  ;;  %v5079_v26 = vpop.permute.xlu0 %5078 }
 0x341   : > { %4664 = vst.msk [vmem:[#allocation4 + $0x38] sm:$0xff] %vm4656_vm6, %v4647_v12 }
 0x343   : > { %v3870_v57 = vpop.permute.xlu1 %3869 }
 0x344   : > { %3888 = vst.msk [vmem:[#allocation4 + $0x30] sm:$0xff] %vm3881_vm14, %v3870_v57 }
 0x345   : > { %4049 = vst.msk [vmem:[#allocation4 + $0x30] sm:$0xff] %vm4042_vm0, %v4031_v34 }
 0x346   : > { %4139 = vst.msk [vmem:[#allocation4 + $0x30] sm:$0xff] %vm4132_vm1, %v8536_v11 }
 0x347   : > { %4412 = vst.msk [vmem:[#allocation4 + $0x30] sm:$0xff] %vm4405_vm3, %v8594_v15  ;;  %v4920_v37 = vpop.permute.xlu1 %4919  ;;  %v5104_v47 = vld [vmem:[#allocation4 + $0x28] sm:$0xff] }
 0x348   : > { %4573 = vst.msk [vmem:[#allocation4 + $0x30] sm:$0xff] %vm4566_vm4, %v8582_v42  ;;  %6067 = vmatmul.mubr.msk.bf16.gmra.mrb[28].mxu1 %vm5150_vm5, %v5104_v47  ;;  %v5904_v42 = vld [vmem:[%s8744_s4] ss:$0 sm:$0xff] }
 0x349   : > { %4937 = vst.msk [vmem:[#allocation4 + $0x38] sm:$0xff] %vm4929_vm15, %v4920_v37 }
 0x34a   : > { %4663 = vst.msk [vmem:[#allocation4 + $0x30] sm:$0xff] %vm4656_vm6, %v4645_v32 }
 0x34b   : > { %4936 = vst.msk [vmem:[#allocation4 + $0x30] sm:$0xff] %vm4929_vm15, %v4918_v21  ;;  %v5081_v11 = vpop.permute.xlu1 %5080 }
 0x34c   : > { %5097 = vst.msk [vmem:[#allocation4 + $0x30] sm:$0xff] %vm5090_vm7, %v5079_v26  ;;  %5098 = vst.msk [vmem:[#allocation4 + $0x38] sm:$0xff] %vm5090_vm7, %v5081_v11 }
 0x353   : > { %v5105_v15 = vld [vmem:[#allocation4 + $0x30] sm:$0xff]  ;;  %v5106_v60 = vld [vmem:[#allocation4 + $0x38] sm:$0xff] }
 0x354   : > { %6070 = vmatprep.mubr.msk.bf16.mxu1 %vm5150_vm5, %v5105_v15 }
 0x355   : > { %6071 = vmatmul.mubr.msk.bf16.gmra.mrb[32].mxu1 %vm5150_vm5, %v5106_v60 }
 0x3e8   : > { %v6060_v48 = vpop.f32.mrb[20].mxu1 }
 0x3e9   : > { %v5222_v44 = vadd.f32 %v6060_v48, %v5904_v42  ;;  %v5213_v30 = vpop.f32.mrb[21].mxu1 }
 0x3ea   : > { %v5214_v40 = vadd.f32 %v5904_v42, %v5213_v30  ;;  %v6061_v41 = vpop.f32.mrb[22].mxu1 }
 0x3eb   : > { %v5278_v24 = vmax.f32 %v5222_v44, 0.0  ;;  %v5225_v52 = vadd.f32 %v6061_v41, %v5904_v42  ;;  %v5216_v3 = vpop.f32.mrb[23].mxu1 }
 0x3ec   : > { %v5276_v23 = vmax.f32 %v5214_v40, 0.0  ;;  %v5217_v63 = vadd.f32 %v5904_v42, %v5216_v3 }
 0x3ed   : > { %5294 = vst.msk [vmem:[%s8703_s23 + $0x10] sm:$0xff] %vm3608_vm8, %v5278_v24  ;;  %v5279_v2 = vmax.f32 %v5225_v52, 0.0 }
 0x3ee   : > { %5292 = vst.msk [vmem:[%s8703_s23] sm:$0xff] %vm3608_vm8, %v5276_v23  ;;  %v5277_v39 = vmax.f32 %v5217_v63, 0.0 }
 0x3ef   : > { %5295 = vst.msk [vmem:[%s8703_s23 + $0x18] sm:$0xff] %vm3608_vm8, %v5279_v2 }
 0x3f0   : > { %5293 = vst.msk [vmem:[%s8703_s23 + $0x8] sm:$0xff] %vm3608_vm8, %v5277_v39 }
 0x408   : > { %v6064_v45 = vpop.f32.mrb[24].mxu1 }
 0x409   : > { %v5238_v20 = vadd.f32 %v6064_v45, %v5904_v42  ;;  %v5229_v58 = vpop.f32.mrb[25].mxu1 }
 0x40a   : > { %v5230_v22 = vadd.f32 %v5904_v42, %v5229_v58  ;;  %v6065_v0 = vpop.f32.mrb[26].mxu1 }
 0x40b   : > { %v5282_v56 = vmax.f32 %v5238_v20, 0.0  ;;  %v5241_v61 = vadd.f32 %v6065_v0, %v5904_v42  ;;  %v5232_v27 = vpop.f32.mrb[27].mxu1 }
 0x40c   : > { %v5280_v16 = vmax.f32 %v5230_v22, 0.0  ;;  %v5233_v54 = vadd.f32 %v5904_v42, %v5232_v27 }
 0x40d   : > { %5298 = vst.msk [vmem:[%s8703_s23 + $0x30] sm:$0xff] %vm3608_vm8, %v5282_v56  ;;  %v5283_v5 = vmax.f32 %v5241_v61, 0.0 }
 0x40e   : > { %5296 = vst.msk [vmem:[%s8703_s23 + $0x20] sm:$0xff] %vm3608_vm8, %v5280_v16  ;;  %v5281_v46 = vmax.f32 %v5233_v54, 0.0 }
 0x40f   : > { %5299 = vst.msk [vmem:[%s8703_s23 + $0x38] sm:$0xff] %vm3608_vm8, %v5283_v5 }
 0x410   : > { %5297 = vst.msk [vmem:[%s8703_s23 + $0x28] sm:$0xff] %vm3608_vm8, %v5281_v46 }
 0x41b   : > { %v6068_v43 = vpop.f32.mrb[28].mxu1 }
 0x41c   : > { %v5254_v14 = vadd.f32 %v6068_v43, %v5904_v42  ;;  %v5245_v10 = vpop.f32.mrb[29].mxu1 }
 0x41d   : > { %v5246_v25 = vadd.f32 %v5904_v42, %v5245_v10  ;;  %v6069_v4 = vpop.f32.mrb[30].mxu1 }
 0x41e   : > { %v5286_v55 = vmax.f32 %v5254_v14, 0.0  ;;  %v5257_v51 = vadd.f32 %v6069_v4, %v5904_v42  ;;  %v5248_v62 = vpop.f32.mrb[31].mxu1 }
 0x41f   : > { %v5284_v33 = vmax.f32 %v5246_v25, 0.0  ;;  %v5249_v18 = vadd.f32 %v5904_v42, %v5248_v62 }
 0x420   : > { %5302 = vst.msk [vmem:[%s8703_s23 + $0x50] sm:$0xff] %vm3608_vm8, %v5286_v55  ;;  %v5287_v53 = vmax.f32 %v5257_v51, 0.0 }
 0x421   : > { %5300 = vst.msk [vmem:[%s8703_s23 + $0x40] sm:$0xff] %vm3608_vm8, %v5284_v33  ;;  %v5285_v6 = vmax.f32 %v5249_v18, 0.0 }
 0x422   : > { %5303 = vst.msk [vmem:[%s8703_s23 + $0x58] sm:$0xff] %vm3608_vm8, %v5287_v53 }
 0x423   : > { %5301 = vst.msk [vmem:[%s8703_s23 + $0x48] sm:$0xff] %vm3608_vm8, %v5285_v6 }
 0x428   : > { %v6072_v31 = vpop.f32.mrb[32].mxu1 }
 0x429   : > { %v5270_v1 = vadd.f32 %v6072_v31, %v5904_v42  ;;  %v5261_v38 = vpop.f32.mrb[33].mxu1 }
 0x42a   : > { %v5262_v7 = vadd.f32 %v5904_v42, %v5261_v38  ;;  %v6073_v59 = vpop.f32.mrb[34].mxu1 }
 0x42b   : > { %v5290_v34 = vmax.f32 %v5270_v1, 0.0  ;;  %v5273_v13 = vadd.f32 %v6073_v59, %v5904_v42  ;;  %v5264_v50 = vpop.f32.mrb[35].mxu1 }
 0x42c   : > { %v5288_v28 = vmax.f32 %v5262_v7, 0.0  ;;  %v5265_v8 = vadd.f32 %v5904_v42, %v5264_v50 }
 0x42d   : > { %5306 = vst.msk [vmem:[%s8703_s23 + $0x70] sm:$0xff] %vm3608_vm8, %v5290_v34  ;;  %v5291_v19 = vmax.f32 %v5273_v13, 0.0 }
 0x42e   : > { %5304 = vst.msk [vmem:[%s8703_s23 + $0x60] sm:$0xff] %vm3608_vm8, %v5288_v28  ;;  %v5289_v29 = vmax.f32 %v5265_v8, 0.0 }
 0x42f   : > { %5307 = vst.msk [vmem:[%s8703_s23 + $0x78] sm:$0xff] %vm3608_vm8, %v5291_v19 }
 0x430   : > { %5305 = vst.msk [vmem:[%s8703_s23 + $0x68] sm:$0xff] %vm3608_vm8, %v5289_v29 }
 0x431 PF: > { %s15_s18 = sadd.s32 1, %s6188_s18  }
 0x432   : > { %p12_p8 = scmp.ge.s32.totalorder %s15_s18, 6  }
 0x434   :  { %14 = sbr.rel (!%p12_p8) target bundleno = 1 (0x1), region = 74 }

</bundles_post_ra>
